<compile_context>
chip_gen: v6e
topology: v6e:2x2x1
jax: 0.10.0
libtpu: 0.0.40
codegen_flags: <defaults>
</compile_context>

<pallas_src>
import functools

import numpy as np
import jax
import jax.numpy as jnp
from jax import lax
from jax.experimental import pallas as pl
from jax.experimental.pallas import tpu as pltpu

SQRT_HALF = 0.7071067811865476
N_LAYERS = 4


def _gelu(x):
    # exact (erf-based) GELU == torch.nn.functional.gelu default
    return 0.5 * x * (1.0 + lax.erf(x * SQRT_HALF))


# ----------------------------------------------------------------------------
# Fused kernel: lift -> 4x (SpectralConv1d + MLP + skip conv) -> projection q
# ----------------------------------------------------------------------------
def fno1d_kernel(x_ref, ff_ref, if_ref, pw_ref, pb_ref, wblk_ref,
                 m1b_ref, m2w_ref, m2b_ref, cw_ref, cb_ref,
                 q1w_ref, q1b_ref, q2w_ref, q2b_ref, o_ref,
                 *, modes, width):
    M, W = modes, width
    xr = x_ref[0]                                   # (1, N)
    N = xr.shape[1]

    ff = ff_ref[...]                                # (2M, N)  [Re rows ; Im rows]
    ifb = if_ref[...]                               # (2M, N)  inverse basis

    # ---- lift: Linear(2, W); grid channel generated in-kernel (VPU) ---------
    grid = lax.broadcasted_iota(jnp.int32, (1, N), 1).astype(jnp.float32) \
        * (1.0 / (N - 1))
    pw = pw_ref[...]                                # (W, 2)
    h = pw[:, 0:1] * xr + pw[:, 1:2] * grid + pb_ref[...]          # (W, N)

    for li in range(N_LAYERS):
        # -- SpectralConv1d: truncated rfft as ONE fused DFT matmul ----------
        # (2M, N) x (W, N) contracting N -> (2M, W) = [Re(X_k); Im(X_k)]
        xft = lax.dot_general(ff, h, (((1,), (1,)), ((), ())),
                              preferred_element_type=jnp.float32)
        # per-mode [Re | Im] stacked along lanes -> (M, 2W)
        z = jnp.concatenate([xft[:M, :], xft[M:, :]], axis=1)
        # batched complex channel mix on the MXU, with mlp1 already folded in:
        #   Wblk[k] = [[wr'_k, wi'_k], [-wi'_k, wr'_k]], w*' = w* @ m1w^T
        oz = lax.dot_general(z[:, None, :], wblk_ref[li],
                             (((2,), (1,)), ((0,), (0,))),
                             preferred_element_type=jnp.float32)[:, 0, :]  # (M, 2W)
        # restack [Re ; Im] along sublanes -> (2M, W)
        out_s = jnp.concatenate([oz[:, :W], oz[:, W:]], axis=0)
        # irfft with only the first M modes nonzero:
        #   (2M, W)^T-contract (2M, N)  ->  (W, N)   (already mlp1-mixed)
        x_spec = lax.dot_general(out_s, ifb, (((0,), (0,)), ((), ())),
                                 preferred_element_type=jnp.float32)

        # -- MLP branch: mlp1 was folded spectrally; add its bias, GELU, mlp2 --
        t = _gelu(x_spec + m1b_ref[li])
        x1 = jnp.dot(m2w_ref[li], t,
                     preferred_element_type=jnp.float32) + m2b_ref[li]
        # -- pointwise skip conv ----------------------------------------------
        x2 = jnp.dot(cw_ref[li], h,
                     preferred_element_type=jnp.float32) + cb_ref[li]
        h = x1 + x2
        if li < N_LAYERS - 1:                        # no GELU after last layer
            h = _gelu(h)

    # ---- projection q = MLP(W -> 2W -> 1) ------------------------------------
    t = _gelu(jnp.dot(q1w_ref[...], h,
                      preferred_element_type=jnp.float32) + q1b_ref[...])
    y = jnp.dot(q2w_ref[...], t,
                preferred_element_type=jnp.float32) + q2b_ref[...]      # (1, N)
    o_ref[0] = y                                      # lane-dense store


# ----------------------------------------------------------------------------
# pallas_call wrapper
# ----------------------------------------------------------------------------
def _full(shape):
    nd = len(shape)
    return pl.BlockSpec(shape, lambda b, _nd=nd: (0,) * _nd)


def fno1d_forward(x, params, basis):
    """x: (B, 1, N) -> (B, 1, N)."""
    ff, ifb = basis
    B, _, N = x.shape
    W = params['p_w'].shape[0]
    M = ff.shape[0] // 2
    layers = params['layers']
    assert len(layers) == N_LAYERS

    def block_weight(wr, wi, m1w):
        # Fold the first MLP 1x1 conv (applied right after the irfft) into the
        # per-mode spectral weight:  m1w @ irfft(S) == irfft(S @ m1w^T).
        wr = jnp.einsum('kio,po->kip', wr, m1w)       # (M, W, W)
        wi = jnp.einsum('kio,po->kip', wi, m1w)
        top = jnp.concatenate([wr, wi], axis=2)        # (M, W, 2W)
        bot = jnp.concatenate([-wi, wr], axis=2)
        return jnp.concatenate([top, bot], axis=1)     # (M, 2W, 2W)

    wblk = jnp.stack([block_weight(l[0], l[1], l[2]) for l in layers])  # (4,M,2W,2W)
    m1b = jnp.stack([l[3] for l in layers])                             # (4, W, 1)
    m2w = jnp.stack([l[4] for l in layers])                             # (4, W, W)
    m2b = jnp.stack([l[5] for l in layers])
    cw = jnp.stack([l[6] for l in layers])
    cb = jnp.stack([l[7] for l in layers])

    kern = functools.partial(fno1d_kernel, modes=M, width=W)
    # TODO(synk): for very large N, tile N for the pointwise/MLP portions (keep a
    # full-N accumulator only for the DFT contractions) and set
    # pltpu.CompilerParams(vmem_limit_bytes=...) to stay inside v7x's 64 MiB VMEM.
    return pl.pallas_call(
        kern,
        out_shape=jax.ShapeDtypeStruct((B, 1, N), jnp.float32),
        grid=(B,),
        in_specs=[
            pl.BlockSpec((1, 1, N), lambda b: (b, 0, 0)),          # x
            _full(ff.shape), _full(ifb.shape),                     # DFT bases
            _full(params['p_w'].shape), _full(params['p_b'].shape),
            _full(wblk.shape),
            _full(m1b.shape),
            _full(m2w.shape), _full(m2b.shape),
            _full(cw.shape), _full(cb.shape),
            _full(params['q1_w'].shape), _full(params['q1_b'].shape),
            _full(params['q2_w'].shape), _full(params['q2_b'].shape),
        ],
        out_specs=pl.BlockSpec((1, 1, N), lambda b: (b, 0, 0)),
        compiler_params=pltpu.CompilerParams(dimension_semantics=("parallel",)),
    )(x, ff, ifb, params['p_w'], params['p_b'], wblk,
      m1b, m2w, m2b, cw, cb,
      params['q1_w'], params['q1_b'], params['q2_w'], params['q2_b'])


# ----------------------------------------------------------------------------
# Constants / parameters (plain JAX glue)
# ----------------------------------------------------------------------------
def make_dft_basis(n, modes):
    """Fused real-DFT bases, modes on sublanes / n on lanes: (2M, n) each."""
    assert modes <= n // 2 + 1, "modes must be <= n//2 + 1"
    ks = np.arange(modes)
    ns = np.arange(n)
    ang = 2.0 * np.pi * np.outer(ks, ns) / n                       # (M, n)
    ff = np.concatenate([np.cos(ang), -np.sin(ang)], axis=0)       # (2M, n)
    c = np.full((modes,), 2.0)
    c[0] = 1.0
    if n % 2 == 0 and modes == n // 2 + 1:
        c[-1] = 1.0                                                # Nyquist mode
    ifb = np.concatenate([c[:, None] * np.cos(ang) / n,
                          -c[:, None] * np.sin(ang) / n], axis=0)  # (2M, n)
    return jnp.asarray(ff, jnp.float32), jnp.asarray(ifb, jnp.float32)


def init_fno_params(key, modes, width):
    W = width
    ks = iter(jax.random.split(key, 64))

    def u(shape, bound):
        return jax.random.uniform(next(ks), shape, jnp.float32, -bound, bound)

    params = {}
    kb = 1.0 / np.sqrt(2.0)                         # Linear(2, W)
    params['p_w'] = u((W, 2), kb)
    params['p_b'] = u((W, 1), kb)

    scale = 1.0 / (W * W)                           # SpectralConv1d scale
    kc = 1.0 / np.sqrt(W)                           # Conv1d(W, *, 1) bound
    layers = []
    for _ in range(N_LAYERS):
        wr = jax.random.uniform(next(ks), (modes, W, W), jnp.float32, 0.0, scale)
        wi = jax.random.uniform(next(ks), (modes, W, W), jnp.float32, 0.0, scale)
        m1w, m1b = u((W, W), kc), u((W, 1), kc)
        m2w, m2b = u((W, W), kc), u((W, 1), kc)
        cw, cb = u((W, W), kc), u((W, 1), kc)
        layers.append((wr, wi, m1w, m1b, m2w, m2b, cw, cb))
    params['layers'] = layers

    params['q1_w'], params['q1_b'] = u((2 * W, W), kc), u((2 * W, 1), kc)
    kq2 = 1.0 / np.sqrt(2.0 * W)
    params['q2_w'], params['q2_b'] = u((1, 2 * W), kq2), u((1, 1), kq2)
    return params


# ----------------------------------------------------------------------------
# Pure-JAX reference (jnp.fft, un-fused mlp1) for a correctness sanity check
# ----------------------------------------------------------------------------
def ref_forward(x, params, modes):
    gelu = lambda z: jax.nn.gelu(z, approximate=False)
    B, _, N = x.shape
    grid = jnp.broadcast_to(jnp.linspace(0.0, 1.0, N, dtype=jnp.float32), (B, N))
    inp = jnp.stack([x[:, 0, :], grid], axis=-1)                   # (B, N, 2)
    h = inp @ params['p_w'].T + params['p_b'][:, 0]                # (B, N, W)
    h = jnp.transpose(h, (0, 2, 1))                                # (B, W, N)

    def conv1x1(z, w, b):                                          # channel-first
        return jnp.einsum('oi,bin->bon', w, z) + b[None, :, :]

    for li, (wr, wi, m1w, m1b, m2w, m2b, cw, cb) in enumerate(params['layers']):
        wc = wr + 1j * wi                                          # (M, Win, Wout)
        x_ft = jnp.fft.rfft(h, axis=-1)
        prod = jnp.einsum('bik,kio->bok', x_ft[:, :, :modes], wc)
        out_ft = jnp.zeros((B, h.shape[1], N // 2 + 1),
                           jnp.complex64).at[:, :, :modes].set(prod)
        x1 = jnp.fft.irfft(out_ft, n=N, axis=-1)
        x1 = conv1x1(gelu(conv1x1(x1, m1w, m1b)), m2w, m2b)
        x2 = conv1x1(h, cw, cb)
        h = x1 + x2
        if li < N_LAYERS - 1:
            h = gelu(h)
    return conv1x1(gelu(conv1x1(h, params['q1_w'], params['q1_b'])),
                   params['q2_w'], params['q2_b'])                 # (B, 1, N)


# ----------------------------------------------------------------------------
if __name__ == "__main__":
    B, N = 2, 16
    modes, width = 8, 32

    key = jax.random.PRNGKey(0)
    k_in, k_par = jax.random.split(key)
    x = jax.random.normal(k_in, (B, 1, N), jnp.float32)

    params = init_fno_params(k_par, modes, width)
    basis = make_dft_basis(N, modes)

    out = jax.block_until_ready(fno1d_forward(x, params, basis))
    assert out.shape == (B, 1, N)

    ref = ref_forward(x, params, modes)
    np.testing.assert_allclose(np.asarray(out), np.asarray(ref),
                               rtol=2e-3, atol=2e-3)

    print("KERNEL_OK")
</pallas_src>

<mosaic_0001>
module attributes {stable_mosaic.version = 11 : i64} {
  func.func @fno1d_kernel(%arg0: i32, %arg1: memref<1x1x16xf32, #tpu.memory_space<vmem>>, %arg2: memref<16x16xf32, #tpu.memory_space<vmem>>, %arg3: memref<16x16xf32, #tpu.memory_space<vmem>>, %arg4: memref<32x2xf32, #tpu.memory_space<vmem>>, %arg5: memref<32x1xf32, #tpu.memory_space<vmem>>, %arg6: memref<4x8x64x64xf32, #tpu.memory_space<vmem>>, %arg7: memref<4x32x1xf32, #tpu.memory_space<vmem>>, %arg8: memref<4x32x32xf32, #tpu.memory_space<vmem>>, %arg9: memref<4x32x1xf32, #tpu.memory_space<vmem>>, %arg10: memref<4x32x32xf32, #tpu.memory_space<vmem>>, %arg11: memref<4x32x1xf32, #tpu.memory_space<vmem>>, %arg12: memref<64x32xf32, #tpu.memory_space<vmem>>, %arg13: memref<64x1xf32, #tpu.memory_space<vmem>>, %arg14: memref<1x64xf32, #tpu.memory_space<vmem>>, %arg15: memref<1x1xf32, #tpu.memory_space<vmem>>, %arg16: memref<1x1x16xf32, #tpu.memory_space<vmem>>) attributes {dimension_semantics = [#tpu.dimension_semantics<parallel>], iteration_bounds = array<i64: 2>, scalar_prefetch = 0 : i64, scratch_operands = 0 : i64, tpu.core_type = #tpu.core_type<tc>, window_params = [{transform_indices = @transform_0, window_bounds = array<i64: 1, 1, 16>}, {pipeline_mode = #tpu.pipeline_mode<synchronous>, transform_indices = @transform_1, window_bounds = array<i64: 16, 16>}, {pipeline_mode = #tpu.pipeline_mode<synchronous>, transform_indices = @transform_2, window_bounds = array<i64: 16, 16>}, {pipeline_mode = #tpu.pipeline_mode<synchronous>, transform_indices = @transform_3, window_bounds = array<i64: 32, 2>}, {pipeline_mode = #tpu.pipeline_mode<synchronous>, transform_indices = @transform_4, window_bounds = array<i64: 32, 1>}, {pipeline_mode = #tpu.pipeline_mode<synchronous>, transform_indices = @transform_5, window_bounds = array<i64: 4, 8, 64, 64>}, {pipeline_mode = #tpu.pipeline_mode<synchronous>, transform_indices = @transform_6, window_bounds = array<i64: 4, 32, 1>}, {pipeline_mode = #tpu.pipeline_mode<synchronous>, transform_indices = @transform_7, window_bounds = array<i64: 4, 32, 32>}, {pipeline_mode = #tpu.pipeline_mode<synchronous>, transform_indices = @transform_8, window_bounds = array<i64: 4, 32, 1>}, {pipeline_mode = #tpu.pipeline_mode<synchronous>, transform_indices = @transform_9, window_bounds = array<i64: 4, 32, 32>}, {pipeline_mode = #tpu.pipeline_mode<synchronous>, transform_indices = @transform_10, window_bounds = array<i64: 4, 32, 1>}, {pipeline_mode = #tpu.pipeline_mode<synchronous>, transform_indices = @transform_11, window_bounds = array<i64: 64, 32>}, {pipeline_mode = #tpu.pipeline_mode<synchronous>, transform_indices = @transform_12, window_bounds = array<i64: 64, 1>}, {pipeline_mode = #tpu.pipeline_mode<synchronous>, transform_indices = @transform_13, window_bounds = array<i64: 1, 64>}, {pipeline_mode = #tpu.pipeline_mode<synchronous>, transform_indices = @transform_14, window_bounds = array<i64: 1, 1>}, {transform_indices = @transform_15, window_bounds = array<i64: 1, 1, 16>}]} {
    %c0 = arith.constant 0 : index
    %c0_0 = arith.constant 0 : index
    %c0_1 = arith.constant 0 : index
    %0 = vector.load %arg1[%c0, %c0_0, %c0_1] : memref<1x1x16xf32, #tpu.memory_space<vmem>>, vector<1x1x16xf32>
    %1 = vector.shape_cast %0 : vector<1x1x16xf32> to vector<1x16xf32>
    %c0_2 = arith.constant 0 : index
    %c0_3 = arith.constant 0 : index
    %2 = vector.load %arg2[%c0_2, %c0_3] : memref<16x16xf32, #tpu.memory_space<vmem>>, vector<16x16xf32>
    %c0_4 = arith.constant 0 : index
    %c0_5 = arith.constant 0 : index
    %3 = vector.load %arg3[%c0_4, %c0_5] : memref<16x16xf32, #tpu.memory_space<vmem>>, vector<16x16xf32>
    %4 = tpu.iota {dimensions = array<i32: 1>} : vector<1x16xi32>
    %5 = arith.sitofp %4 : vector<1x16xi32> to vector<1x16xf32>
    %cst = arith.constant 0.0666666701 : f32
    %6 = vector.broadcast %cst : f32 to vector<1x16xf32>
    %7 = arith.mulf %5, %6 : vector<1x16xf32>
    %c0_6 = arith.constant 0 : index
    %c0_7 = arith.constant 0 : index
    %8 = vector.load %arg4[%c0_6, %c0_7] : memref<32x2xf32, #tpu.memory_space<vmem>>, vector<32x2xf32>
    %9 = vector.extract_strided_slice %8 {offsets = [0, 0], sizes = [32, 1], strides = [1, 1]} : vector<32x2xf32> to vector<32x1xf32>
    %10 = vector.broadcast %9 : vector<32x1xf32> to vector<32x16xf32>
    %11 = vector.broadcast %1 : vector<1x16xf32> to vector<32x16xf32>
    %12 = arith.mulf %10, %11 : vector<32x16xf32>
    %13 = vector.extract_strided_slice %8 {offsets = [0, 1], sizes = [32, 1], strides = [1, 1]} : vector<32x2xf32> to vector<32x1xf32>
    %14 = vector.broadcast %13 : vector<32x1xf32> to vector<32x16xf32>
    %15 = vector.broadcast %7 : vector<1x16xf32> to vector<32x16xf32>
    %16 = arith.mulf %14, %15 : vector<32x16xf32>
    %17 = arith.addf %12, %16 : vector<32x16xf32>
    %c0_8 = arith.constant 0 : index
    %c0_9 = arith.constant 0 : index
    %18 = vector.load %arg5[%c0_8, %c0_9] : memref<32x1xf32, #tpu.memory_space<vmem>>, vector<32x1xf32>
    %19 = vector.broadcast %18 : vector<32x1xf32> to vector<32x16xf32>
    %20 = arith.addf %17, %19 : vector<32x16xf32>
    %cst_10 = arith.constant dense<0.000000e+00> : vector<16x32xf32>
    %21 = tpu.matmul %2, %20, %cst_10 {dimension_numbers = #tpu.dot_dimension_numbers<[1], [1], [0], [0], [0, 0, 1, 0], [], []>} : vector<16x16xf32>, vector<32x16xf32>, vector<16x32xf32> -> vector<16x32xf32>
    %22 = vector.extract_strided_slice %21 {offsets = [0, 0], sizes = [8, 32], strides = [1, 1]} : vector<16x32xf32> to vector<8x32xf32>
    %23 = vector.extract_strided_slice %21 {offsets = [8, 0], sizes = [8, 32], strides = [1, 1]} : vector<16x32xf32> to vector<8x32xf32>
    %24 = tpu.concatenate %22, %23 in 1 : vector<8x32xf32>, vector<8x32xf32> -> vector<8x64xf32>
    %25 = vector.shape_cast %24 : vector<8x64xf32> to vector<8x1x64xf32>
    %c0_11 = arith.constant 0 : index
    %c0_12 = arith.constant 0 : index
    %c0_13 = arith.constant 0 : index
    %c0_14 = arith.constant 0 : index
    %26 = vector.load %arg6[%c0_11, %c0_12, %c0_13, %c0_14] : memref<4x8x64x64xf32, #tpu.memory_space<vmem>>, vector<1x8x64x64xf32>
    %27 = vector.shape_cast %26 : vector<1x8x64x64xf32> to vector<8x64x64xf32>
    %cst_15 = arith.constant dense<0.000000e+00> : vector<8x1x64xf32>
    %28 = tpu.matmul %25, %27, %cst_15 {dimension_numbers = #tpu.dot_dimension_numbers<[2], [1], [1], [2], [0, 0, 0, 1, 1, 2], [0], [0]>} : vector<8x1x64xf32>, vector<8x64x64xf32>, vector<8x1x64xf32> -> vector<8x1x64xf32>
    %29 = vector.shape_cast %28 : vector<8x1x64xf32> to vector<8x64xf32>
    %30 = vector.extract_strided_slice %29 {offsets = [0, 0], sizes = [8, 32], strides = [1, 1]} : vector<8x64xf32> to vector<8x32xf32>
    %31 = vector.extract_strided_slice %29 {offsets = [0, 32], sizes = [8, 32], strides = [1, 1]} : vector<8x64xf32> to vector<8x32xf32>
    %32 = tpu.concatenate %30, %31 in 0 : vector<8x32xf32>, vector<8x32xf32> -> vector<16x32xf32>
    %cst_16 = arith.constant dense<0.000000e+00> : vector<32x16xf32>
    %33 = tpu.matmul %32, %3, %cst_16 {dimension_numbers = #tpu.dot_dimension_numbers<[0], [0], [1], [1], [0, 1, 1, 1], [], []>} : vector<16x32xf32>, vector<16x16xf32>, vector<32x16xf32> -> vector<32x16xf32>
    %c0_17 = arith.constant 0 : index
    %c0_18 = arith.constant 0 : index
    %c0_19 = arith.constant 0 : index
    %34 = vector.load %arg7[%c0_17, %c0_18, %c0_19] : memref<4x32x1xf32, #tpu.memory_space<vmem>>, vector<1x32x1xf32>
    %35 = vector.shape_cast %34 : vector<1x32x1xf32> to vector<32x1xf32>
    %36 = vector.broadcast %35 : vector<32x1xf32> to vector<32x16xf32>
    %37 = arith.addf %33, %36 : vector<32x16xf32>
    %cst_20 = arith.constant 5.000000e-01 : f32
    %38 = vector.broadcast %cst_20 : f32 to vector<32x16xf32>
    %39 = arith.mulf %38, %37 : vector<32x16xf32>
    %cst_21 = arith.constant 0.707106769 : f32
    %40 = vector.broadcast %cst_21 : f32 to vector<32x16xf32>
    %41 = arith.mulf %37, %40 : vector<32x16xf32>
    %42 = math.erf %41 : vector<32x16xf32>
    %cst_22 = arith.constant 1.000000e+00 : f32
    %43 = vector.broadcast %cst_22 : f32 to vector<32x16xf32>
    %44 = arith.addf %43, %42 : vector<32x16xf32>
    %45 = arith.mulf %39, %44 : vector<32x16xf32>
    %c0_23 = arith.constant 0 : index
    %c0_24 = arith.constant 0 : index
    %c0_25 = arith.constant 0 : index
    %46 = vector.load %arg8[%c0_23, %c0_24, %c0_25] : memref<4x32x32xf32, #tpu.memory_space<vmem>>, vector<1x32x32xf32>
    %47 = vector.shape_cast %46 : vector<1x32x32xf32> to vector<32x32xf32>
    %cst_26 = arith.constant dense<0.000000e+00> : vector<32x16xf32>
    %48 = tpu.matmul %47, %45, %cst_26 {dimension_numbers = #tpu.dot_dimension_numbers<[1], [0], [0], [1], [0, 0, 1, 1], [], []>} : vector<32x32xf32>, vector<32x16xf32>, vector<32x16xf32> -> vector<32x16xf32>
    %c0_27 = arith.constant 0 : index
    %c0_28 = arith.constant 0 : index
    %c0_29 = arith.constant 0 : index
    %49 = vector.load %arg9[%c0_27, %c0_28, %c0_29] : memref<4x32x1xf32, #tpu.memory_space<vmem>>, vector<1x32x1xf32>
    %50 = vector.shape_cast %49 : vector<1x32x1xf32> to vector<32x1xf32>
    %51 = vector.broadcast %50 : vector<32x1xf32> to vector<32x16xf32>
    %52 = arith.addf %48, %51 : vector<32x16xf32>
    %c0_30 = arith.constant 0 : index
    %c0_31 = arith.constant 0 : index
    %c0_32 = arith.constant 0 : index
    %53 = vector.load %arg10[%c0_30, %c0_31, %c0_32] : memref<4x32x32xf32, #tpu.memory_space<vmem>>, vector<1x32x32xf32>
    %54 = vector.shape_cast %53 : vector<1x32x32xf32> to vector<32x32xf32>
    %cst_33 = arith.constant dense<0.000000e+00> : vector<32x16xf32>
    %55 = tpu.matmul %54, %20, %cst_33 {dimension_numbers = #tpu.dot_dimension_numbers<[1], [0], [0], [1], [0, 0, 1, 1], [], []>} : vector<32x32xf32>, vector<32x16xf32>, vector<32x16xf32> -> vector<32x16xf32>
    %c0_34 = arith.constant 0 : index
    %c0_35 = arith.constant 0 : index
    %c0_36 = arith.constant 0 : index
    %56 = vector.load %arg11[%c0_34, %c0_35, %c0_36] : memref<4x32x1xf32, #tpu.memory_space<vmem>>, vector<1x32x1xf32>
    %57 = vector.shape_cast %56 : vector<1x32x1xf32> to vector<32x1xf32>
    %58 = vector.broadcast %57 : vector<32x1xf32> to vector<32x16xf32>
    %59 = arith.addf %55, %58 : vector<32x16xf32>
    %60 = arith.addf %52, %59 : vector<32x16xf32>
    %cst_37 = arith.constant 5.000000e-01 : f32
    %61 = vector.broadcast %cst_37 : f32 to vector<32x16xf32>
    %62 = arith.mulf %61, %60 : vector<32x16xf32>
    %cst_38 = arith.constant 0.707106769 : f32
    %63 = vector.broadcast %cst_38 : f32 to vector<32x16xf32>
    %64 = arith.mulf %60, %63 : vector<32x16xf32>
    %65 = math.erf %64 : vector<32x16xf32>
    %cst_39 = arith.constant 1.000000e+00 : f32
    %66 = vector.broadcast %cst_39 : f32 to vector<32x16xf32>
    %67 = arith.addf %66, %65 : vector<32x16xf32>
    %68 = arith.mulf %62, %67 : vector<32x16xf32>
    %cst_40 = arith.constant dense<0.000000e+00> : vector<16x32xf32>
    %69 = tpu.matmul %2, %68, %cst_40 {dimension_numbers = #tpu.dot_dimension_numbers<[1], [1], [0], [0], [0, 0, 1, 0], [], []>} : vector<16x16xf32>, vector<32x16xf32>, vector<16x32xf32> -> vector<16x32xf32>
    %70 = vector.extract_strided_slice %69 {offsets = [0, 0], sizes = [8, 32], strides = [1, 1]} : vector<16x32xf32> to vector<8x32xf32>
    %71 = vector.extract_strided_slice %69 {offsets = [8, 0], sizes = [8, 32], strides = [1, 1]} : vector<16x32xf32> to vector<8x32xf32>
    %72 = tpu.concatenate %70, %71 in 1 : vector<8x32xf32>, vector<8x32xf32> -> vector<8x64xf32>
    %73 = vector.shape_cast %72 : vector<8x64xf32> to vector<8x1x64xf32>
    %c1 = arith.constant 1 : index
    %c0_41 = arith.constant 0 : index
    %c0_42 = arith.constant 0 : index
    %c0_43 = arith.constant 0 : index
    %74 = vector.load %arg6[%c1, %c0_41, %c0_42, %c0_43] : memref<4x8x64x64xf32, #tpu.memory_space<vmem>>, vector<1x8x64x64xf32>
    %75 = vector.shape_cast %74 : vector<1x8x64x64xf32> to vector<8x64x64xf32>
    %cst_44 = arith.constant dense<0.000000e+00> : vector<8x1x64xf32>
    %76 = tpu.matmul %73, %75, %cst_44 {dimension_numbers = #tpu.dot_dimension_numbers<[2], [1], [1], [2], [0, 0, 0, 1, 1, 2], [0], [0]>} : vector<8x1x64xf32>, vector<8x64x64xf32>, vector<8x1x64xf32> -> vector<8x1x64xf32>
    %77 = vector.shape_cast %76 : vector<8x1x64xf32> to vector<8x64xf32>
    %78 = vector.extract_strided_slice %77 {offsets = [0, 0], sizes = [8, 32], strides = [1, 1]} : vector<8x64xf32> to vector<8x32xf32>
    %79 = vector.extract_strided_slice %77 {offsets = [0, 32], sizes = [8, 32], strides = [1, 1]} : vector<8x64xf32> to vector<8x32xf32>
    %80 = tpu.concatenate %78, %79 in 0 : vector<8x32xf32>, vector<8x32xf32> -> vector<16x32xf32>
    %cst_45 = arith.constant dense<0.000000e+00> : vector<32x16xf32>
    %81 = tpu.matmul %80, %3, %cst_45 {dimension_numbers = #tpu.dot_dimension_numbers<[0], [0], [1], [1], [0, 1, 1, 1], [], []>} : vector<16x32xf32>, vector<16x16xf32>, vector<32x16xf32> -> vector<32x16xf32>
    %c1_46 = arith.constant 1 : index
    %c0_47 = arith.constant 0 : index
    %c0_48 = arith.constant 0 : index
    %82 = vector.load %arg7[%c1_46, %c0_47, %c0_48] : memref<4x32x1xf32, #tpu.memory_space<vmem>>, vector<1x32x1xf32>
    %83 = vector.shape_cast %82 : vector<1x32x1xf32> to vector<32x1xf32>
    %84 = vector.broadcast %83 : vector<32x1xf32> to vector<32x16xf32>
    %85 = arith.addf %81, %84 : vector<32x16xf32>
    %cst_49 = arith.constant 5.000000e-01 : f32
    %86 = vector.broadcast %cst_49 : f32 to vector<32x16xf32>
    %87 = arith.mulf %86, %85 : vector<32x16xf32>
    %cst_50 = arith.constant 0.707106769 : f32
    %88 = vector.broadcast %cst_50 : f32 to vector<32x16xf32>
    %89 = arith.mulf %85, %88 : vector<32x16xf32>
    %90 = math.erf %89 : vector<32x16xf32>
    %cst_51 = arith.constant 1.000000e+00 : f32
    %91 = vector.broadcast %cst_51 : f32 to vector<32x16xf32>
    %92 = arith.addf %91, %90 : vector<32x16xf32>
    %93 = arith.mulf %87, %92 : vector<32x16xf32>
    %c1_52 = arith.constant 1 : index
    %c0_53 = arith.constant 0 : index
    %c0_54 = arith.constant 0 : index
    %94 = vector.load %arg8[%c1_52, %c0_53, %c0_54] : memref<4x32x32xf32, #tpu.memory_space<vmem>>, vector<1x32x32xf32>
    %95 = vector.shape_cast %94 : vector<1x32x32xf32> to vector<32x32xf32>
    %cst_55 = arith.constant dense<0.000000e+00> : vector<32x16xf32>
    %96 = tpu.matmul %95, %93, %cst_55 {dimension_numbers = #tpu.dot_dimension_numbers<[1], [0], [0], [1], [0, 0, 1, 1], [], []>} : vector<32x32xf32>, vector<32x16xf32>, vector<32x16xf32> -> vector<32x16xf32>
    %c1_56 = arith.constant 1 : index
    %c0_57 = arith.constant 0 : index
    %c0_58 = arith.constant 0 : index
    %97 = vector.load %arg9[%c1_56, %c0_57, %c0_58] : memref<4x32x1xf32, #tpu.memory_space<vmem>>, vector<1x32x1xf32>
    %98 = vector.shape_cast %97 : vector<1x32x1xf32> to vector<32x1xf32>
    %99 = vector.broadcast %98 : vector<32x1xf32> to vector<32x16xf32>
    %100 = arith.addf %96, %99 : vector<32x16xf32>
    %c1_59 = arith.constant 1 : index
    %c0_60 = arith.constant 0 : index
    %c0_61 = arith.constant 0 : index
    %101 = vector.load %arg10[%c1_59, %c0_60, %c0_61] : memref<4x32x32xf32, #tpu.memory_space<vmem>>, vector<1x32x32xf32>
    %102 = vector.shape_cast %101 : vector<1x32x32xf32> to vector<32x32xf32>
    %cst_62 = arith.constant dense<0.000000e+00> : vector<32x16xf32>
    %103 = tpu.matmul %102, %68, %cst_62 {dimension_numbers = #tpu.dot_dimension_numbers<[1], [0], [0], [1], [0, 0, 1, 1], [], []>} : vector<32x32xf32>, vector<32x16xf32>, vector<32x16xf32> -> vector<32x16xf32>
    %c1_63 = arith.constant 1 : index
    %c0_64 = arith.constant 0 : index
    %c0_65 = arith.constant 0 : index
    %104 = vector.load %arg11[%c1_63, %c0_64, %c0_65] : memref<4x32x1xf32, #tpu.memory_space<vmem>>, vector<1x32x1xf32>
    %105 = vector.shape_cast %104 : vector<1x32x1xf32> to vector<32x1xf32>
    %106 = vector.broadcast %105 : vector<32x1xf32> to vector<32x16xf32>
    %107 = arith.addf %103, %106 : vector<32x16xf32>
    %108 = arith.addf %100, %107 : vector<32x16xf32>
    %cst_66 = arith.constant 5.000000e-01 : f32
    %109 = vector.broadcast %cst_66 : f32 to vector<32x16xf32>
    %110 = arith.mulf %109, %108 : vector<32x16xf32>
    %cst_67 = arith.constant 0.707106769 : f32
    %111 = vector.broadcast %cst_67 : f32 to vector<32x16xf32>
    %112 = arith.mulf %108, %111 : vector<32x16xf32>
    %113 = math.erf %112 : vector<32x16xf32>
    %cst_68 = arith.constant 1.000000e+00 : f32
    %114 = vector.broadcast %cst_68 : f32 to vector<32x16xf32>
    %115 = arith.addf %114, %113 : vector<32x16xf32>
    %116 = arith.mulf %110, %115 : vector<32x16xf32>
    %cst_69 = arith.constant dense<0.000000e+00> : vector<16x32xf32>
    %117 = tpu.matmul %2, %116, %cst_69 {dimension_numbers = #tpu.dot_dimension_numbers<[1], [1], [0], [0], [0, 0, 1, 0], [], []>} : vector<16x16xf32>, vector<32x16xf32>, vector<16x32xf32> -> vector<16x32xf32>
    %118 = vector.extract_strided_slice %117 {offsets = [0, 0], sizes = [8, 32], strides = [1, 1]} : vector<16x32xf32> to vector<8x32xf32>
    %119 = vector.extract_strided_slice %117 {offsets = [8, 0], sizes = [8, 32], strides = [1, 1]} : vector<16x32xf32> to vector<8x32xf32>
    %120 = tpu.concatenate %118, %119 in 1 : vector<8x32xf32>, vector<8x32xf32> -> vector<8x64xf32>
    %121 = vector.shape_cast %120 : vector<8x64xf32> to vector<8x1x64xf32>
    %c2 = arith.constant 2 : index
    %c0_70 = arith.constant 0 : index
    %c0_71 = arith.constant 0 : index
    %c0_72 = arith.constant 0 : index
    %122 = vector.load %arg6[%c2, %c0_70, %c0_71, %c0_72] : memref<4x8x64x64xf32, #tpu.memory_space<vmem>>, vector<1x8x64x64xf32>
    %123 = vector.shape_cast %122 : vector<1x8x64x64xf32> to vector<8x64x64xf32>
    %cst_73 = arith.constant dense<0.000000e+00> : vector<8x1x64xf32>
    %124 = tpu.matmul %121, %123, %cst_73 {dimension_numbers = #tpu.dot_dimension_numbers<[2], [1], [1], [2], [0, 0, 0, 1, 1, 2], [0], [0]>} : vector<8x1x64xf32>, vector<8x64x64xf32>, vector<8x1x64xf32> -> vector<8x1x64xf32>
    %125 = vector.shape_cast %124 : vector<8x1x64xf32> to vector<8x64xf32>
    %126 = vector.extract_strided_slice %125 {offsets = [0, 0], sizes = [8, 32], strides = [1, 1]} : vector<8x64xf32> to vector<8x32xf32>
    %127 = vector.extract_strided_slice %125 {offsets = [0, 32], sizes = [8, 32], strides = [1, 1]} : vector<8x64xf32> to vector<8x32xf32>
    %128 = tpu.concatenate %126, %127 in 0 : vector<8x32xf32>, vector<8x32xf32> -> vector<16x32xf32>
    %cst_74 = arith.constant dense<0.000000e+00> : vector<32x16xf32>
    %129 = tpu.matmul %128, %3, %cst_74 {dimension_numbers = #tpu.dot_dimension_numbers<[0], [0], [1], [1], [0, 1, 1, 1], [], []>} : vector<16x32xf32>, vector<16x16xf32>, vector<32x16xf32> -> vector<32x16xf32>
    %c2_75 = arith.constant 2 : index
    %c0_76 = arith.constant 0 : index
    %c0_77 = arith.constant 0 : index
    %130 = vector.load %arg7[%c2_75, %c0_76, %c0_77] : memref<4x32x1xf32, #tpu.memory_space<vmem>>, vector<1x32x1xf32>
    %131 = vector.shape_cast %130 : vector<1x32x1xf32> to vector<32x1xf32>
    %132 = vector.broadcast %131 : vector<32x1xf32> to vector<32x16xf32>
    %133 = arith.addf %129, %132 : vector<32x16xf32>
    %cst_78 = arith.constant 5.000000e-01 : f32
    %134 = vector.broadcast %cst_78 : f32 to vector<32x16xf32>
    %135 = arith.mulf %134, %133 : vector<32x16xf32>
    %cst_79 = arith.constant 0.707106769 : f32
    %136 = vector.broadcast %cst_79 : f32 to vector<32x16xf32>
    %137 = arith.mulf %133, %136 : vector<32x16xf32>
    %138 = math.erf %137 : vector<32x16xf32>
    %cst_80 = arith.constant 1.000000e+00 : f32
    %139 = vector.broadcast %cst_80 : f32 to vector<32x16xf32>
    %140 = arith.addf %139, %138 : vector<32x16xf32>
    %141 = arith.mulf %135, %140 : vector<32x16xf32>
    %c2_81 = arith.constant 2 : index
    %c0_82 = arith.constant 0 : index
    %c0_83 = arith.constant 0 : index
    %142 = vector.load %arg8[%c2_81, %c0_82, %c0_83] : memref<4x32x32xf32, #tpu.memory_space<vmem>>, vector<1x32x32xf32>
    %143 = vector.shape_cast %142 : vector<1x32x32xf32> to vector<32x32xf32>
    %cst_84 = arith.constant dense<0.000000e+00> : vector<32x16xf32>
    %144 = tpu.matmul %143, %141, %cst_84 {dimension_numbers = #tpu.dot_dimension_numbers<[1], [0], [0], [1], [0, 0, 1, 1], [], []>} : vector<32x32xf32>, vector<32x16xf32>, vector<32x16xf32> -> vector<32x16xf32>
    %c2_85 = arith.constant 2 : index
    %c0_86 = arith.constant 0 : index
    %c0_87 = arith.constant 0 : index
    %145 = vector.load %arg9[%c2_85, %c0_86, %c0_87] : memref<4x32x1xf32, #tpu.memory_space<vmem>>, vector<1x32x1xf32>
    %146 = vector.shape_cast %145 : vector<1x32x1xf32> to vector<32x1xf32>
    %147 = vector.broadcast %146 : vector<32x1xf32> to vector<32x16xf32>
    %148 = arith.addf %144, %147 : vector<32x16xf32>
    %c2_88 = arith.constant 2 : index
    %c0_89 = arith.constant 0 : index
    %c0_90 = arith.constant 0 : index
    %149 = vector.load %arg10[%c2_88, %c0_89, %c0_90] : memref<4x32x32xf32, #tpu.memory_space<vmem>>, vector<1x32x32xf32>
    %150 = vector.shape_cast %149 : vector<1x32x32xf32> to vector<32x32xf32>
    %cst_91 = arith.constant dense<0.000000e+00> : vector<32x16xf32>
    %151 = tpu.matmul %150, %116, %cst_91 {dimension_numbers = #tpu.dot_dimension_numbers<[1], [0], [0], [1], [0, 0, 1, 1], [], []>} : vector<32x32xf32>, vector<32x16xf32>, vector<32x16xf32> -> vector<32x16xf32>
    %c2_92 = arith.constant 2 : index
    %c0_93 = arith.constant 0 : index
    %c0_94 = arith.constant 0 : index
    %152 = vector.load %arg11[%c2_92, %c0_93, %c0_94] : memref<4x32x1xf32, #tpu.memory_space<vmem>>, vector<1x32x1xf32>
    %153 = vector.shape_cast %152 : vector<1x32x1xf32> to vector<32x1xf32>
    %154 = vector.broadcast %153 : vector<32x1xf32> to vector<32x16xf32>
    %155 = arith.addf %151, %154 : vector<32x16xf32>
    %156 = arith.addf %148, %155 : vector<32x16xf32>
    %cst_95 = arith.constant 5.000000e-01 : f32
    %157 = vector.broadcast %cst_95 : f32 to vector<32x16xf32>
    %158 = arith.mulf %157, %156 : vector<32x16xf32>
    %cst_96 = arith.constant 0.707106769 : f32
    %159 = vector.broadcast %cst_96 : f32 to vector<32x16xf32>
    %160 = arith.mulf %156, %159 : vector<32x16xf32>
    %161 = math.erf %160 : vector<32x16xf32>
    %cst_97 = arith.constant 1.000000e+00 : f32
    %162 = vector.broadcast %cst_97 : f32 to vector<32x16xf32>
    %163 = arith.addf %162, %161 : vector<32x16xf32>
    %164 = arith.mulf %158, %163 : vector<32x16xf32>
    %cst_98 = arith.constant dense<0.000000e+00> : vector<16x32xf32>
    %165 = tpu.matmul %2, %164, %cst_98 {dimension_numbers = #tpu.dot_dimension_numbers<[1], [1], [0], [0], [0, 0, 1, 0], [], []>} : vector<16x16xf32>, vector<32x16xf32>, vector<16x32xf32> -> vector<16x32xf32>
    %166 = vector.extract_strided_slice %165 {offsets = [0, 0], sizes = [8, 32], strides = [1, 1]} : vector<16x32xf32> to vector<8x32xf32>
    %167 = vector.extract_strided_slice %165 {offsets = [8, 0], sizes = [8, 32], strides = [1, 1]} : vector<16x32xf32> to vector<8x32xf32>
    %168 = tpu.concatenate %166, %167 in 1 : vector<8x32xf32>, vector<8x32xf32> -> vector<8x64xf32>
    %169 = vector.shape_cast %168 : vector<8x64xf32> to vector<8x1x64xf32>
    %c3 = arith.constant 3 : index
    %c0_99 = arith.constant 0 : index
    %c0_100 = arith.constant 0 : index
    %c0_101 = arith.constant 0 : index
    %170 = vector.load %arg6[%c3, %c0_99, %c0_100, %c0_101] : memref<4x8x64x64xf32, #tpu.memory_space<vmem>>, vector<1x8x64x64xf32>
    %171 = vector.shape_cast %170 : vector<1x8x64x64xf32> to vector<8x64x64xf32>
    %cst_102 = arith.constant dense<0.000000e+00> : vector<8x1x64xf32>
    %172 = tpu.matmul %169, %171, %cst_102 {dimension_numbers = #tpu.dot_dimension_numbers<[2], [1], [1], [2], [0, 0, 0, 1, 1, 2], [0], [0]>} : vector<8x1x64xf32>, vector<8x64x64xf32>, vector<8x1x64xf32> -> vector<8x1x64xf32>
    %173 = vector.shape_cast %172 : vector<8x1x64xf32> to vector<8x64xf32>
    %174 = vector.extract_strided_slice %173 {offsets = [0, 0], sizes = [8, 32], strides = [1, 1]} : vector<8x64xf32> to vector<8x32xf32>
    %175 = vector.extract_strided_slice %173 {offsets = [0, 32], sizes = [8, 32], strides = [1, 1]} : vector<8x64xf32> to vector<8x32xf32>
    %176 = tpu.concatenate %174, %175 in 0 : vector<8x32xf32>, vector<8x32xf32> -> vector<16x32xf32>
    %cst_103 = arith.constant dense<0.000000e+00> : vector<32x16xf32>
    %177 = tpu.matmul %176, %3, %cst_103 {dimension_numbers = #tpu.dot_dimension_numbers<[0], [0], [1], [1], [0, 1, 1, 1], [], []>} : vector<16x32xf32>, vector<16x16xf32>, vector<32x16xf32> -> vector<32x16xf32>
    %c3_104 = arith.constant 3 : index
    %c0_105 = arith.constant 0 : index
    %c0_106 = arith.constant 0 : index
    %178 = vector.load %arg7[%c3_104, %c0_105, %c0_106] : memref<4x32x1xf32, #tpu.memory_space<vmem>>, vector<1x32x1xf32>
    %179 = vector.shape_cast %178 : vector<1x32x1xf32> to vector<32x1xf32>
    %180 = vector.broadcast %179 : vector<32x1xf32> to vector<32x16xf32>
    %181 = arith.addf %177, %180 : vector<32x16xf32>
    %cst_107 = arith.constant 5.000000e-01 : f32
    %182 = vector.broadcast %cst_107 : f32 to vector<32x16xf32>
    %183 = arith.mulf %182, %181 : vector<32x16xf32>
    %cst_108 = arith.constant 0.707106769 : f32
    %184 = vector.broadcast %cst_108 : f32 to vector<32x16xf32>
    %185 = arith.mulf %181, %184 : vector<32x16xf32>
    %186 = math.erf %185 : vector<32x16xf32>
    %cst_109 = arith.constant 1.000000e+00 : f32
    %187 = vector.broadcast %cst_109 : f32 to vector<32x16xf32>
    %188 = arith.addf %187, %186 : vector<32x16xf32>
    %189 = arith.mulf %183, %188 : vector<32x16xf32>
    %c3_110 = arith.constant 3 : index
    %c0_111 = arith.constant 0 : index
    %c0_112 = arith.constant 0 : index
    %190 = vector.load %arg8[%c3_110, %c0_111, %c0_112] : memref<4x32x32xf32, #tpu.memory_space<vmem>>, vector<1x32x32xf32>
    %191 = vector.shape_cast %190 : vector<1x32x32xf32> to vector<32x32xf32>
    %cst_113 = arith.constant dense<0.000000e+00> : vector<32x16xf32>
    %192 = tpu.matmul %191, %189, %cst_113 {dimension_numbers = #tpu.dot_dimension_numbers<[1], [0], [0], [1], [0, 0, 1, 1], [], []>} : vector<32x32xf32>, vector<32x16xf32>, vector<32x16xf32> -> vector<32x16xf32>
    %c3_114 = arith.constant 3 : index
    %c0_115 = arith.constant 0 : index
    %c0_116 = arith.constant 0 : index
    %193 = vector.load %arg9[%c3_114, %c0_115, %c0_116] : memref<4x32x1xf32, #tpu.memory_space<vmem>>, vector<1x32x1xf32>
    %194 = vector.shape_cast %193 : vector<1x32x1xf32> to vector<32x1xf32>
    %195 = vector.broadcast %194 : vector<32x1xf32> to vector<32x16xf32>
    %196 = arith.addf %192, %195 : vector<32x16xf32>
    %c3_117 = arith.constant 3 : index
    %c0_118 = arith.constant 0 : index
    %c0_119 = arith.constant 0 : index
    %197 = vector.load %arg10[%c3_117, %c0_118, %c0_119] : memref<4x32x32xf32, #tpu.memory_space<vmem>>, vector<1x32x32xf32>
    %198 = vector.shape_cast %197 : vector<1x32x32xf32> to vector<32x32xf32>
    %cst_120 = arith.constant dense<0.000000e+00> : vector<32x16xf32>
    %199 = tpu.matmul %198, %164, %cst_120 {dimension_numbers = #tpu.dot_dimension_numbers<[1], [0], [0], [1], [0, 0, 1, 1], [], []>} : vector<32x32xf32>, vector<32x16xf32>, vector<32x16xf32> -> vector<32x16xf32>
    %c3_121 = arith.constant 3 : index
    %c0_122 = arith.constant 0 : index
    %c0_123 = arith.constant 0 : index
    %200 = vector.load %arg11[%c3_121, %c0_122, %c0_123] : memref<4x32x1xf32, #tpu.memory_space<vmem>>, vector<1x32x1xf32>
    %201 = vector.shape_cast %200 : vector<1x32x1xf32> to vector<32x1xf32>
    %202 = vector.broadcast %201 : vector<32x1xf32> to vector<32x16xf32>
    %203 = arith.addf %199, %202 : vector<32x16xf32>
    %204 = arith.addf %196, %203 : vector<32x16xf32>
    %c0_124 = arith.constant 0 : index
    %c0_125 = arith.constant 0 : index
    %205 = vector.load %arg12[%c0_124, %c0_125] : memref<64x32xf32, #tpu.memory_space<vmem>>, vector<64x32xf32>
    %cst_126 = arith.constant dense<0.000000e+00> : vector<64x16xf32>
    %206 = tpu.matmul %205, %204, %cst_126 {dimension_numbers = #tpu.dot_dimension_numbers<[1], [0], [0], [1], [0, 0, 1, 1], [], []>} : vector<64x32xf32>, vector<32x16xf32>, vector<64x16xf32> -> vector<64x16xf32>
    %c0_127 = arith.constant 0 : index
    %c0_128 = arith.constant 0 : index
    %207 = vector.load %arg13[%c0_127, %c0_128] : memref<64x1xf32, #tpu.memory_space<vmem>>, vector<64x1xf32>
    %208 = vector.broadcast %207 : vector<64x1xf32> to vector<64x16xf32>
    %209 = arith.addf %206, %208 : vector<64x16xf32>
    %cst_129 = arith.constant 5.000000e-01 : f32
    %210 = vector.broadcast %cst_129 : f32 to vector<64x16xf32>
    %211 = arith.mulf %210, %209 : vector<64x16xf32>
    %cst_130 = arith.constant 0.707106769 : f32
    %212 = vector.broadcast %cst_130 : f32 to vector<64x16xf32>
    %213 = arith.mulf %209, %212 : vector<64x16xf32>
    %214 = math.erf %213 : vector<64x16xf32>
    %cst_131 = arith.constant 1.000000e+00 : f32
    %215 = vector.broadcast %cst_131 : f32 to vector<64x16xf32>
    %216 = arith.addf %215, %214 : vector<64x16xf32>
    %217 = arith.mulf %211, %216 : vector<64x16xf32>
    %c0_132 = arith.constant 0 : index
    %c0_133 = arith.constant 0 : index
    %218 = vector.load %arg14[%c0_132, %c0_133] : memref<1x64xf32, #tpu.memory_space<vmem>>, vector<1x64xf32>
    %cst_134 = arith.constant dense<0.000000e+00> : vector<1x16xf32>
    %219 = tpu.matmul %218, %217, %cst_134 {dimension_numbers = #tpu.dot_dimension_numbers<[1], [0], [0], [1], [0, 0, 1, 1], [], []>} : vector<1x64xf32>, vector<64x16xf32>, vector<1x16xf32> -> vector<1x16xf32>
    %c0_135 = arith.constant 0 : index
    %c0_136 = arith.constant 0 : index
    %220 = vector.load %arg15[%c0_135, %c0_136] : memref<1x1xf32, #tpu.memory_space<vmem>>, vector<1x1xf32>
    %221 = vector.broadcast %220 : vector<1x1xf32> to vector<1x16xf32>
    %222 = arith.addf %219, %221 : vector<1x16xf32>
    %c0_137 = arith.constant 0 : index
    %c0_138 = arith.constant 0 : index
    %c0_139 = arith.constant 0 : index
    %223 = vector.load %arg16[%c0_137, %c0_138, %c0_139] : memref<1x1x16xf32, #tpu.memory_space<vmem>>, vector<1x1x16xf32>
    %224 = vector.shape_cast %223 : vector<1x1x16xf32> to vector<1x16xf32>
    %225 = vector.shape_cast %222 : vector<1x16xf32> to vector<1x1x16xf32>
    tpu.vector_store %arg16[%c0_137, %c0_138, %c0_139], %225 {strides = array<i32>} : memref<1x1x16xf32, #tpu.memory_space<vmem>>, vector<1x1x16xf32>,
    return
  }
  func.func @transform_0(%arg0: i32) -> (i32, i32, i32) {
    %c0_i32 = arith.constant 0 : i32
    %c0_i32_0 = arith.constant 0 : i32
    %c0_i32_1 = arith.constant 0 : i32
    return %arg0, %c0_i32, %c0_i32_0 : i32, i32, i32
  }
  func.func @transform_1(%arg0: i32) -> (i32, i32) {
    %c0_i32 = arith.constant 0 : i32
    %c0_i32_0 = arith.constant 0 : i32
    %c0_i32_1 = arith.constant 0 : i32
    return %c0_i32, %c0_i32_0 : i32, i32
  }
  func.func @transform_2(%arg0: i32) -> (i32, i32) {
    %c0_i32 = arith.constant 0 : i32
    %c0_i32_0 = arith.constant 0 : i32
    %c0_i32_1 = arith.constant 0 : i32
    return %c0_i32, %c0_i32_0 : i32, i32
  }
  func.func @transform_3(%arg0: i32) -> (i32, i32) {
    %c0_i32 = arith.constant 0 : i32
    %c0_i32_0 = arith.constant 0 : i32
    %c0_i32_1 = arith.constant 0 : i32
    return %c0_i32, %c0_i32_0 : i32, i32
  }
  func.func @transform_4(%arg0: i32) -> (i32, i32) {
    %c0_i32 = arith.constant 0 : i32
    %c0_i32_0 = arith.constant 0 : i32
    %c0_i32_1 = arith.constant 0 : i32
    return %c0_i32, %c0_i32_0 : i32, i32
  }
  func.func @transform_5(%arg0: i32) -> (i32, i32, i32, i32) {
    %c0_i32 = arith.constant 0 : i32
    %c0_i32_0 = arith.constant 0 : i32
    %c0_i32_1 = arith.constant 0 : i32
    %c0_i32_2 = arith.constant 0 : i32
    %c0_i32_3 = arith.constant 0 : i32
    return %c0_i32, %c0_i32_0, %c0_i32_1, %c0_i32_2 : i32, i32, i32, i32
  }
  func.func @transform_6(%arg0: i32) -> (i32, i32, i32) {
    %c0_i32 = arith.constant 0 : i32
    %c0_i32_0 = arith.constant 0 : i32
    %c0_i32_1 = arith.constant 0 : i32
    %c0_i32_2 = arith.constant 0 : i32
    return %c0_i32, %c0_i32_0, %c0_i32_1 : i32, i32, i32
  }
  func.func @transform_7(%arg0: i32) -> (i32, i32, i32) {
    %c0_i32 = arith.constant 0 : i32
    %c0_i32_0 = arith.constant 0 : i32
    %c0_i32_1 = arith.constant 0 : i32
    %c0_i32_2 = arith.constant 0 : i32
    return %c0_i32, %c0_i32_0, %c0_i32_1 : i32, i32, i32
  }
  func.func @transform_8(%arg0: i32) -> (i32, i32, i32) {
    %c0_i32 = arith.constant 0 : i32
    %c0_i32_0 = arith.constant 0 : i32
    %c0_i32_1 = arith.constant 0 : i32
    %c0_i32_2 = arith.constant 0 : i32
    return %c0_i32, %c0_i32_0, %c0_i32_1 : i32, i32, i32
  }
  func.func @transform_9(%arg0: i32) -> (i32, i32, i32) {
    %c0_i32 = arith.constant 0 : i32
    %c0_i32_0 = arith.constant 0 : i32
    %c0_i32_1 = arith.constant 0 : i32
    %c0_i32_2 = arith.constant 0 : i32
    return %c0_i32, %c0_i32_0, %c0_i32_1 : i32, i32, i32
  }
  func.func @transform_10(%arg0: i32) -> (i32, i32, i32) {
    %c0_i32 = arith.constant 0 : i32
    %c0_i32_0 = arith.constant 0 : i32
    %c0_i32_1 = arith.constant 0 : i32
    %c0_i32_2 = arith.constant 0 : i32
    return %c0_i32, %c0_i32_0, %c0_i32_1 : i32, i32, i32
  }
  func.func @transform_11(%arg0: i32) -> (i32, i32) {
    %c0_i32 = arith.constant 0 : i32
    %c0_i32_0 = arith.constant 0 : i32
    %c0_i32_1 = arith.constant 0 : i32
    return %c0_i32, %c0_i32_0 : i32, i32
  }
  func.func @transform_12(%arg0: i32) -> (i32, i32) {
    %c0_i32 = arith.constant 0 : i32
    %c0_i32_0 = arith.constant 0 : i32
    %c0_i32_1 = arith.constant 0 : i32
    return %c0_i32, %c0_i32_0 : i32, i32
  }
  func.func @transform_13(%arg0: i32) -> (i32, i32) {
    %c0_i32 = arith.constant 0 : i32
    %c0_i32_0 = arith.constant 0 : i32
    %c0_i32_1 = arith.constant 0 : i32
    return %c0_i32, %c0_i32_0 : i32, i32
  }
  func.func @transform_14(%arg0: i32) -> (i32, i32) {
    %c0_i32 = arith.constant 0 : i32
    %c0_i32_0 = arith.constant 0 : i32
    %c0_i32_1 = arith.constant 0 : i32
    return %c0_i32, %c0_i32_0 : i32, i32
  }
  func.func @transform_15(%arg0: i32) -> (i32, i32, i32) {
    %c0_i32 = arith.constant 0 : i32
    %c0_i32_0 = arith.constant 0 : i32
    %c0_i32_1 = arith.constant 0 : i32
    return %arg0, %c0_i32, %c0_i32_0 : i32, i32, i32
  }
}

</mosaic_0001>

<bundles_post_ra>
// kernel: tpu_custom_call.1
= control target key start
LH: loop header
LB: loop body
LE: loop exit
PB: predicated region body
PF: predicated region fallthrough
CT: control target
= control target key end

     0   :  { %s8935_s0 = inlined_call_operand.vmem [shape: f32[2,1,16], index: 0, kind: input, shape index: {}]   ;;  %s8936_s1 = inlined_call_operand.vmem [shape: f32[16,16], index: 1, kind: input, shape index: {}]   ;;  %s8937_s2 = inlined_call_operand.vmem [shape: f32[16,16], index: 2, kind: input, shape index: {}]   ;;  %s8938_s3 = inlined_call_operand.vmem [shape: f32[32,2], index: 3, kind: input, shape index: {}]   ;;  %s8939_s4 = inlined_call_operand.vmem [shape: f32[32,1], index: 4, kind: input, shape index: {}]   ;;  %s8940_s5 = inlined_call_operand.hbm [shape: f32[4,8,64,64], index: 5, kind: input, shape index: {}]   ;;  %s8941_s6 = inlined_call_operand.vmem [shape: f32[4,32,1], index: 6, kind: input, shape index: {}]   ;;  %s8942_s7 = inlined_call_operand.vmem [shape: f32[4,32,32], index: 7, kind: input, shape index: {}]   ;;  %s8943_s8 = inlined_call_operand.vmem [shape: f32[4,32,1], index: 8, kind: input, shape index: {}]   ;;  %s8944_s9 = inlined_call_operand.vmem [shape: f32[4,32,32], index: 9, kind: input, shape index: {}]   ;;  %s8945_s10 = inlined_call_operand.vmem [shape: f32[4,32,1], index: 10, kind: input, shape index: {}]   ;;  %s8946_s11 = inlined_call_operand.vmem [shape: f32[64,32], index: 11, kind: input, shape index: {}]   ;;  %s8947_s12 = inlined_call_operand.vmem [shape: f32[64,1], index: 12, kind: input, shape index: {}]   ;;  %s8948_s13 = inlined_call_operand.vmem [shape: f32[1,64], index: 13, kind: input, shape index: {}]   ;;  %s8949_s14 = inlined_call_operand.<no memory space> [shape: f32[1,1], index: 14, kind: input, shape index: {}]   ;;  %s8950_s15 = inlined_call_operand.hbm [shape: f32[2,1,16], index: 15, kind: output, shape index: {}]  }
   0x1   :  { %8958 = sst [smem:[#allocation12_spill]] %s8935_s0  ;;  %v20_v0 = vstv %s8949_s14 }
   0x2   :  { %8959 = sst [smem:[#allocation13_spill]] %s8938_s3  ;;  %21 = vst [vmem:[#allocation2] sm:$0x1] %v20_v0 }
   0x3   :  { %22 = vsyncpa [#allocation4], 0 }
   0x4   :  { %23 = vsyncpa [#allocation5], 0 }
   0x5   :  { %25 = vsyncpa [#allocation5 + $0x1], 0  ;;  %s7798_s20 = smov 0   ;;  %s7800_s21 = smov 0  }
   0x6   :  { %s7802_s22 = smov 0   ;;  %s7804_s23 = smov 0  }
   0x7 LB: > { %8960 = sst [smem:[#allocation9_spill]] %s7698_s22  ;;  %s7819_s14 = sadd.s32 4294967295, %s7702_s23   ;;  %s7702_s23 = sphi %s7804_s23, %s8971_s23   ;;  %s7698_s22 = sphi %s7802_s22, %s8973_s22   ;;  %s7694_s21 = sphi %s7800_s21, %s8975_s21   ;;  %s7690_s20 = sphi %s7798_s20, %s8974_s20  }
   0x8   : > { %s6020_s24 = sadd.s32 4294967294, %s7702_s23   ;;  %s7823_s25 = sadd.s32 1, %s7702_s23  }
   0x9   : > { %8961 = sst [smem:[#allocation10_spill]] %s7823_s25  ;;  %s358_s26 = sadd.s32 1, %s7698_s22 }
   0xa   : > { %s355_s27 = ssub.s32 %s7702_s23, %s7823_s25  ;;  %p368_p0 = scmp.ne.s32.totalorder %s7698_s22, %s7694_s21 }
   0xb   : > { %p356_p1 = scmp.eq.s32.totalorder %s355_s27, 0  ;;  %p369_p2 = scmp.eq.s32.totalorder %s7819_s14, 1 }
   0xc   : > { %p374_p3 = scmp.ne.s32.totalorder %s7694_s21, %s7690_s20  ;;  %p375_p4 = scmp.eq.s32.totalorder %s6020_s24, 1 }
   0xd   : > { %s7834_s28 = scalar_select %p356_p1, %s7698_s22, %s358_s26  }
   0xe   : > { %p7836_p5 = por %p369_p2, %p368_p0  ;;  %p7840_p6 = por %p375_p4, %p374_p3 }
   0xf   : > { %8962 = sst [smem:[#allocation11_spill]] %s7834_s28  ;;  %p6021_p7 = scmp.ge.s32.totalorder %s7702_s23, 1 }
  0x10   : > { %s8964_s30 = scalar_select %p7840_p6, 1, 0 }
  0x11   : > { %p382_p8 = scmp.lt.s32.totalorder %s7702_s23, 3  ;;  %p7481_p9 = scmp.eq.s32.totalorder %s7819_s14, 0 }
  0x12   : > { %s7704_s17 = smov [#allocation3]  }
  0x13   : > { %p7847_p10 = pnand %p6021_p7, %p382_p8  ;;  %s406_s18 = sshll.u32 %s7704_s17, 4  ;;  %s407_s18 = int_to_ptr.vmem [resolvable:$true] %s406_s18 }
  0x14   : > { %s7623_s19 = scalar_lea.vmem %s407_s18, 32768  ;;  %p7631_p3 = scmp.lt.s32.totalorder %s407_s18, %s407_s18 }
  0x15   : > { %p7473_p11 = pneg %p7847_p10  ;;  %p7624_p0 = scmp.ne.s32.totalorder %s407_s18, %s7623_s19 }
  0x16   : > { %p7632_p4 = scmp.lt.s32.totalorder %s7623_s19, %s7623_s19 }
  0x17   : > { %p7474_p12 = pnand %p7481_p9, %p7473_p11 }
  0x18   : > { %p7633_p6 = por %p7632_p4, %p7631_p3 }
  0x19   : > { %p7614_p13 = pneg %p7474_p12 }
  0x1b   : > { %p7626_p1 = pnand %p7624_p0, %p7614_p13 }
  0x1d   : > { %p7627_p2 = pneg %p7626_p1 }
  0x1f   : > { %p7634_p7 = pnand %p7633_p6, %p7627_p2 }
  0x21   : > { %7637 = shalt.err (!%p7634_p7)
}
  0x22   : > { %s7705_s24 = smov 128   ;;  %s7706_s26 = smov 8  }
  0x23   : > { %7476 = dma.hbm_to_vmem [thread:$0]  (!%p7474_p12), %s8940_s5, 32768, %s407_s18, [#allocation4], %s7705_s24, %s7705_s24, %s7706_s26  }
  0x24   : > { %455 = sbr.rel (%p7847_p10) target bundleno = 5723 (0x165b), region = 80 }
  0x29   : > { %7681 = dma.done.wait (%p7481_p9), [#allocation4], 32768  }
  0x2a   : > { %7683 = vsyncadd (%p7481_p9), [#allocation4], 4294934528  ;;  %v7707_v1 = vmov 0   ;;  %s8966_s3 = sld [smem:[#allocation13_spill]]  ;;  %v7708_v4 = vmov 1   ;;  %v573_v5 = vld [vmem:[%s8939_s4 + $0x18] sm:$0xff]  ;;  %v508_v12 = vlaneseq }
  0x2b   : > { %7528 = vset.pattern.permute.xlu1 %v7707_v1  ;;  %7526 = vset.pattern.permute.xlu0 %v7707_v1  ;;  %v571_v8 = vld [vmem:[%s8939_s4 + $0x8] sm:$0xff]  ;;  %v572_v9 = vld [vmem:[%s8939_s4 + $0x10] sm:$0xff]  ;;  %v570_v10 = vld [vmem:[%s8939_s4] sm:$0xff]  ;;  %vm598_vm0 = vcmask 130048   ;;  %p500_p6 = scmp.lt.s32.totalorder %s7819_s14, 1  ;;  %s8967_s0 = sld [smem:[#allocation12_spill]] }
  0x2c   : > { %v7891_v11 = vld [vmem:[%s8936_s1] sm:$0xff]  ;;  %v509_v13 = vand.u32 127, %v508_v12  ;;  %v7928_v45 = vld [vmem:[%s8936_s1 + $0x8] sm:$0xff]  ;;  %v7709_v48 = vmov 0.0   ;;  %v754_v49 = vld [vmem:[#allocation3 + $0x30] sm:$0xff]  ;;  %vm7710_vm1 = vmmov 0  }
  0x2d   : > { %6632 = vmatprep.mubr.msk.f32.mxu0 %vm598_vm0, %v7891_v11  ;;  %s501_s22 = scalar_select %p500_p6, %s7819_s14, 1  ;;  %v755_v46 = vld [vmem:[#allocation3 + $0x38] sm:$0xff]  ;;  %6635 = vmatprep.subr.mxu1 %v7709_v48  ;;  %v762_v50 = vld [vmem:[#allocation3 + $0x70] sm:$0xff]  ;;  %v753_v51 = vld [vmem:[#allocation3 + $0x28] sm:$0xff]  ;;  %v7712_v0 = vmov 1966171168  }
  0x2e   : > { %v510_v14 = vcvt.s32.f32 %v509_v13  ;;  %v763_v47 = vld [vmem:[#allocation3 + $0x78] sm:$0xff]  ;;  %6636 = vmatpush3.msra.mxu1 %v755_v46  ;;  %v761_v52 = vld [vmem:[#allocation3 + $0x68] sm:$0xff]  ;;  %v752_v53 = vld [vmem:[#allocation3 + $0x20] sm:$0xff]  ;;  %6651 = vmatprep.mubr.msk.f32.mxu1 %vm7710_vm1, %v7709_v48  ;;  %s8956_s28 = smov 32   ;;  %vm696_vm2 = vcmask 261120   ;;  %vm812_vm3 = vcmask 523264  }
  0x2f   : > { %6637 = vmatprep.subr.mxu1 %v7709_v48  ;;  %v760_v54 = vld [vmem:[#allocation3 + $0x60] sm:$0xff]  ;;  %v751_v55 = vld [vmem:[#allocation3 + $0x18] sm:$0xff]  ;;  %v750_v57 = vld [vmem:[#allocation3 + $0x10] sm:$0xff]  ;;  %vm1398_vm4 = vcmask 1041409   ;;  %vm1401_vm5 = vcmask 1042434   ;;  %vm1404_vm6 = vcmask 1043459  }
  0x30   : > { %v515_v2 = vld [vmem:[%s8966_s3 + $0x18] sm:$0xff]  ;;  %v514_v3 = vld [vmem:[%s8966_s3 + $0x10] sm:$0xff]  ;;  %v513_v6 = vld [vmem:[%s8966_s3 + $0x8] sm:$0xff]  ;;  %v511_v17 = vmul.f32 0.06666667, %v510_v14  ;;  %6638 = vmatpush3.msra.mxu1 %v754_v49  ;;  %vm1407_vm7 = vcmask 1044484  }
  0x31   : > { %533 = vperm.xlu0 %7526, %v515_v2   ;;  %528 = vperm.xlu1 %7528, %v514_v3   ;;  %v512_v7 = vld [vmem:[%s8966_s3] sm:$0xff]  ;;  %s502_s27 = scalar_lea.vmem %s8967_s0, %s501_s22  ;;  %v749_v58 = vld [vmem:[#allocation3 + $0x8] sm:$0xff]  ;;  %v758_v59 = vld [vmem:[#allocation3 + $0x50] sm:$0xff]  ;;  %vm1410_vm8 = vcmask 1045509   ;;  %vm1413_vm9 = vcmask 1046534   ;;  %vm1416_vm10 = vcmask 1047559  }
  0x32   : > { %v6026_v18 = vld [vmem:[%s502_s27] ss:$0 sm:$0xff]  ;;  %6639 = vmatprep.subr.mxu1 %v7709_v48  ;;  %v748_v60 = vld [vmem:[#allocation3] sm:$0xff]  ;;  %v757_v61 = vld [vmem:[#allocation3 + $0x48] sm:$0xff]  ;;  %s8954_s16 = smov 96   ;;  %s8968_s17 = smov 32  }
  0x33   : > { %6640 = vmatpush3.msra.mxu1 %v753_v51  ;;  %v759_v56 = vld [vmem:[#allocation3 + $0x58] sm:$0xff]  ;;  %v756_v62 = vld [vmem:[#allocation3 + $0x40] sm:$0xff]  ;;  %v770_v14 = vld [vmem:[#allocation3 + $0xb0] sm:$0xff]  ;;  %s8969_s27 = smov 96   ;;  %s498_s22 = sand.u32 1, %s7694_s21   ;;  %vm5941_vm11 = vcmask 122880  }
  0x34   : > { %6641 = vmatprep.subr.mxu1 %v7709_v48  ;;  %v771_v13 = vld [vmem:[#allocation3 + $0xb8] sm:$0xff]  ;;  %v782_v46 = vld [vmem:[#allocation3 + $0x110] sm:$0xff]  ;;  %s6200_s25 = sshll.u32 %s7819_s14, 4  ;;  %s499_s26 = scalar_lea.vmem [#allocation6], %s498_s22 }
  0x35   : > { %7527 = vset.pattern.permute.xlu0 %v7708_v4  ;;  %7529 = vset.pattern.permute.xlu1 %v7708_v4  ;;  %v790_v51 = vld [vmem:[#allocation3 + $0x150] sm:$0xff]  ;;  %s5956_s0 = sshll.u32 %s499_s26, 4  ;;  %s8900_s19 = scalar_lea.hbm %s8950_s15, %s6200_s25  ;;  %s5957_s0 = int_to_ptr.vmem [resolvable:$true] %s5956_s0 }
  0x36   : > { %559 = vperm.xlu0 %7527, %v515_v2   ;;  %555 = vperm.xlu1 %7529, %v514_v3   ;;  %v7956_v3 = vshrl.u32 %v508_v12, 7  ;;  %s7714_s14 = smov [#allocation6]  }
  0x37   : > { %6642 = vmatpush3.msra.mxu1 %v752_v53  ;;  %v789_v53 = vld [vmem:[#allocation3 + $0x148] sm:$0xff] }
  0x38   : > { %6643 = vmatprep.subr.mxu1 %v7709_v48 }
  0x39   : > { %6644 = vmatpush3.msra.mxu1 %v751_v55 }
  0x3a   : > { %7531 = vset.pattern.permute.xlu0 %v7707_v1  ;;  %7530 = vset.pattern.permute.xlu1 %v7707_v1 }
  0x3b   : > { %591 = vperm.xlu1 %7530, %v573_v5   ;;  %523 = vperm.xlu0 %7531, %v513_v6  }
  0x3c   : > { %6645 = vmatprep.subr.mxu1 %v7709_v48 }
  0x3d   : > { %6646 = vmatpush3.msra.mxu1 %v750_v57  ;;  %v803_v57 = vld [vmem:[#allocation3 + $0x1b8] sm:$0xff] }
  0x3e   : > { %6647 = vmatprep.subr.mxu1 %v7709_v48 }
  0x3f   : > { %7532 = vset.pattern.permute.xlu1 %v7708_v4  ;;  %518 = vperm.xlu0 %7531, %v512_v7  }
  0x40   : > { %551 = vperm.xlu1 %7532, %v513_v6   ;;  %6648 = vmatpush3.msra.mxu1 %v749_v58 }
  0x41   : > { %6649 = vmatprep.subr.mxu1 %v7709_v48 }
  0x42   : > { %6650 = vmatpush3.msra.mxu1 %v748_v60  ;;  %v811_v60 = vld [vmem:[#allocation3 + $0x1f8] sm:$0xff] }
  0x43   : > { %581 = vperm.xlu0 %7531, %v571_v8   ;;  %6673 = vmatprep.subr.mxu1 %v7709_v48 }
  0x44   : > { %7533 = vset.pattern.permute.xlu1 %v7707_v1 }
  0x45   : > { %586 = vperm.xlu1 %7533, %v572_v9  }
  0x49   : > { %7534 = vset.pattern.permute.xlu1 %v7708_v4 }
  0x4a   : > { %547 = vperm.xlu1 %7534, %v512_v7  }
  0x4e   : > { %7535 = vset.pattern.permute.xlu1 %v7707_v1  ;;  %v701_v1 = vunpack.c.l.s4 %v7712_v0  ;;  %v809_v0 = vld [vmem:[#allocation3 + $0x1e8] sm:$0xff] }
  0x4f   : > { %576 = vperm.xlu1 %7535, %v570_v10  }
  0x50   : > { %v702_v2 = vunpack.c.0.s8 %v701_v1  ;;  %v799_v1 = vld [vmem:[#allocation3 + $0x198] sm:$0xff] }
  0x52   : > { %v7959_v4 = vsub.s32 %v702_v2, %v7956_v3  ;;  %v808_v2 = vld [vmem:[#allocation3 + $0x1e0] sm:$0xff] }
  0xac   : > { %v529_v15 = vpop.permute.xlu1 %528  ;;  %v534_v16 = vpop.permute.xlu0 %533 }
  0xad   : > { %v545_v19 = vmul.f32 %v6026_v18, %v534_v16  ;;  %v544_v32 = vmul.f32 %v6026_v18, %v529_v15  ;;  %v779_v15 = vld [vmem:[#allocation3 + $0xf8] sm:$0xff]  ;;  %v769_v16 = vld [vmem:[#allocation3 + $0xa8] sm:$0xff] }
  0xb1   : > { %v556_v20 = vpop.permute.xlu1 %555  ;;  %v560_v21 = vpop.permute.xlu0 %559 }
  0xb2   : > { %v565_v22 = vmul.f32 %v560_v21, %v511_v17  ;;  %v564_v28 = vmul.f32 %v556_v20, %v511_v17  ;;  %v767_v20 = vld [vmem:[#allocation3 + $0x98] sm:$0xff]  ;;  %v776_v21 = vld [vmem:[#allocation3 + $0xe0] sm:$0xff] }
  0xb4   : > { %v569_v23 = vadd.f32 %v565_v22, %v545_v19  ;;  %v568_v34 = vadd.f32 %v564_v28, %v544_v32  ;;  %v777_v19 = vld [vmem:[#allocation3 + $0xe8] sm:$0xff]  ;;  %v766_v22 = vld [vmem:[#allocation3 + $0x90] sm:$0xff] }
  0xb5   : > { %v773_v28 = vld [vmem:[#allocation3 + $0xc8] sm:$0xff] }
  0xb6   : > { %v592_v24 = vpop.permute.xlu1 %591  ;;  %v524_v25 = vpop.permute.xlu0 %523 }
  0xb7   : > { %v7901_v26 = vadd.f32 %v592_v24, %v569_v23  ;;  %v543_v29 = vmul.f32 %v6026_v18, %v524_v25  ;;  %v775_v23 = vld [vmem:[#allocation3 + $0xd8] sm:$0xff]  ;;  %v765_v24 = vld [vmem:[#allocation3 + $0x88] sm:$0xff]  ;;  %v774_v25 = vld [vmem:[#allocation3 + $0xd0] sm:$0xff] }
  0xb9   : > { %6624 = vmatprep.subr.msk.mxu0 %vm598_vm0, %v7901_v26 }
  0xba   : > { %v519_v27 = vpop.permute.xlu0 %518  ;;  %6625 = vmatpush3.xpose.msk.msra.mxu0 %vm598_vm0, %v7901_v26 }
  0xbb   : > { %v552_v30 = vpop.permute.xlu1 %551  ;;  %v542_v40 = vmul.f32 %v6026_v18, %v519_v27  ;;  %v768_v18 = vld [vmem:[#allocation3 + $0xa0] sm:$0xff] }
  0xbc   : > { %v563_v31 = vmul.f32 %v552_v30, %v511_v17  ;;  %v764_v27 = vld [vmem:[#allocation3 + $0x80] sm:$0xff] }
  0xbd   : > { %v772_v30 = vld [vmem:[#allocation3 + $0xc0] sm:$0xff] }
  0xbe   : > { %v567_v33 = vadd.f32 %v563_v31, %v543_v29  ;;  %v582_v35 = vpop.permute.xlu0 %581  ;;  %v787_v31 = vld [vmem:[#allocation3 + $0x138] sm:$0xff] }
  0xc0   : > { %v587_v36 = vpop.permute.xlu1 %586  ;;  %v7909_v38 = vadd.f32 %v582_v35, %v567_v33  ;;  %v786_v33 = vld [vmem:[#allocation3 + $0x130] sm:$0xff]  ;;  %v785_v35 = vld [vmem:[#allocation3 + $0x128] sm:$0xff] }
  0xc1   : > { %v7907_v37 = vadd.f32 %v587_v36, %v568_v34  ;;  %v795_v34 = vld [vmem:[#allocation3 + $0x178] sm:$0xff]  ;;  %v794_v36 = vld [vmem:[#allocation3 + $0x170] sm:$0xff] }
  0xc3   : > { %6626 = vmatprep.subr.msk.mxu0 %vm598_vm0, %v7907_v37 }
  0xc4   : > { %6627 = vmatpush3.xpose.msk.msra.mxu0 %vm598_vm0, %v7907_v37 }
  0xc5   : > { %v548_v39 = vpop.permute.xlu1 %547  ;;  %6628 = vmatprep.subr.msk.mxu0 %vm598_vm0, %v7909_v38 }
  0xc6   : > { %v562_v41 = vmul.f32 %v548_v39, %v511_v17  ;;  %v778_v17 = vld [vmem:[#allocation3 + $0xf0] sm:$0xff]  ;;  %v784_v39 = vld [vmem:[#allocation3 + $0x120] sm:$0xff] }
  0xc8   : > { %6629 = vmatpush3.xpose.msk.msra.mxu0 %vm598_vm0, %v7909_v38  ;;  %v566_v42 = vadd.f32 %v562_v41, %v542_v40  ;;  %v793_v40 = vld [vmem:[#allocation3 + $0x168] sm:$0xff] }
  0xca   : > { %v577_v43 = vpop.permute.xlu1 %576 }
  0xcb   : > { %v7919_v44 = vadd.f32 %v577_v43, %v566_v42  ;;  %v783_v42 = vld [vmem:[#allocation3 + $0x118] sm:$0xff]  ;;  %v792_v43 = vld [vmem:[#allocation3 + $0x160] sm:$0xff] }
  0xcd   : > { %6630 = vmatprep.subr.msk.mxu0 %vm598_vm0, %v7919_v44 }
  0xce   : > { %6631 = vmatpush3.xpose.msk.msra.mxu0 %vm598_vm0, %v7919_v44 }
  0xcf   : > { %6654 = vmatprep.subr.mxu0 %v7709_v48 }
  0xd1   : > { %6633 = vmatmul.mubr.msk.f32.vlgmr.msra.gmra.mxu0 %vm598_vm0, %v7928_v45 }
  0xd2   : > { %6655 = vmatpush3.msra.mxu0 %v763_v47  ;;  %6670 = vmatprep.mubr.msk.f32.mxu0 %vm7710_vm1, %v7709_v48  ;;  %v791_v47 = vld [vmem:[#allocation3 + $0x158] sm:$0xff] }
  0xd3   : > { %6656 = vmatprep.subr.mxu0 %v7709_v48 }
  0xd4   : > { %6657 = vmatpush3.msra.mxu0 %v762_v50  ;;  %v781_v50 = vld [vmem:[#allocation3 + $0x108] sm:$0xff] }
  0xd5   : > { %6658 = vmatprep.subr.mxu0 %v7709_v48 }
  0xd6   : > { %6659 = vmatpush3.msra.mxu0 %v761_v52  ;;  %v780_v52 = vld [vmem:[#allocation3 + $0x100] sm:$0xff] }
  0xd7   : > { %6660 = vmatprep.subr.mxu0 %v7709_v48 }
  0xd8   : > { %6661 = vmatpush3.msra.mxu0 %v760_v54 }
  0xd9   : > { %6662 = vmatprep.subr.mxu0 %v7709_v48 }
  0xda   : > { %6663 = vmatpush3.msra.mxu0 %v759_v56  ;;  %v788_v56 = vld [vmem:[#allocation3 + $0x140] sm:$0xff] }
  0xdb   : > { %6664 = vmatprep.subr.mxu0 %v7709_v48 }
  0xdc   : > { %6665 = vmatpush3.msra.mxu0 %v758_v59  ;;  %v802_v59 = vld [vmem:[#allocation3 + $0x1b0] sm:$0xff] }
  0xdd   : > { %6666 = vmatprep.subr.mxu0 %v7709_v48 }
  0xde   : > { %6667 = vmatpush3.msra.mxu0 %v757_v61  ;;  %v801_v61 = vld [vmem:[#allocation3 + $0x1a8] sm:$0xff] }
  0xdf   : > { %6668 = vmatprep.subr.mxu0 %v7709_v48 }
  0xe0   : > { %6669 = vmatpush3.msra.mxu0 %v756_v62  ;;  %v810_v62 = vld [vmem:[#allocation3 + $0x1f0] sm:$0xff] }
  0xe1   : > { %6692 = vmatprep.subr.mxu0 %v7709_v48 }
 0x191   : > { %v6634_v63 = vpop.f32.mrf.mxu0 }
 0x192   : > { %693 = vrot.lane.b32.xlu0 %v6634_v63, %s8956_s28  ;;  %v800_v63 = vld [vmem:[#allocation3 + $0x1a0] sm:$0xff]  ;;  %s5944_s28 = scalar_lea.sflag [#allocation5], %s498_s22 }
 0x193   : > { %v683_v5 = vpop.f32.mrf.mxu0 }
 0x204   : > { %v694_v6 = vpop.permute.xlu0 %693 }
 0x205   : > { %v7962_v7 = vsel %vm696_vm2, %v683_v5, %v694_v6  ;;  %v798_v5 = vld [vmem:[#allocation3 + $0x190] sm:$0xff]  ;;  %v807_v6 = vld [vmem:[#allocation3 + $0x1d8] sm:$0xff] }
 0x206   : > { %v706_v8 = vrot.slane %v7962_v7, %v7959_v4  ;;  %v699_v41 = vcombine.high %v7962_v7, %v7962_v7  ;;  %v797_v7 = vld [vmem:[#allocation3 + $0x188] sm:$0xff] }
 0x208   : > { %v714_v9 = vcombine.high %v706_v8, %v706_v8  ;;  %v722_v10 = vrot.slane %v706_v8, %v7959_v4  ;;  %v713_v49 = vrot.slane %v699_v41, %v7959_v4  ;;  %v806_v8 = vld [vmem:[#allocation3 + $0x1d0] sm:$0xff] }
 0x20a   : > { %v736_v12 = vrot.slane %v714_v9, %v7959_v4  ;;  %6652 = vmatmul.mubr.msk.f32.vlgmr.msra.gmra.mxu1 %vm812_vm3, %v722_v10  ;;  %v744_v29 = vcombine.high %v722_v10, %v722_v10  ;;  %v715_v54 = vcombine.high %v713_v49, %v713_v49  ;;  %v729_v55 = vrot.slane %v713_v49, %v7959_v4  ;;  %v796_v9 = vld [vmem:[#allocation3 + $0x180] sm:$0xff]  ;;  %v805_v10 = vld [vmem:[#allocation3 + $0x1c8] sm:$0xff] }
 0x20b   : > { %6674 = vmatpush3.msra.mxu1 %v771_v13  ;;  %6689 = vmatprep.mubr.msk.f32.mxu1 %vm7710_vm1, %v7709_v48 }
 0x20c   : > { %6675 = vmatprep.subr.mxu1 %v7709_v48  ;;  %6671 = vmatmul.mubr.msk.f32.vlgmr.msra.gmra.mxu0 %vm812_vm3, %v736_v12  ;;  %v746_v32 = vcombine.high %v736_v12, %v736_v12  ;;  %v743_v58 = vrot.slane %v715_v54, %v7959_v4  ;;  %v745_v13 = vcombine.high %v729_v55, %v729_v55  ;;  %v804_v12 = vld [vmem:[#allocation3 + $0x1c0] sm:$0xff]  ;;  %v1602_v54 = vld [vmem:[%s8943_s8 + $0x18] sm:$0xff] }
 0x20d   : > { %6676 = vmatpush3.msra.mxu1 %v770_v14  ;;  %6693 = vmatpush3.msra.mxu0 %v779_v15 }
 0x20e   : > { %6677 = vmatprep.subr.mxu1 %v7709_v48  ;;  %6694 = vmatprep.subr.mxu0 %v7709_v48  ;;  %v747_v14 = vcombine.high %v743_v58, %v743_v58 }
 0x20f   : > { %6678 = vmatpush3.msra.mxu1 %v769_v16  ;;  %6695 = vmatpush3.msra.mxu0 %v778_v17 }
 0x210   : > { %6679 = vmatprep.subr.mxu1 %v7709_v48  ;;  %6696 = vmatprep.subr.mxu0 %v7709_v48 }
 0x211   : > { %6680 = vmatpush3.msra.mxu1 %v768_v18  ;;  %6697 = vmatpush3.msra.mxu0 %v777_v19 }
 0x212   : > { %6681 = vmatprep.subr.mxu1 %v7709_v48  ;;  %6698 = vmatprep.subr.mxu0 %v7709_v48 }
 0x213   : > { %6682 = vmatpush3.msra.mxu1 %v767_v20  ;;  %6699 = vmatpush3.msra.mxu0 %v776_v21 }
 0x214   : > { %6683 = vmatprep.subr.mxu1 %v7709_v48  ;;  %6700 = vmatprep.subr.mxu0 %v7709_v48 }
 0x215   : > { %6684 = vmatpush3.msra.mxu1 %v766_v22  ;;  %6701 = vmatpush3.msra.mxu0 %v775_v23 }
 0x216   : > { %6685 = vmatprep.subr.mxu1 %v7709_v48  ;;  %6702 = vmatprep.subr.mxu0 %v7709_v48 }
 0x217   : > { %6686 = vmatpush3.msra.mxu1 %v765_v24  ;;  %6703 = vmatpush3.msra.mxu0 %v774_v25 }
 0x218   : > { %6687 = vmatprep.subr.mxu1 %v7709_v48  ;;  %6704 = vmatprep.subr.mxu0 %v7709_v48 }
 0x219   : > { %6688 = vmatpush3.msra.mxu1 %v764_v27  ;;  %6705 = vmatpush3.msra.mxu0 %v773_v28 }
 0x21a   : > { %6690 = vmatmul.mubr.msk.f32.vlgmr.msra.gmra.mxu1 %vm812_vm3, %v744_v29  ;;  %6706 = vmatprep.subr.mxu0 %v7709_v48 }
 0x21b   : > { %6711 = vmatprep.subr.mxu1 %v7709_v48  ;;  %6707 = vmatpush3.msra.mxu0 %v772_v30 }
 0x21c   : > { %6708 = vmatprep.mubr.msk.f32.mxu0 %vm7710_vm1, %v7709_v48  ;;  %6712 = vmatpush3.msra.mxu1 %v787_v31 }
 0x21d   : > { %6709 = vmatmul.mubr.msk.f32.vlgmr.msra.gmra.mxu0 %vm812_vm3, %v746_v32  ;;  %6713 = vmatprep.subr.mxu1 %v7709_v48 }
 0x21e   : > { %6730 = vmatprep.subr.mxu0 %v7709_v48  ;;  %6714 = vmatpush3.msra.mxu1 %v786_v33 }
 0x21f   : > { %6731 = vmatpush3.msra.mxu0 %v795_v34  ;;  %6715 = vmatprep.subr.mxu1 %v7709_v48 }
 0x220   : > { %6732 = vmatprep.subr.mxu0 %v7709_v48  ;;  %6716 = vmatpush3.msra.mxu1 %v785_v35 }
 0x221   : > { %6733 = vmatpush3.msra.mxu0 %v794_v36  ;;  %6717 = vmatprep.subr.mxu1 %v7709_v48 }
 0x222   : > { %6734 = vmatprep.subr.mxu0 %v7709_v48  ;;  %6718 = vmatpush3.msra.mxu1 %v784_v39 }
 0x223   : > { %6735 = vmatpush3.msra.mxu0 %v793_v40  ;;  %6719 = vmatprep.subr.mxu1 %v7709_v48 }
 0x224   : > { %6736 = vmatprep.subr.mxu0 %v7709_v48  ;;  %6720 = vmatpush3.msra.mxu1 %v783_v42 }
 0x225   : > { %6737 = vmatpush3.msra.mxu0 %v792_v43  ;;  %6721 = vmatprep.subr.mxu1 %v7709_v48 }
 0x226   : > { %6738 = vmatprep.subr.mxu0 %v7709_v48  ;;  %6722 = vmatpush3.msra.mxu1 %v782_v46 }
 0x227   : > { %6739 = vmatpush3.msra.mxu0 %v791_v47  ;;  %6723 = vmatprep.subr.mxu1 %v7709_v48 }
 0x228   : > { %6740 = vmatprep.subr.mxu0 %v7709_v48  ;;  %6724 = vmatpush3.msra.mxu1 %v781_v50  ;;  %v1425_v50 = vld [vmem:[%s8941_s6 + $0x18] sm:$0xff] }
 0x229   : > { %6741 = vmatpush3.msra.mxu0 %v790_v51  ;;  %6725 = vmatprep.subr.mxu1 %v7709_v48  ;;  %v1424_v51 = vld [vmem:[%s8941_s6 + $0x10] sm:$0xff] }
 0x22a   : > { %6742 = vmatprep.subr.mxu0 %v7709_v48  ;;  %6726 = vmatpush3.msra.mxu1 %v780_v52  ;;  %v1423_v52 = vld [vmem:[%s8941_s6 + $0x8] sm:$0xff] }
 0x22b   : > { %6727 = vmatprep.mubr.msk.f32.mxu1 %vm7710_vm1, %v7709_v48  ;;  %6743 = vmatpush3.msra.mxu0 %v789_v53  ;;  %v1422_v53 = vld [vmem:[%s8941_s6] sm:$0xff] }
 0x22c   : > { %6728 = vmatmul.mubr.msk.f32.vlgmr.msra.gmra.mxu1 %vm812_vm3, %v729_v55  ;;  %6744 = vmatprep.subr.mxu0 %v7709_v48  ;;  %v1727_v55 = vld [vmem:[%s8945_s10 + $0x18] sm:$0xff] }
 0x22d   : > { %6749 = vmatprep.subr.mxu1 %v7709_v48  ;;  %6745 = vmatpush3.msra.mxu0 %v788_v56  ;;  %v1601_v56 = vld [vmem:[%s8943_s8 + $0x10] sm:$0xff] }
 0x22e   : > { %6746 = vmatprep.mubr.msk.f32.mxu0 %vm7710_vm1, %v7709_v48  ;;  %6750 = vmatpush3.msra.mxu1 %v803_v57  ;;  %v1726_v57 = vld [vmem:[%s8945_s10 + $0x10] sm:$0xff] }
 0x22f   : > { %6747 = vmatmul.mubr.msk.f32.vlgmr.msra.gmra.mxu0 %vm812_vm3, %v743_v58  ;;  %6751 = vmatprep.subr.mxu1 %v7709_v48  ;;  %v1600_v58 = vld [vmem:[%s8943_s8 + $0x8] sm:$0xff] }
 0x230   : > { %6768 = vmatprep.subr.mxu0 %v7709_v48  ;;  %6752 = vmatpush3.msra.mxu1 %v802_v59  ;;  %v1599_v59 = vld [vmem:[%s8943_s8] sm:$0xff] }
 0x231   : > { %6769 = vmatpush3.msra.mxu0 %v811_v60  ;;  %6753 = vmatprep.subr.mxu1 %v7709_v48  ;;  %v1724_v60 = vld [vmem:[%s8945_s10] sm:$0xff] }
 0x232   : > { %6770 = vmatprep.subr.mxu0 %v7709_v48  ;;  %6754 = vmatpush3.msra.mxu1 %v801_v61  ;;  %v8085_v61 = vld [vmem:[%s8937_s2 + $0x8] sm:$0xff] }
 0x233   : > { %6771 = vmatpush3.msra.mxu0 %v810_v62  ;;  %6755 = vmatprep.subr.mxu1 %v7709_v48  ;;  %v8091_v62 = vld [vmem:[%s8937_s2] sm:$0xff] }
 0x234   : > { %6772 = vmatprep.subr.mxu0 %v7709_v48  ;;  %6756 = vmatpush3.msra.mxu1 %v800_v63 }
 0x235   : > { %6773 = vmatpush3.msra.mxu0 %v809_v0  ;;  %6757 = vmatprep.subr.mxu1 %v7709_v48  ;;  %v1725_v0 = vld [vmem:[%s8945_s10 + $0x8] sm:$0xff] }
 0x236   : > { %6774 = vmatprep.subr.mxu0 %v7709_v48  ;;  %6758 = vmatpush3.msra.mxu1 %v799_v1  ;;  %v6070_v1 = vld [vmem:[%s8941_s6 + $0x38] sm:$0xff] }
 0x237   : > { %6775 = vmatpush3.msra.mxu0 %v808_v2  ;;  %6759 = vmatprep.subr.mxu1 %v7709_v48  ;;  %v6069_v2 = vld [vmem:[%s8941_s6 + $0x30] sm:$0xff] }
 0x238   : > { %6776 = vmatprep.subr.mxu0 %v7709_v48  ;;  %6760 = vmatpush3.msra.mxu1 %v798_v5  ;;  %v6068_v5 = vld [vmem:[%s8941_s6 + $0x28] sm:$0xff] }
 0x239   : > { %6777 = vmatpush3.msra.mxu0 %v807_v6  ;;  %6761 = vmatprep.subr.mxu1 %v7709_v48  ;;  %v6067_v6 = vld [vmem:[%s8941_s6 + $0x20] sm:$0xff] }
 0x23a   : > { %6778 = vmatprep.subr.mxu0 %v7709_v48  ;;  %6762 = vmatpush3.msra.mxu1 %v797_v7  ;;  %v6094_v7 = vld [vmem:[%s8945_s10 + $0x38] sm:$0xff] }
 0x23b   : > { %6779 = vmatpush3.msra.mxu0 %v806_v8  ;;  %6763 = vmatprep.subr.mxu1 %v7709_v48  ;;  %v6081_v8 = vld [vmem:[%s8943_s8 + $0x30] sm:$0xff] }
 0x23c   : > { %6780 = vmatprep.subr.mxu0 %v7709_v48  ;;  %6764 = vmatpush3.msra.mxu1 %v796_v9  ;;  %v6093_v9 = vld [vmem:[%s8945_s10 + $0x30] sm:$0xff] }
 0x23d   : > { %6765 = vmatprep.mubr.msk.f32.mxu1 %vm7710_vm1, %v7709_v48  ;;  %6781 = vmatpush3.msra.mxu0 %v805_v10  ;;  %v6080_v10 = vld [vmem:[%s8943_s8 + $0x28] sm:$0xff] }
 0x23e   : > { %6766 = vmatmul.mubr.msk.f32.vlgmr.msra.gmra.mxu1 %vm812_vm3, %v745_v13  ;;  %6782 = vmatprep.subr.mxu0 %v7709_v48  ;;  %v6092_v13 = vld [vmem:[%s8945_s10 + $0x28] sm:$0xff] }
 0x23f   : > { %6783 = vmatpush3.msra.mxu0 %v804_v12  ;;  %6784 = vmatprep.mubr.msk.f32.mxu0 %vm7710_vm1, %v7709_v48  ;;  %v6079_v12 = vld [vmem:[%s8943_s8 + $0x20] sm:$0xff] }
 0x240   : > { %6785 = vmatmul.mubr.msk.f32.vlgmr.msra.gmra.mxu0 %vm812_vm3, %v747_v14  ;;  %6787 = vmatprep.subr.mxu1 %v8085_v61  ;;  %v6091_v14 = vld [vmem:[%s8945_s10 + $0x20] sm:$0xff] }
 0x241   : > { %6833 = vmatprep.mubr.msk.f32.mxu0 %vm598_vm0, %v7891_v11  ;;  %6788 = vmatpush3.msra.mxu1 %v8085_v61 }
 0x242   : > { %6789 = vmatprep.subr.mxu1 %v8091_v62 }
 0x243   : > { %6790 = vmatpush3.msra.mxu1 %v8091_v62 }
 0x2ca   : > { %v881_v15 = vpop.f32.mrf.mxu1 }
 0x2cc   : > { %v6653_v16 = vpop.f32.mrf.mxu1  ;;  %v953_v17 = vpop.f32.mrf.mxu0 }
 0x2cd   : > { %v1397_v28 = vrot.slane %v953_v17, 7 }
 0x2ce   : > { %v6672_v18 = vpop.f32.mrf.mxu0 }
 0x2cf   : > { %v1399_v30 = vsel %vm1398_vm4, %v1397_v28, %v881_v15 }
 0x2da   : > { %v1025_v19 = vpop.f32.mrf.mxu1 }
 0x2db   : > { %v1400_v29 = vrot.slane %v1025_v19, 6  ;;  %v1595_v19 = vld [vmem:[%s8942_s7] sm:$0xff] }
 0x2dc   : > { %v6691_v20 = vpop.f32.mrf.mxu1 }
 0x2dd   : > { %v1097_v21 = vpop.f32.mrf.mxu0  ;;  %v1402_v11 = vsel %vm1401_vm5, %v1400_v29, %v1399_v30 }
 0x2de   : > { %v1403_v31 = vrot.slane %v1097_v21, 5 }
 0x2df   : > { %v6710_v22 = vpop.f32.mrf.mxu0 }
 0x2e0   : > { %v1405_v33 = vsel %vm1404_vm6, %v1403_v31, %v1402_v11 }
 0x2ec   : > { %v1169_v23 = vpop.f32.mrf.mxu1 }
 0x2ed   : > { %v1406_v32 = vrot.slane %v1169_v23, 4 }
 0x2ee   : > { %v6729_v24 = vpop.f32.mrf.mxu1 }
 0x2ef   : > { %v1241_v25 = vpop.f32.mrf.mxu0  ;;  %v1408_v35 = vsel %vm1407_vm7, %v1406_v32, %v1405_v33 }
 0x2f0   : > { %v1409_v34 = vrot.slane %v1241_v25, 3 }
 0x2f1   : > { %v6748_v27 = vpop.f32.mrf.mxu0 }
 0x2f2   : > { %v1411_v40 = vsel %vm1410_vm8, %v1409_v34, %v1408_v35 }
 0x2fe   : > { %v1313_v36 = vpop.f32.mrf.mxu1 }
 0x2ff   : > { %v1412_v39 = vrot.slane %v1313_v36, 2 }
 0x300   : > { %v6767_v41 = vpop.f32.mrf.mxu1  ;;  %v1385_v42 = vpop.f32.mrf.mxu0 }
 0x301   : > { %v1415_v43 = vrot.slane %v1385_v42, 1  ;;  %v1414_v46 = vsel %vm1413_vm9, %v1412_v39, %v1411_v40 }
 0x302   : > { %v6786_v47 = vpop.f32.mrf.mxu0 }
 0x303   : > { %v1417_v49 = vsel %vm1416_vm10, %v1415_v43, %v1414_v46 }
 0x304   : > { %1446 = vxpose.xlu0.b32.start [1/2] (short) (narrow) %v1417_v49, 32  ;;  %1419 = vrot.lane.b32.xlu1 %v1417_v49, %s8954_s16  ;;  %s7638_s16 = scalar_lea.vmem %s5957_s0, 16 }
 0x305   : > { %p7639_p8 = scmp.ne.s32.totalorder %s5957_s0, %s7638_s16 }
 0x307   : > { %p7640_p9 = pnand %p7639_p8, %p7836_p5 }
 0x308   : > { %1443 = vperm.xlu1 %7535, %v1425_v50  }
 0x309   : > { %p7641_p10 = pneg %p7640_p9 }
 0x30c   : > { %1438 = vperm.xlu1 %7535, %v1424_v51  }
 0x310   : > { %1433 = vperm.xlu1 %7535, %v1423_v52  }
 0x314   : > { %1428 = vperm.xlu1 %7535, %v1422_v53  }
 0x318   : > { %1620 = vperm.xlu1 %7535, %v1602_v54  }
 0x31c   : > { %1745 = vperm.xlu1 %7535, %v1727_v55  }
 0x320   : > { %1615 = vperm.xlu1 %7535, %v1601_v56  }
 0x324   : > { %1740 = vperm.xlu1 %7535, %v1726_v57   ;;  %v1596_v57 = vld [vmem:[%s8942_s7 + $0x8] sm:$0xff] }
 0x328   : > { %1610 = vperm.xlu1 %7535, %v1600_v58   ;;  %v1597_v58 = vld [vmem:[%s8942_s7 + $0x10] sm:$0xff] }
 0x32c   : > { %1605 = vperm.xlu1 %7535, %v1599_v59   ;;  %v1598_v59 = vld [vmem:[%s8942_s7 + $0x18] sm:$0xff] }
 0x330   : > { %1730 = vperm.xlu1 %7535, %v1724_v60   ;;  %v1720_v60 = vld [vmem:[%s8944_s9] sm:$0xff] }
 0x376   : > { %v1420_v63 = vpop.permute.xlu1 %1419 }
 0x377   : > { %1447 = vxpose.xlu0.b32.end [2/2] (short) (narrow) %v1420_v63, 32  ;;  %v1722_v63 = vld [vmem:[%s8944_s9 + $0x10] sm:$0xff] }
 0x383   : > { %v1444_v20 = vpop.permute.xlu1 %1443 }
 0x387   : > { %v1439_v21 = vpop.permute.xlu1 %1438 }
 0x38b   : > { %v1434_v22 = vpop.permute.xlu1 %1433 }
 0x38f   : > { %v1429_v27 = vpop.permute.xlu1 %1428 }
 0x3a8   : > { %1735 = vperm.xlu0 %7531, %v1725_v0  }
 0x3ac   : > { %2700 = vperm.xlu0 %7531, %v6070_v1  }
 0x3b0   : > { %2695 = vperm.xlu0 %7531, %v6069_v2  }
 0x3b4   : > { %2690 = vperm.xlu0 %7531, %v6068_v5  }
 0x3b8   : > { %2685 = vperm.xlu0 %7531, %v6067_v6  }
 0x3bc   : > { %3006 = vperm.xlu0 %7531, %v6094_v7  }
 0x3c0   : > { %2874 = vperm.xlu0 %7531, %v6081_v8  }
 0x3c4   : > { %3001 = vperm.xlu0 %7531, %v6093_v9  }
 0x3c8   : > { %2869 = vperm.xlu0 %7531, %v6080_v10  }
 0x3cc   : > { %2996 = vperm.xlu0 %7531, %v6092_v13  }
 0x3d0   : > { %2864 = vperm.xlu0 %7531, %v6079_v12  }
 0x3d4   : > { %2991 = vperm.xlu0 %7531, %v6091_v14  }
 0x3ef   : > { %v1462_v15 = vpop.trf.xlu0 }
 0x3f0   : > { %6791 = vmatprep.mubr.msk.f32.mxu1 %vm598_vm0, %v1462_v15 }
 0x3f3   : > { %v1463_v16 = vpop.trf.xlu0 }
 0x3f4   : > { %6792 = vmatmul.mubr.msk.f32.vlgmr.msra.gmra.mxu1 %vm598_vm0, %v1463_v16 }
 0x3f7   : > { %v1464_v17 = vpop.trf.xlu0 }
 0x3f8   : > { %6794 = vmatprep.mubr.msk.f32.mxu1 %vm598_vm0, %v1464_v17 }
 0x3fb   : > { %v1465_v18 = vpop.trf.xlu0 }
 0x3fc   : > { %6795 = vmatmul.mubr.msk.f32.gmra.mxu1 %vm598_vm0, %v1465_v18 }
 0x3fd   : > { %6805 = vmatprep.mubr.msk.f32.mxu1 %vm696_vm2, %v1595_v19 }
 0x423   : > { %v1736_v10 = vpop.permute.xlu0 %1735 }
 0x4b4   : > { %v6793_v23 = vpop.f32.mrf.mxu1 }
 0x4b5   : > { %v1562_v25 = vadd.f32 %v6793_v23, %v1434_v22 }
 0x4b6   : > { %v1556_v24 = vpop.f32.mrf.mxu1 }
 0x4b7   : > { %v1557_v28 = vadd.f32 %v1556_v24, %v1429_v27  ;;  %v1580_v29 = vmul.f32 0.70710677, %v1562_v25  ;;  %v1576_v51 = vmul.f32 0.5, %v1562_v25 }
 0x4b9   : > { %v1579_v11 = vmul.f32 0.70710677, %v1557_v28  ;;  %7536 = verf.f32 %v1580_v29  ;;  %v1575_v54 = vmul.f32 0.5, %v1557_v28 }
 0x4bc   : > { %v6796_v30 = vpop.f32.mrf.mxu1 }
 0x4bd   : > { %v1572_v31 = vadd.f32 %v6796_v30, %v1444_v20 }
 0x4be   : > { %v1566_v32 = vpop.f32.mrf.mxu1 }
 0x4bf   : > { %v1582_v33 = vmul.f32 0.70710677, %v1572_v31  ;;  %v1567_v34 = vadd.f32 %v1566_v32, %v1439_v21  ;;  %v1578_v41 = vmul.f32 0.5, %v1572_v31 }
 0x4c1   : > { %7538 = verf.f32 %v1582_v33  ;;  %v1581_v35 = vmul.f32 0.70710677, %v1567_v34  ;;  %v1577_v46 = vmul.f32 0.5, %v1567_v34 }
 0x4c2   : > { %7540 = verf.f32 %v1579_v11 }
 0x4c3   : > { %7542 = verf.f32 %v1581_v35 }
 0x4c6   : > { %v7537_v36 = vpop.eup %7536 }
 0x4c7   : > { %v1588_v50 = vadd.f32 1.0, %v7537_v36 }
 0x4c9   : > { %v1592_v55 = vmul.f32 %v1588_v50, %v1576_v51 }
 0x4ce   : > { %v7539_v39 = vpop.eup %7538 }
 0x4cf   : > { %v7541_v40 = vpop.eup %7540  ;;  %v1590_v42 = vadd.f32 1.0, %v7539_v39 }
 0x4d0   : > { %v7543_v43 = vpop.eup %7542  ;;  %v1587_v53 = vadd.f32 1.0, %v7541_v40 }
 0x4d1   : > { %v1594_v47 = vmul.f32 %v1590_v42, %v1578_v41  ;;  %v1589_v49 = vadd.f32 1.0, %v7543_v43 }
 0x4d2   : > { %v1591_v56 = vmul.f32 %v1587_v53, %v1575_v54  ;;  %v2019_v54 = vld [vmem:[#allocation3 + $0x238] sm:$0xff] }
 0x4d3   : > { %6797 = vmatprep.subr.mxu1 %v1594_v47  ;;  %v1593_v52 = vmul.f32 %v1589_v49, %v1577_v46 }
 0x4d4   : > { %6798 = vmatpush3.msra.mxu1 %v1594_v47 }
 0x4d5   : > { %6799 = vmatprep.subr.mxu1 %v1593_v52 }
 0x4d6   : > { %6800 = vmatpush3.msra.mxu1 %v1593_v52 }
 0x4d7   : > { %6801 = vmatprep.subr.mxu1 %v1592_v55 }
 0x4d8   : > { %6802 = vmatpush3.msra.mxu1 %v1592_v55  ;;  %v2018_v55 = vld [vmem:[#allocation3 + $0x230] sm:$0xff] }
 0x4d9   : > { %6803 = vmatprep.subr.mxu1 %v1591_v56 }
 0x4da   : > { %6804 = vmatpush3.msra.mxu1 %v1591_v56  ;;  %v2027_v56 = vld [vmem:[#allocation3 + $0x278] sm:$0xff] }
 0x4db   : > { %6806 = vmatmul.mubr.msk.f32.vlgmr.msra.gmra.mxu1 %vm696_vm2, %v1596_v57  ;;  %6811 = vmatprep.subr.mxu1 %v7901_v26  ;;  %v2026_v57 = vld [vmem:[#allocation3 + $0x270] sm:$0xff] }
 0x4dc   : > { %6812 = vmatpush3.msra.mxu1 %v7901_v26  ;;  %6808 = vmatprep.mubr.msk.f32.mxu1 %vm696_vm2, %v1597_v58  ;;  %v1721_v26 = vld [vmem:[%s8944_s9 + $0x8] sm:$0xff] }
 0x4dd   : > { %6813 = vmatprep.subr.mxu1 %v7907_v37  ;;  %v2017_v58 = vld [vmem:[#allocation3 + $0x228] sm:$0xff] }
 0x4de   : > { %6814 = vmatpush3.msra.mxu1 %v7907_v37  ;;  %v1723_v37 = vld [vmem:[%s8944_s9 + $0x18] sm:$0xff] }
 0x4df   : > { %6809 = vmatmul.mubr.msk.f32.gmra.mxu1 %vm696_vm2, %v1598_v59  ;;  %6815 = vmatprep.subr.mxu1 %v7909_v38  ;;  %v2025_v59 = vld [vmem:[#allocation3 + $0x268] sm:$0xff] }
 0x4e0   : > { %6816 = vmatpush3.msra.mxu1 %v7909_v38  ;;  %6819 = vmatprep.mubr.msk.f32.mxu1 %vm696_vm2, %v1720_v60  ;;  %v1621_v38 = vpop.permute.xlu1 %1620  ;;  %v2024_v60 = vld [vmem:[#allocation3 + $0x260] sm:$0xff] }
 0x4e1   : > { %6817 = vmatprep.subr.mxu1 %v7919_v44 }
 0x4e2   : > { %6818 = vmatpush3.msra.mxu1 %v7919_v44 }
 0x4e3   : > { %6820 = vmatmul.mubr.msk.f32.vlgmr.msra.gmra.mxu1 %vm696_vm2, %v1721_v26  ;;  %6836 = vmatprep.subr.mxu1 %v7709_v48  ;;  %v2015_v26 = vld [vmem:[#allocation3 + $0x218] sm:$0xff] }
 0x4e4   : > { %6822 = vmatprep.mubr.msk.f32.mxu1 %vm696_vm2, %v1722_v63  ;;  %v1746_v0 = vpop.permute.xlu1 %1745  ;;  %6837 = vmatpush3.msra.mxu1 %v2019_v54  ;;  %v2023_v63 = vld [vmem:[#allocation3 + $0x258] sm:$0xff]  ;;  %v2045_v54 = vld [vmem:[#allocation3 + $0x308] sm:$0xff] }
 0x4e5   : > { %6838 = vmatprep.subr.mxu1 %v7709_v48 }
 0x4e6   : > { %6839 = vmatpush3.msra.mxu1 %v2018_v55  ;;  %v2054_v55 = vld [vmem:[#allocation3 + $0x350] sm:$0xff] }
 0x4e7   : > { %6823 = vmatmul.mubr.msk.f32.gmra.mxu1 %vm696_vm2, %v1723_v37  ;;  %6840 = vmatprep.subr.mxu1 %v7709_v48  ;;  %v2014_v37 = vld [vmem:[#allocation3 + $0x210] sm:$0xff] }
 0x4e8   : > { %6852 = vmatprep.mubr.msk.f32.mxu1 %vm7710_vm1, %v7709_v48  ;;  %v1616_v1 = vpop.permute.xlu1 %1615  ;;  %6841 = vmatpush3.msra.mxu1 %v2017_v58 }
 0x4e9   : > { %6842 = vmatprep.subr.mxu1 %v7709_v48 }
 0x4ec   : > { %v1741_v2 = vpop.permute.xlu1 %1740 }
 0x4f0   : > { %v1611_v44 = vpop.permute.xlu1 %1610 }
 0x4f4   : > { %v1606_v8 = vpop.permute.xlu1 %1605 }
 0x4f8   : > { %v1731_v16 = vpop.permute.xlu1 %1730 }
 0x59b   : > { %v6807_v5 = vpop.f32.mrf.mxu1 }
 0x59c   : > { %v1707_v15 = vadd.f32 %v6807_v5, %v1611_v44  ;;  %v2020_v44 = vld [vmem:[#allocation3 + $0x240] sm:$0xff] }
 0x59d   : > { %v1701_v6 = vpop.f32.mrf.mxu1 }
 0x59e   : > { %v1702_v23 = vadd.f32 %v1701_v6, %v1606_v8 }
 0x59f   : > { %v6810_v7 = vpop.f32.mrf.mxu1 }
 0x5a0   : > { %v1717_v18 = vadd.f32 %v6810_v7, %v1621_v38  ;;  %v2013_v38 = vld [vmem:[#allocation3 + $0x208] sm:$0xff] }
 0x5a1   : > { %v1711_v9 = vpop.f32.mrf.mxu1 }
 0x5a2   : > { %v1712_v25 = vadd.f32 %v1711_v9, %v1616_v1  ;;  %v2012_v1 = vld [vmem:[#allocation3 + $0x200] sm:$0xff] }
 0x5a3   : > { %v6821_v13 = vpop.f32.mrf.mxu1 }
 0x5a4   : > { %v1832_v12 = vadd.f32 %v6821_v13, %v1736_v10 }
 0x5a5   : > { %v1826_v14 = vpop.f32.mrf.mxu1 }
 0x5a6   : > { %v1846_v19 = vadd.f32 %v1832_v12, %v1707_v15  ;;  %v1827_v20 = vadd.f32 %v1826_v14, %v1731_v16  ;;  %v2035_v12 = vld [vmem:[#allocation3 + $0x2b8] sm:$0xff]  ;;  %v2034_v15 = vld [vmem:[#allocation3 + $0x2b0] sm:$0xff] }
 0x5a7   : > { %v6824_v17 = vpop.f32.mrf.mxu1  ;;  %v2043_v16 = vld [vmem:[#allocation3 + $0x2f8] sm:$0xff] }
 0x5a8   : > { %v1842_v21 = vadd.f32 %v6824_v17, %v1746_v0  ;;  %v1854_v28 = vmul.f32 0.70710677, %v1846_v19  ;;  %v1845_v29 = vadd.f32 %v1827_v20, %v1702_v23  ;;  %v1850_v49 = vmul.f32 0.5, %v1846_v19  ;;  %v2022_v0 = vld [vmem:[#allocation3 + $0x250] sm:$0xff]  ;;  %v2033_v17 = vld [vmem:[#allocation3 + $0x2a8] sm:$0xff]  ;;  %v2032_v19 = vld [vmem:[#allocation3 + $0x2a0] sm:$0xff] }
 0x5a9   : > { %v1836_v22 = vpop.f32.mrf.mxu1  ;;  %v2041_v20 = vld [vmem:[#allocation3 + $0x2e8] sm:$0xff]  ;;  %v2030_v23 = vld [vmem:[#allocation3 + $0x290] sm:$0xff] }
 0x5aa   : > { %v1848_v24 = vadd.f32 %v1842_v21, %v1717_v18  ;;  %v1837_v27 = vadd.f32 %v1836_v22, %v1741_v2  ;;  %v1853_v32 = vmul.f32 0.70710677, %v1845_v29  ;;  %v1849_v52 = vmul.f32 0.5, %v1845_v29  ;;  %v2021_v2 = vld [vmem:[#allocation3 + $0x248] sm:$0xff]  ;;  %v2042_v18 = vld [vmem:[#allocation3 + $0x2f0] sm:$0xff]  ;;  %v2031_v21 = vld [vmem:[#allocation3 + $0x298] sm:$0xff] }
 0x5ab   : > { %v2040_v22 = vld [vmem:[#allocation3 + $0x2e0] sm:$0xff]  ;;  %v2037_v29 = vld [vmem:[#allocation3 + $0x2c8] sm:$0xff] }
 0x5ac   : > { %v1856_v30 = vmul.f32 0.70710677, %v1848_v24  ;;  %v1847_v31 = vadd.f32 %v1837_v27, %v1712_v25  ;;  %v1852_v34 = vmul.f32 0.5, %v1848_v24  ;;  %v2039_v24 = vld [vmem:[#allocation3 + $0x2d8] sm:$0xff]  ;;  %v2029_v25 = vld [vmem:[#allocation3 + $0x288] sm:$0xff]  ;;  %v2038_v27 = vld [vmem:[#allocation3 + $0x2d0] sm:$0xff] }
 0x5ae   : > { %7544 = verf.f32 %v1856_v30  ;;  %v1855_v11 = vmul.f32 0.70710677, %v1847_v31  ;;  %v1851_v41 = vmul.f32 0.5, %v1847_v31  ;;  %v2036_v31 = vld [vmem:[#allocation3 + $0x2c0] sm:$0xff] }
 0x5af   : > { %7546 = verf.f32 %v1854_v28  ;;  %v2028_v28 = vld [vmem:[#allocation3 + $0x280] sm:$0xff] }
 0x5b0   : > { %7548 = verf.f32 %v1855_v11  ;;  %v2051_v11 = vld [vmem:[#allocation3 + $0x338] sm:$0xff] }
 0x5b1   : > { %7550 = verf.f32 %v1853_v32 }
 0x5bb   : > { %v7545_v33 = vpop.eup %7544 }
 0x5bc   : > { %v1864_v35 = vadd.f32 1.0, %v7545_v33  ;;  %v7547_v36 = vpop.eup %7546  ;;  %v2050_v33 = vld [vmem:[#allocation3 + $0x330] sm:$0xff] }
 0x5bd   : > { %v7549_v39 = vpop.eup %7548  ;;  %v1862_v43 = vadd.f32 1.0, %v7547_v36  ;;  %v2058_v36 = vld [vmem:[#allocation3 + $0x370] sm:$0xff] }
 0x5be   : > { %v8179_v40 = vmul.f32 %v1864_v35, %v1852_v34  ;;  %v1863_v42 = vadd.f32 1.0, %v7549_v39  ;;  %v7551_v46 = vpop.eup %7550  ;;  %v2059_v34 = vld [vmem:[#allocation3 + $0x378] sm:$0xff]  ;;  %v2049_v35 = vld [vmem:[#allocation3 + $0x328] sm:$0xff]  ;;  %v2048_v39 = vld [vmem:[#allocation3 + $0x320] sm:$0xff] }
 0x5bf   : > { %v8189_v50 = vmul.f32 %v1862_v43, %v1850_v49  ;;  %v1861_v51 = vadd.f32 1.0, %v7551_v46  ;;  %v2047_v43 = vld [vmem:[#allocation3 + $0x318] sm:$0xff]  ;;  %v2056_v46 = vld [vmem:[#allocation3 + $0x360] sm:$0xff]  ;;  %v2046_v49 = vld [vmem:[#allocation3 + $0x310] sm:$0xff] }
 0x5c0   : > { %6825 = vmatprep.subr.msk.mxu0 %vm598_vm0, %v8179_v40  ;;  %v8183_v47 = vmul.f32 %v1863_v42, %v1851_v41  ;;  %v2057_v41 = vld [vmem:[#allocation3 + $0x368] sm:$0xff] }
 0x5c1   : > { %6826 = vmatpush3.xpose.msk.msra.mxu0 %vm598_vm0, %v8179_v40  ;;  %v8195_v53 = vmul.f32 %v1861_v51, %v1849_v52  ;;  %v2055_v51 = vld [vmem:[#allocation3 + $0x358] sm:$0xff] }
 0x5c2   : > { %6827 = vmatprep.subr.msk.mxu0 %vm598_vm0, %v8183_v47 }
 0x5c5   : > { %6828 = vmatpush3.xpose.msk.msra.mxu0 %vm598_vm0, %v8183_v47 }
 0x5c6   : > { %6829 = vmatprep.subr.msk.mxu0 %vm598_vm0, %v8189_v50 }
 0x5c9   : > { %6830 = vmatpush3.xpose.msk.msra.mxu0 %vm598_vm0, %v8189_v50 }
 0x5ca   : > { %6831 = vmatprep.subr.msk.mxu0 %vm598_vm0, %v8195_v53 }
 0x5cd   : > { %6832 = vmatpush3.xpose.msk.msra.mxu0 %vm598_vm0, %v8195_v53 }
 0x5ce   : > { %6855 = vmatprep.subr.mxu0 %v7709_v48 }
 0x5d0   : > { %6834 = vmatmul.mubr.msk.f32.vlgmr.msra.gmra.mxu0 %vm598_vm0, %v7928_v45  ;;  %v2016_v45 = vld [vmem:[#allocation3 + $0x220] sm:$0xff] }
 0x5d1   : > { %6871 = vmatprep.mubr.msk.f32.mxu0 %vm7710_vm1, %v7709_v48  ;;  %6856 = vmatpush3.msra.mxu0 %v2027_v56  ;;  %v2044_v56 = vld [vmem:[#allocation3 + $0x300] sm:$0xff] }
 0x5d2   : > { %6857 = vmatprep.subr.mxu0 %v7709_v48  ;;  %6843 = vmatpush3.msra.mxu1 %v2016_v45  ;;  %v2052_v45 = vld [vmem:[#allocation3 + $0x340] sm:$0xff] }
 0x5d3   : > { %6858 = vmatpush3.msra.mxu0 %v2026_v57  ;;  %6844 = vmatprep.subr.mxu1 %v7709_v48  ;;  %v2053_v57 = vld [vmem:[#allocation3 + $0x348] sm:$0xff] }
 0x5d4   : > { %6859 = vmatprep.subr.mxu0 %v7709_v48  ;;  %6845 = vmatpush3.msra.mxu1 %v2015_v26 }
 0x5d5   : > { %6860 = vmatpush3.msra.mxu0 %v2025_v59  ;;  %6846 = vmatprep.subr.mxu1 %v7709_v48 }
 0x5d6   : > { %6861 = vmatprep.subr.mxu0 %v7709_v48  ;;  %6847 = vmatpush3.msra.mxu1 %v2014_v37  ;;  %v2075_v37 = vld [vmem:[#allocation3 + $0x3f8] sm:$0xff] }
 0x5d7   : > { %6862 = vmatpush3.msra.mxu0 %v2024_v60  ;;  %6848 = vmatprep.subr.mxu1 %v7709_v48  ;;  %v2067_v60 = vld [vmem:[#allocation3 + $0x3b8] sm:$0xff] }
 0x5d8   : > { %6863 = vmatprep.subr.mxu0 %v7709_v48  ;;  %6849 = vmatpush3.msra.mxu1 %v2013_v38  ;;  %v2065_v38 = vld [vmem:[#allocation3 + $0x3a8] sm:$0xff] }
 0x5d9   : > { %6864 = vmatpush3.msra.mxu0 %v2023_v63  ;;  %6850 = vmatprep.subr.mxu1 %v7709_v48  ;;  %v2066_v63 = vld [vmem:[#allocation3 + $0x3b0] sm:$0xff] }
 0x5da   : > { %6865 = vmatprep.subr.mxu0 %v7709_v48  ;;  %6851 = vmatpush3.msra.mxu1 %v2012_v1  ;;  %v2064_v1 = vld [vmem:[#allocation3 + $0x3a0] sm:$0xff] }
 0x5db   : > { %6866 = vmatpush3.msra.mxu0 %v2022_v0  ;;  %6874 = vmatprep.subr.mxu1 %v7709_v48  ;;  %v2074_v0 = vld [vmem:[#allocation3 + $0x3f0] sm:$0xff] }
 0x5dc   : > { %6867 = vmatprep.subr.mxu0 %v7709_v48 }
 0x5dd   : > { %6868 = vmatpush3.msra.mxu0 %v2021_v2  ;;  %v2073_v2 = vld [vmem:[#allocation3 + $0x3e8] sm:$0xff] }
 0x5de   : > { %6869 = vmatprep.subr.mxu0 %v7709_v48 }
 0x5df   : > { %6870 = vmatpush3.msra.mxu0 %v2020_v44  ;;  %v2063_v44 = vld [vmem:[#allocation3 + $0x398] sm:$0xff] }
 0x5e0   : > { %6893 = vmatprep.subr.mxu0 %v7709_v48 }
 0x690   : > { %v6835_v5 = vpop.f32.mrf.mxu0 }
 0x691   : > { %1957 = vrot.lane.b32.xlu1 %v6835_v5, %s8968_s17  ;;  %v2072_v5 = vld [vmem:[#allocation3 + $0x3e0] sm:$0xff] }
 0x692   : > { %v1947_v6 = vpop.f32.mrf.mxu0 }
 0x703   : > { %v1958_v7 = vpop.permute.xlu1 %1957 }
 0x704   : > { %v8226_v8 = vsel %vm696_vm2, %v1947_v6, %v1958_v7  ;;  %v2062_v6 = vld [vmem:[#allocation3 + $0x390] sm:$0xff]  ;;  %v2071_v7 = vld [vmem:[#allocation3 + $0x3d8] sm:$0xff] }
 0x705   : > { %v1969_v9 = vrot.slane %v8226_v8, %v7959_v4  ;;  %v1962_v42 = vcombine.high %v8226_v8, %v8226_v8  ;;  %v2061_v8 = vld [vmem:[#allocation3 + $0x388] sm:$0xff] }
 0x707   : > { %v1977_v10 = vcombine.high %v1969_v9, %v1969_v9  ;;  %v1985_v13 = vrot.slane %v1969_v9, %v7959_v4  ;;  %v1976_v52 = vrot.slane %v1962_v42, %v7959_v4  ;;  %v2070_v9 = vld [vmem:[#allocation3 + $0x3d0] sm:$0xff] }
 0x709   : > { %v1999_v14 = vrot.slane %v1977_v10, %v7959_v4  ;;  %6853 = vmatmul.mubr.msk.f32.vlgmr.msra.gmra.mxu1 %vm812_vm3, %v1985_v13  ;;  %v2007_v30 = vcombine.high %v1985_v13, %v1985_v13  ;;  %v1978_v58 = vcombine.high %v1976_v52, %v1976_v52  ;;  %v1992_v59 = vrot.slane %v1976_v52, %v7959_v4  ;;  %v2060_v10 = vld [vmem:[#allocation3 + $0x380] sm:$0xff]  ;;  %v2069_v13 = vld [vmem:[#allocation3 + $0x3c8] sm:$0xff] }
 0x70a   : > { %6875 = vmatpush3.msra.mxu1 %v2035_v12  ;;  %6890 = vmatprep.mubr.msk.f32.mxu1 %vm7710_vm1, %v7709_v48 }
 0x70b   : > { %6876 = vmatprep.subr.mxu1 %v7709_v48  ;;  %6872 = vmatmul.mubr.msk.f32.vlgmr.msra.gmra.mxu0 %vm812_vm3, %v1999_v14  ;;  %v2009_v32 = vcombine.high %v1999_v14, %v1999_v14  ;;  %v2006_v26 = vrot.slane %v1978_v58, %v7959_v4  ;;  %v2008_v12 = vcombine.high %v1992_v59, %v1992_v59  ;;  %v2068_v14 = vld [vmem:[#allocation3 + $0x3c0] sm:$0xff] }
 0x70c   : > { %6877 = vmatpush3.msra.mxu1 %v2034_v15  ;;  %6894 = vmatpush3.msra.mxu0 %v2043_v16  ;;  %v6087_v16 = vld [vmem:[%s8944_s9 + $0x20] sm:$0xff] }
 0x70d   : > { %6878 = vmatprep.subr.mxu1 %v7709_v48  ;;  %6895 = vmatprep.subr.mxu0 %v7709_v48  ;;  %v2010_v15 = vcombine.high %v2006_v26, %v2006_v26  ;;  %v6113_v58 = vld [vmem:[%s8941_s6 + $0x40] sm:$0xff] }
 0x70e   : > { %6879 = vmatpush3.msra.mxu1 %v2033_v17  ;;  %6896 = vmatpush3.msra.mxu0 %v2042_v18 }
 0x70f   : > { %6880 = vmatprep.subr.mxu1 %v7709_v48  ;;  %6897 = vmatprep.subr.mxu0 %v7709_v48 }
 0x710   : > { %6881 = vmatpush3.msra.mxu1 %v2032_v19  ;;  %6898 = vmatpush3.msra.mxu0 %v2041_v20 }
 0x711   : > { %6882 = vmatprep.subr.mxu1 %v7709_v48  ;;  %6899 = vmatprep.subr.mxu0 %v7709_v48 }
 0x712   : > { %6883 = vmatpush3.msra.mxu1 %v2031_v21  ;;  %6900 = vmatpush3.msra.mxu0 %v2040_v22 }
 0x713   : > { %6884 = vmatprep.subr.mxu1 %v7709_v48  ;;  %6901 = vmatprep.subr.mxu0 %v7709_v48 }
 0x714   : > { %6885 = vmatpush3.msra.mxu1 %v2030_v23  ;;  %6902 = vmatpush3.msra.mxu0 %v2039_v24 }
 0x715   : > { %6886 = vmatprep.subr.mxu1 %v7709_v48  ;;  %6903 = vmatprep.subr.mxu0 %v7709_v48 }
 0x716   : > { %6887 = vmatpush3.msra.mxu1 %v2029_v25  ;;  %6904 = vmatpush3.msra.mxu0 %v2038_v27 }
 0x717   : > { %6888 = vmatprep.subr.mxu1 %v7709_v48  ;;  %6905 = vmatprep.subr.mxu0 %v7709_v48 }
 0x718   : > { %6889 = vmatpush3.msra.mxu1 %v2028_v28  ;;  %6906 = vmatpush3.msra.mxu0 %v2037_v29 }
 0x719   : > { %6891 = vmatmul.mubr.msk.f32.vlgmr.msra.gmra.mxu1 %vm812_vm3, %v2007_v30  ;;  %6907 = vmatprep.subr.mxu0 %v7709_v48 }
 0x71a   : > { %6912 = vmatprep.subr.mxu1 %v7709_v48  ;;  %6908 = vmatpush3.msra.mxu0 %v2036_v31 }
 0x71b   : > { %6909 = vmatprep.mubr.msk.f32.mxu0 %vm7710_vm1, %v7709_v48  ;;  %6913 = vmatpush3.msra.mxu1 %v2051_v11 }
 0x71c   : > { %6910 = vmatmul.mubr.msk.f32.vlgmr.msra.gmra.mxu0 %vm812_vm3, %v2009_v32  ;;  %6914 = vmatprep.subr.mxu1 %v7709_v48 }
 0x71d   : > { %6931 = vmatprep.subr.mxu0 %v7709_v48  ;;  %6915 = vmatpush3.msra.mxu1 %v2050_v33 }
 0x71e   : > { %6932 = vmatpush3.msra.mxu0 %v2059_v34  ;;  %6916 = vmatprep.subr.mxu1 %v7709_v48 }
 0x71f   : > { %6933 = vmatprep.subr.mxu0 %v7709_v48  ;;  %6917 = vmatpush3.msra.mxu1 %v2049_v35 }
 0x720   : > { %6934 = vmatpush3.msra.mxu0 %v2058_v36  ;;  %6918 = vmatprep.subr.mxu1 %v7709_v48 }
 0x721   : > { %6935 = vmatprep.subr.mxu0 %v7709_v48  ;;  %6919 = vmatpush3.msra.mxu1 %v2048_v39 }
 0x722   : > { %6936 = vmatpush3.msra.mxu0 %v2057_v41  ;;  %6920 = vmatprep.subr.mxu1 %v7709_v48 }
 0x723   : > { %6937 = vmatprep.subr.mxu0 %v7709_v48  ;;  %6921 = vmatpush3.msra.mxu1 %v2047_v43 }
 0x724   : > { %6938 = vmatpush3.msra.mxu0 %v2056_v46  ;;  %6922 = vmatprep.subr.mxu1 %v7709_v48 }
 0x725   : > { %6939 = vmatprep.subr.mxu0 %v7709_v48  ;;  %6923 = vmatpush3.msra.mxu1 %v2046_v49 }
 0x726   : > { %6940 = vmatpush3.msra.mxu0 %v2055_v51  ;;  %6924 = vmatprep.subr.mxu1 %v7709_v48 }
 0x727   : > { %6941 = vmatprep.subr.mxu0 %v7709_v48  ;;  %6925 = vmatpush3.msra.mxu1 %v2045_v54  ;;  %v6082_v54 = vld [vmem:[%s8943_s8 + $0x38] sm:$0xff] }
 0x728   : > { %6942 = vmatpush3.msra.mxu0 %v2054_v55  ;;  %6926 = vmatprep.subr.mxu1 %v7709_v48  ;;  %v6116_v55 = vld [vmem:[%s8941_s6 + $0x58] sm:$0xff] }
 0x729   : > { %6943 = vmatprep.subr.mxu0 %v7709_v48  ;;  %6927 = vmatpush3.msra.mxu1 %v2044_v56  ;;  %v6115_v56 = vld [vmem:[%s8941_s6 + $0x50] sm:$0xff] }
 0x72a   : > { %6928 = vmatprep.mubr.msk.f32.mxu1 %vm7710_vm1, %v7709_v48  ;;  %6944 = vmatpush3.msra.mxu0 %v2053_v57  ;;  %v6114_v57 = vld [vmem:[%s8941_s6 + $0x48] sm:$0xff] }
 0x72b   : > { %6929 = vmatmul.mubr.msk.f32.vlgmr.msra.gmra.mxu1 %vm812_vm3, %v1992_v59  ;;  %6945 = vmatprep.subr.mxu0 %v7709_v48  ;;  %v6128_v59 = vld [vmem:[%s8943_s8 + $0x58] sm:$0xff] }
 0x72c   : > { %6950 = vmatprep.subr.mxu1 %v7709_v48  ;;  %6946 = vmatpush3.msra.mxu0 %v2052_v45  ;;  %v6140_v45 = vld [vmem:[%s8945_s10 + $0x58] sm:$0xff] }
 0x72d   : > { %6947 = vmatprep.mubr.msk.f32.mxu0 %vm7710_vm1, %v7709_v48  ;;  %6951 = vmatpush3.msra.mxu1 %v2067_v60  ;;  %v6127_v60 = vld [vmem:[%s8943_s8 + $0x50] sm:$0xff] }
 0x72e   : > { %6948 = vmatmul.mubr.msk.f32.vlgmr.msra.gmra.mxu0 %vm812_vm3, %v2006_v26  ;;  %6952 = vmatprep.subr.mxu1 %v7709_v48  ;;  %v6139_v26 = vld [vmem:[%s8945_s10 + $0x50] sm:$0xff] }
 0x72f   : > { %6969 = vmatprep.subr.mxu0 %v7709_v48  ;;  %6953 = vmatpush3.msra.mxu1 %v2066_v63  ;;  %v6126_v63 = vld [vmem:[%s8943_s8 + $0x48] sm:$0xff] }
 0x730   : > { %6970 = vmatpush3.msra.mxu0 %v2075_v37  ;;  %6954 = vmatprep.subr.mxu1 %v7709_v48  ;;  %v6125_v37 = vld [vmem:[%s8943_s8 + $0x40] sm:$0xff] }
 0x731   : > { %6971 = vmatprep.subr.mxu0 %v7709_v48  ;;  %6955 = vmatpush3.msra.mxu1 %v2065_v38  ;;  %v6137_v38 = vld [vmem:[%s8945_s10 + $0x40] sm:$0xff] }
 0x732   : > { %6972 = vmatpush3.msra.mxu0 %v2074_v0  ;;  %6956 = vmatprep.subr.mxu1 %v7709_v48 }
 0x733   : > { %6973 = vmatprep.subr.mxu0 %v7709_v48  ;;  %6957 = vmatpush3.msra.mxu1 %v2064_v1 }
 0x734   : > { %6974 = vmatpush3.msra.mxu0 %v2073_v2  ;;  %6958 = vmatprep.subr.mxu1 %v7709_v48 }
 0x735   : > { %6975 = vmatprep.subr.mxu0 %v7709_v48  ;;  %6959 = vmatpush3.msra.mxu1 %v2063_v44 }
 0x736   : > { %6976 = vmatpush3.msra.mxu0 %v2072_v5  ;;  %6960 = vmatprep.subr.mxu1 %v7709_v48  ;;  %v6075_v5 = vld [vmem:[%s8942_s7 + $0x20] sm:$0xff] }
 0x737   : > { %6977 = vmatprep.subr.mxu0 %v7709_v48  ;;  %6961 = vmatpush3.msra.mxu1 %v2062_v6  ;;  %v2701_v6 = vpop.permute.xlu0 %2700 }
 0x738   : > { %6978 = vmatpush3.msra.mxu0 %v2071_v7  ;;  %6962 = vmatprep.subr.mxu1 %v7709_v48 }
 0x739   : > { %6979 = vmatprep.subr.mxu0 %v7709_v48  ;;  %6963 = vmatpush3.msra.mxu1 %v2061_v8 }
 0x73a   : > { %6980 = vmatpush3.msra.mxu0 %v2070_v9  ;;  %6964 = vmatprep.subr.mxu1 %v7709_v48 }
 0x73b   : > { %6981 = vmatprep.subr.mxu0 %v7709_v48  ;;  %6965 = vmatpush3.msra.mxu1 %v2060_v10  ;;  %v2696_v7 = vpop.permute.xlu0 %2695 }
 0x73c   : > { %6966 = vmatprep.mubr.msk.f32.mxu1 %vm7710_vm1, %v7709_v48  ;;  %6982 = vmatpush3.msra.mxu0 %v2069_v13 }
 0x73d   : > { %6967 = vmatmul.mubr.msk.f32.vlgmr.msra.gmra.mxu1 %vm812_vm3, %v2008_v12  ;;  %6983 = vmatprep.subr.mxu0 %v7709_v48 }
 0x73e   : > { %6984 = vmatpush3.msra.mxu0 %v2068_v14  ;;  %6985 = vmatprep.mubr.msk.f32.mxu0 %vm7710_vm1, %v7709_v48 }
 0x73f   : > { %6986 = vmatmul.mubr.msk.f32.vlgmr.msra.gmra.mxu0 %vm812_vm3, %v2010_v15  ;;  %7012 = vmatprep.subr.mxu0 %v8179_v40  ;;  %v2691_v8 = vpop.permute.xlu0 %2690 }
 0x740   : > { %7013 = vmatpush3.msra.mxu0 %v8179_v40  ;;  %7020 = vmatprep.mubr.msk.f32.mxu0 %vm696_vm2, %v6087_v16  ;;  %v6088_v40 = vld [vmem:[%s8944_s9 + $0x28] sm:$0xff] }
 0x741   : > { %7014 = vmatprep.subr.mxu0 %v8183_v47  ;;  %6988 = vmatprep.subr.mxu1 %v8085_v61 }
 0x742   : > { %7015 = vmatpush3.msra.mxu0 %v8183_v47  ;;  %6989 = vmatpush3.msra.mxu1 %v8085_v61  ;;  %v6089_v47 = vld [vmem:[%s8944_s9 + $0x30] sm:$0xff]  ;;  %v6090_v61 = vld [vmem:[%s8944_s9 + $0x38] sm:$0xff] }
 0x743   : > { %7016 = vmatprep.subr.mxu0 %v8189_v50  ;;  %6990 = vmatprep.subr.mxu1 %v8091_v62  ;;  %v2686_v12 = vpop.permute.xlu0 %2685 }
 0x744   : > { %7017 = vmatpush3.msra.mxu0 %v8189_v50  ;;  %6991 = vmatpush3.msra.mxu1 %v8091_v62 }
 0x745   : > { %7018 = vmatprep.subr.mxu0 %v8195_v53 }
 0x746   : > { %7019 = vmatpush3.msra.mxu0 %v8195_v53 }
 0x747   : > { %7021 = vmatmul.mubr.msk.f32.vlgmr.msra.gmra.mxu0 %vm696_vm2, %v6088_v40  ;;  %7037 = vmatprep.subr.mxu0 %v7709_v48 }
 0x748   : > { %7023 = vmatprep.mubr.msk.f32.mxu0 %vm696_vm2, %v6089_v47 }
 0x74b   : > { %7024 = vmatmul.mubr.msk.f32.gmra.mxu0 %vm696_vm2, %v6090_v61 }
 0x74c   : > { %7053 = vmatprep.mubr.msk.f32.mxu0 %vm7710_vm1, %v7709_v48 }
 0x7c9   : > { %v2144_v62 = vpop.f32.mrf.mxu1 }
 0x7cb   : > { %v6854_v50 = vpop.f32.mrf.mxu1  ;;  %v2216_v17 = vpop.f32.mrf.mxu0 }
 0x7cc   : > { %v2660_v27 = vrot.slane %v2216_v17, 7 }
 0x7cd   : > { %v6873_v18 = vpop.f32.mrf.mxu0 }
 0x7ce   : > { %v2661_v29 = vsel %vm1398_vm4, %v2660_v27, %v2144_v62 }
 0x7d9   : > { %v2288_v53 = vpop.f32.mrf.mxu1 }
 0x7da   : > { %v2662_v28 = vrot.slane %v2288_v53, 6 }
 0x7db   : > { %v6892_v19 = vpop.f32.mrf.mxu1 }
 0x7dc   : > { %v2360_v20 = vpop.f32.mrf.mxu0  ;;  %v2663_v31 = vsel %vm1401_vm5, %v2662_v28, %v2661_v29 }
 0x7dd   : > { %v2664_v30 = vrot.slane %v2360_v20, 5 }
 0x7de   : > { %v6911_v21 = vpop.f32.mrf.mxu0 }
 0x7df   : > { %v2665_v32 = vsel %vm1404_vm6, %v2664_v30, %v2663_v31 }
 0x7eb   : > { %v2432_v22 = vpop.f32.mrf.mxu1 }
 0x7ec   : > { %v2666_v11 = vrot.slane %v2432_v22, 4 }
 0x7ed   : > { %v6930_v23 = vpop.f32.mrf.mxu1 }
 0x7ee   : > { %v2504_v24 = vpop.f32.mrf.mxu0  ;;  %v2667_v34 = vsel %vm1407_vm7, %v2666_v11, %v2665_v32 }
 0x7ef   : > { %v2668_v33 = vrot.slane %v2504_v24, 3 }
 0x7f0   : > { %v6949_v25 = vpop.f32.mrf.mxu0 }
 0x7f1   : > { %v2669_v39 = vsel %vm1410_vm8, %v2668_v33, %v2667_v34  ;;  %v6076_v33 = vld [vmem:[%s8942_s7 + $0x28] sm:$0xff]  ;;  %v6077_v34 = vld [vmem:[%s8942_s7 + $0x30] sm:$0xff] }
 0x7fd   : > { %v2576_v35 = vpop.f32.mrf.mxu1 }
 0x7fe   : > { %v2670_v36 = vrot.slane %v2576_v35, 2  ;;  %v6078_v35 = vld [vmem:[%s8942_s7 + $0x38] sm:$0xff] }
 0x7ff   : > { %v6968_v41 = vpop.f32.mrf.mxu1  ;;  %v2648_v42 = vpop.f32.mrf.mxu0 }
 0x800   : > { %v2672_v43 = vrot.slane %v2648_v42, 1  ;;  %v2671_v46 = vsel %vm1413_vm9, %v2670_v36, %v2669_v39  ;;  %v8401_v36 = vld [vmem:[%s8936_s1] sm:$0xff]  ;;  %v3007_v39 = vpop.permute.xlu0 %3006 }
 0x801   : > { %v6987_v49 = vpop.f32.mrf.mxu0 }
 0x802   : > { %v2673_v51 = vsel %vm1416_vm10, %v2672_v43, %v2671_v46 }
 0x803   : > { %2675 = vrot.lane.b32.xlu1 %v2673_v51, %s8969_s27 }
 0x804   : > { %v2875_v41 = vpop.permute.xlu0 %2874 }
 0x807   : > { %v7022_v46 = vpop.f32.mrf.mxu0 }
 0x808   : > { %v3002_v42 = vpop.permute.xlu0 %3001 }
 0x80c   : > { %v2870_v43 = vpop.permute.xlu0 %2869 }
 0x810   : > { %v2997_v49 = vpop.permute.xlu0 %2996 }
 0x82c   : > { %2703 = vxpose.xlu1.b32.start [1/2] (short) (narrow) %v2673_v51, 32  ;;  %v3087_v51 = vpop.f32.mrf.mxu0 }
 0x875   : > { %v2676_v52 = vpop.permute.xlu1 %2675 }
 0x876   : > { %2704 = vxpose.xlu1.b32.end [2/2] (short) (narrow) %v2676_v52, 32  ;;  %v2865_v52 = vpop.permute.xlu0 %2864 }
 0x89c   : > { %2879 = vperm.xlu1 %7535, %v6082_v54  }
 0x8a0   : > { %3961 = vperm.xlu1 %7535, %v6116_v55   ;;  %v7025_v55 = vpop.f32.mrf.mxu0 }
 0x8a4   : > { %3956 = vperm.xlu1 %7535, %v6115_v56  }
 0x8a8   : > { %3951 = vperm.xlu1 %7535, %v6114_v57  }
 0x8ac   : > { %3946 = vperm.xlu1 %7535, %v6113_v58   ;;  %v3093_v58 = vadd.f32 %v7022_v46, %v2997_v49  ;;  %v3281_v46 = vld [vmem:[#allocation3 + $0x440] sm:$0xff] }
 0x8b0   : > { %4140 = vperm.xlu1 %7535, %v6128_v59  }
 0x8b4   : > { %4267 = vperm.xlu1 %7535, %v6140_v45  }
 0x8b8   : > { %4135 = vperm.xlu1 %7535, %v6127_v60   ;;  %v3103_v60 = vadd.f32 %v7025_v55, %v3007_v39  ;;  %v3274_v39 = vld [vmem:[#allocation3 + $0x408] sm:$0xff] }
 0x8bc   : > { %4262 = vperm.xlu1 %7535, %v6139_v26   ;;  %v3097_v26 = vpop.f32.mrf.mxu0 }
 0x8c0   : > { %4130 = vperm.xlu1 %7535, %v6126_v63  }
 0x8c4   : > { %4125 = vperm.xlu1 %7535, %v6125_v37  }
 0x8c8   : > { %4252 = vperm.xlu1 %7535, %v6137_v38  }
 0x8ee   : > { %v2719_v0 = vpop.trf.xlu1 }
 0x8ef   : > { %6992 = vmatprep.mubr.msk.f32.mxu1 %vm598_vm0, %v2719_v0  ;;  %v2992_v0 = vpop.permute.xlu0 %2991 }
 0x8f2   : > { %v2720_v1 = vpop.trf.xlu1 }
 0x8f3   : > { %6993 = vmatmul.mubr.msk.f32.vlgmr.msra.gmra.mxu1 %vm598_vm0, %v2720_v1 }
 0x8f6   : > { %v2721_v2 = vpop.trf.xlu1 }
 0x8f7   : > { %6995 = vmatprep.mubr.msk.f32.mxu1 %vm598_vm0, %v2721_v2  ;;  %v3088_v2 = vadd.f32 %v3087_v51, %v2992_v0  ;;  %v3292_v0 = vld [vmem:[#allocation3 + $0x498] sm:$0xff] }
 0x8fa   : > { %v2722_v44 = vpop.trf.xlu1 }
 0x8fb   : > { %6996 = vmatmul.mubr.msk.f32.gmra.mxu1 %vm598_vm0, %v2722_v44 }
 0x8fc   : > { %7006 = vmatprep.mubr.msk.f32.mxu1 %vm696_vm2, %v6075_v5  ;;  %v3098_v5 = vadd.f32 %v3097_v26, %v3002_v42  ;;  %v3273_v42 = vld [vmem:[#allocation3 + $0x400] sm:$0xff]  ;;  %v3294_v26 = vld [vmem:[#allocation3 + $0x4a8] sm:$0xff] }
 0x917   : > { %v2880_v59 = vpop.permute.xlu1 %2879 }
 0x9b3   : > { %v6994_v9 = vpop.f32.mrf.mxu1 }
 0x9b4   : > { %v2819_v13 = vadd.f32 %v6994_v9, %v2691_v8 }
 0x9b5   : > { %v2813_v10 = vpop.f32.mrf.mxu1 }
 0x9b6   : > { %v2814_v14 = vadd.f32 %v2813_v10, %v2686_v12  ;;  %v2837_v15 = vmul.f32 0.70710677, %v2819_v13  ;;  %v2833_v28 = vmul.f32 0.5, %v2819_v13 }
 0x9b8   : > { %v2836_v47 = vmul.f32 0.70710677, %v2814_v14  ;;  %7552 = verf.f32 %v2837_v15  ;;  %v2832_v31 = vmul.f32 0.5, %v2814_v14 }
 0x9bb   : > { %v6997_v16 = vpop.f32.mrf.mxu1 }
 0x9bc   : > { %v2829_v40 = vadd.f32 %v6997_v16, %v2701_v6 }
 0x9bd   : > { %v2823_v61 = vpop.f32.mrf.mxu1 }
 0x9be   : > { %v2839_v62 = vmul.f32 0.70710677, %v2829_v40  ;;  %v2824_v50 = vadd.f32 %v2823_v61, %v2696_v7  ;;  %v2835_v20 = vmul.f32 0.5, %v2829_v40 }
 0x9c0   : > { %7554 = verf.f32 %v2839_v62  ;;  %v2838_v17 = vmul.f32 0.70710677, %v2824_v50  ;;  %v2834_v23 = vmul.f32 0.5, %v2824_v50 }
 0x9c1   : > { %7556 = verf.f32 %v2836_v47 }
 0x9c2   : > { %7558 = verf.f32 %v2838_v17 }
 0x9c5   : > { %v7553_v18 = vpop.eup %7552 }
 0x9c6   : > { %v2845_v27 = vadd.f32 1.0, %v7553_v18 }
 0x9c8   : > { %v2849_v11 = vmul.f32 %v2845_v27, %v2833_v28  ;;  %v3279_v27 = vld [vmem:[#allocation3 + $0x430] sm:$0xff]  ;;  %v3288_v28 = vld [vmem:[#allocation3 + $0x478] sm:$0xff] }
 0x9cd   : > { %v7555_v53 = vpop.eup %7554 }
 0x9ce   : > { %v7557_v19 = vpop.eup %7556  ;;  %v2847_v21 = vadd.f32 1.0, %v7555_v53 }
 0x9cf   : > { %v7559_v22 = vpop.eup %7558  ;;  %v2844_v30 = vadd.f32 1.0, %v7557_v19 }
 0x9d0   : > { %v2851_v24 = vmul.f32 %v2847_v21, %v2835_v20  ;;  %v2846_v25 = vadd.f32 1.0, %v7559_v22 }
 0x9d1   : > { %v2848_v32 = vmul.f32 %v2844_v30, %v2832_v31  ;;  %v3278_v30 = vld [vmem:[#allocation3 + $0x428] sm:$0xff] }
 0x9d2   : > { %6998 = vmatprep.subr.mxu1 %v2851_v24  ;;  %v2850_v29 = vmul.f32 %v2846_v25, %v2834_v23  ;;  %v3280_v25 = vld [vmem:[#allocation3 + $0x438] sm:$0xff]  ;;  %v3286_v31 = vld [vmem:[#allocation3 + $0x468] sm:$0xff] }
 0x9d3   : > { %6999 = vmatpush3.msra.mxu1 %v2851_v24  ;;  %v8433_v24 = vld [vmem:[%s8936_s1 + $0x8] sm:$0xff]  ;;  %7038 = vmatpush3.msra.mxu0 %v3280_v25 }
 0x9d4   : > { %7000 = vmatprep.subr.mxu1 %v2850_v29  ;;  %7039 = vmatprep.subr.mxu0 %v7709_v48  ;;  %v3306_v25 = vld [vmem:[#allocation3 + $0x508] sm:$0xff] }
 0x9d5   : > { %7001 = vmatpush3.msra.mxu1 %v2850_v29  ;;  %v3287_v29 = vld [vmem:[#allocation3 + $0x470] sm:$0xff]  ;;  %7040 = vmatpush3.msra.mxu0 %v3279_v27 }
 0x9d6   : > { %7002 = vmatprep.subr.mxu1 %v2849_v11  ;;  %7041 = vmatprep.subr.mxu0 %v7709_v48  ;;  %v3315_v27 = vld [vmem:[#allocation3 + $0x550] sm:$0xff] }
 0x9d7   : > { %7003 = vmatpush3.msra.mxu1 %v2849_v11  ;;  %v3277_v11 = vld [vmem:[#allocation3 + $0x420] sm:$0xff]  ;;  %7042 = vmatpush3.msra.mxu0 %v3278_v30 }
 0x9d8   : > { %7004 = vmatprep.subr.mxu1 %v2848_v32  ;;  %7043 = vmatprep.subr.mxu0 %v7709_v48 }
 0x9d9   : > { %7005 = vmatpush3.msra.mxu1 %v2848_v32  ;;  %v3285_v32 = vld [vmem:[#allocation3 + $0x460] sm:$0xff]  ;;  %7044 = vmatpush3.msra.mxu0 %v3277_v11 }
 0x9da   : > { %7007 = vmatmul.mubr.msk.f32.vlgmr.msra.gmra.mxu1 %vm696_vm2, %v6076_v33  ;;  %v3276_v33 = vld [vmem:[#allocation3 + $0x418] sm:$0xff]  ;;  %7045 = vmatprep.subr.mxu0 %v7709_v48  ;;  %v3313_v11 = vld [vmem:[#allocation3 + $0x540] sm:$0xff] }
 0x9db   : > { %7009 = vmatprep.mubr.msk.f32.mxu1 %vm696_vm2, %v6077_v34  ;;  %v3284_v34 = vld [vmem:[#allocation3 + $0x458] sm:$0xff]  ;;  %7046 = vmatpush3.msra.mxu0 %v3276_v33 }
 0x9dc   : > { %7047 = vmatprep.subr.mxu0 %v7709_v48 }
 0x9de   : > { %7010 = vmatmul.mubr.msk.f32.gmra.mxu1 %vm696_vm2, %v6078_v35  ;;  %v3275_v35 = vld [vmem:[#allocation3 + $0x410] sm:$0xff] }
 0x9df   : > { %7034 = vmatprep.mubr.msk.f32.mxu1 %vm598_vm0, %v8401_v36  ;;  %7048 = vmatpush3.msra.mxu0 %v3275_v35  ;;  %v3336_v35 = vld [vmem:[#allocation3 + $0x5f8] sm:$0xff] }
 0x9e0   : > { %7049 = vmatprep.subr.mxu0 %v7709_v48 }
 0x9e1   : > { %7050 = vmatpush3.msra.mxu0 %v3274_v39  ;;  %v3326_v39 = vld [vmem:[#allocation3 + $0x5a8] sm:$0xff] }
 0x9e2   : > { %7051 = vmatprep.subr.mxu0 %v7709_v48 }
 0x9e3   : > { %7052 = vmatpush3.msra.mxu0 %v3273_v42  ;;  %v3325_v42 = vld [vmem:[#allocation3 + $0x5a0] sm:$0xff] }
 0x9e4   : > { %7075 = vmatprep.subr.mxu0 %v7709_v48 }
 0xa9a   : > { %v7008_v54 = vpop.f32.mrf.mxu1 }
 0xa9b   : > { %v2966_v56 = vadd.f32 %v7008_v54, %v2870_v43  ;;  %v3282_v43 = vld [vmem:[#allocation3 + $0x448] sm:$0xff] }
 0xa9c   : > { %v2960_v57 = vpop.f32.mrf.mxu1 }
 0xa9d   : > { %v3107_v63 = vadd.f32 %v3093_v58, %v2966_v56  ;;  %v2961_v37 = vadd.f32 %v2960_v57, %v2865_v52  ;;  %v3296_v58 = vld [vmem:[#allocation3 + $0x4b8] sm:$0xff] }
 0xa9e   : > { %v7011_v45 = vpop.f32.mrf.mxu1 }
 0xa9f   : > { %v2976_v38 = vadd.f32 %v7011_v45, %v2880_v59  ;;  %v3115_v7 = vmul.f32 0.70710677, %v3107_v63  ;;  %v3106_v8 = vadd.f32 %v3088_v2, %v2961_v37  ;;  %v3111_v19 = vmul.f32 0.5, %v3107_v63  ;;  %v3295_v45 = vld [vmem:[#allocation3 + $0x4b0] sm:$0xff]  ;;  %v3293_v37 = vld [vmem:[#allocation3 + $0x4a0] sm:$0xff] }
 0xaa0   : > { %v2970_v1 = vpop.f32.mrf.mxu1  ;;  %v3303_v63 = vld [vmem:[#allocation3 + $0x4f0] sm:$0xff] }
 0xaa1   : > { %v3109_v44 = vadd.f32 %v3103_v60, %v2976_v38  ;;  %v2971_v6 = vadd.f32 %v2970_v1, %v2875_v41  ;;  %v3114_v12 = vmul.f32 0.70710677, %v3106_v8  ;;  %v3110_v22 = vmul.f32 0.5, %v3106_v8  ;;  %v3283_v41 = vld [vmem:[#allocation3 + $0x450] sm:$0xff]  ;;  %v3304_v60 = vld [vmem:[#allocation3 + $0x4f8] sm:$0xff]  ;;  %v3302_v38 = vld [vmem:[#allocation3 + $0x4e8] sm:$0xff] }
 0xaa2   : > { %v3301_v1 = vld [vmem:[#allocation3 + $0x4e0] sm:$0xff]  ;;  %v3291_v2 = vld [vmem:[#allocation3 + $0x490] sm:$0xff]  ;;  %v3298_v8 = vld [vmem:[#allocation3 + $0x4c8] sm:$0xff] }
 0xaa3   : > { %v3117_v9 = vmul.f32 0.70710677, %v3109_v44  ;;  %v3108_v10 = vadd.f32 %v3098_v5, %v2971_v6  ;;  %v3113_v15 = vmul.f32 0.5, %v3109_v44  ;;  %v3300_v44 = vld [vmem:[#allocation3 + $0x4d8] sm:$0xff]  ;;  %v3290_v5 = vld [vmem:[#allocation3 + $0x488] sm:$0xff]  ;;  %v3299_v6 = vld [vmem:[#allocation3 + $0x4d0] sm:$0xff] }
 0xaa5   : > { %7560 = verf.f32 %v3117_v9  ;;  %v3116_v13 = vmul.f32 0.70710677, %v3108_v10  ;;  %v3112_v62 = vmul.f32 0.5, %v3108_v10  ;;  %v3297_v10 = vld [vmem:[#allocation3 + $0x4c0] sm:$0xff] }
 0xaa6   : > { %7562 = verf.f32 %v3115_v7  ;;  %v3289_v7 = vld [vmem:[#allocation3 + $0x480] sm:$0xff] }
 0xaa7   : > { %7564 = verf.f32 %v3116_v13  ;;  %v3312_v13 = vld [vmem:[#allocation3 + $0x538] sm:$0xff] }
 0xaa8   : > { %7566 = verf.f32 %v3114_v12 }
 0xab2   : > { %v7561_v14 = vpop.eup %7560 }
 0xab3   : > { %v3125_v16 = vadd.f32 1.0, %v7561_v14  ;;  %v7563_v40 = vpop.eup %7562  ;;  %v3311_v14 = vld [vmem:[#allocation3 + $0x530] sm:$0xff] }
 0xab4   : > { %v7565_v47 = vpop.eup %7564  ;;  %v3123_v17 = vadd.f32 1.0, %v7563_v40  ;;  %v3319_v40 = vld [vmem:[#allocation3 + $0x570] sm:$0xff] }
 0xab5   : > { %v8405_v61 = vmul.f32 %v3125_v16, %v3113_v15  ;;  %v3124_v50 = vadd.f32 1.0, %v7565_v47  ;;  %v7567_v18 = vpop.eup %7566  ;;  %v3320_v15 = vld [vmem:[#allocation3 + $0x578] sm:$0xff]  ;;  %v3310_v16 = vld [vmem:[#allocation3 + $0x528] sm:$0xff]  ;;  %v3309_v47 = vld [vmem:[#allocation3 + $0x520] sm:$0xff] }
 0xab6   : > { %v8415_v20 = vmul.f32 %v3123_v17, %v3111_v19  ;;  %v3122_v21 = vadd.f32 1.0, %v7567_v18  ;;  %v3308_v17 = vld [vmem:[#allocation3 + $0x518] sm:$0xff]  ;;  %v3317_v18 = vld [vmem:[#allocation3 + $0x560] sm:$0xff]  ;;  %v3307_v19 = vld [vmem:[#allocation3 + $0x510] sm:$0xff] }
 0xab7   : > { %7026 = vmatprep.subr.msk.mxu1 %vm598_vm0, %v8405_v61  ;;  %v8409_v53 = vmul.f32 %v3124_v50, %v3112_v62  ;;  %v3318_v62 = vld [vmem:[#allocation3 + $0x568] sm:$0xff] }
 0xab8   : > { %7027 = vmatpush3.xpose.msk.msra.mxu1 %vm598_vm0, %v8405_v61  ;;  %v8421_v23 = vmul.f32 %v3122_v21, %v3110_v22  ;;  %v3316_v21 = vld [vmem:[#allocation3 + $0x558] sm:$0xff] }
 0xab9   : > { %7028 = vmatprep.subr.msk.mxu1 %vm598_vm0, %v8409_v53 }
 0xabc   : > { %7029 = vmatpush3.xpose.msk.msra.mxu1 %vm598_vm0, %v8409_v53 }
 0xabd   : > { %7030 = vmatprep.subr.msk.mxu1 %vm598_vm0, %v8415_v20 }
 0xac0   : > { %7031 = vmatpush3.xpose.msk.msra.mxu1 %vm598_vm0, %v8415_v20 }
 0xac1   : > { %7032 = vmatprep.subr.msk.mxu1 %vm598_vm0, %v8421_v23 }
 0xac4   : > { %7033 = vmatpush3.xpose.msk.msra.mxu1 %vm598_vm0, %v8421_v23 }
 0xac5   : > { %7056 = vmatprep.subr.mxu1 %v7709_v48 }
 0xac7   : > { %7035 = vmatmul.mubr.msk.f32.vlgmr.msra.gmra.mxu1 %vm598_vm0, %v8433_v24 }
 0xac8   : > { %7072 = vmatprep.mubr.msk.f32.mxu1 %vm7710_vm1, %v7709_v48  ;;  %7057 = vmatpush3.msra.mxu1 %v3288_v28  ;;  %v3305_v28 = vld [vmem:[#allocation3 + $0x500] sm:$0xff] }
 0xac9   : > { %7058 = vmatprep.subr.mxu1 %v7709_v48 }
 0xaca   : > { %7059 = vmatpush3.msra.mxu1 %v3287_v29  ;;  %v3314_v29 = vld [vmem:[#allocation3 + $0x548] sm:$0xff] }
 0xacb   : > { %7060 = vmatprep.subr.mxu1 %v7709_v48 }
 0xacc   : > { %7061 = vmatpush3.msra.mxu1 %v3286_v31 }
 0xacd   : > { %7062 = vmatprep.subr.mxu1 %v7709_v48 }
 0xace   : > { %7063 = vmatpush3.msra.mxu1 %v3285_v32  ;;  %v3328_v32 = vld [vmem:[#allocation3 + $0x5b8] sm:$0xff] }
 0xacf   : > { %7064 = vmatprep.subr.mxu1 %v7709_v48 }
 0xad0   : > { %7065 = vmatpush3.msra.mxu1 %v3284_v34  ;;  %v3327_v34 = vld [vmem:[#allocation3 + $0x5b0] sm:$0xff] }
 0xad1   : > { %7066 = vmatprep.subr.mxu1 %v7709_v48 }
 0xad2   : > { %7067 = vmatpush3.msra.mxu1 %v3283_v41  ;;  %v3335_v41 = vld [vmem:[#allocation3 + $0x5f0] sm:$0xff] }
 0xad3   : > { %7068 = vmatprep.subr.mxu1 %v7709_v48 }
 0xad4   : > { %7069 = vmatpush3.msra.mxu1 %v3282_v43  ;;  %v3334_v43 = vld [vmem:[#allocation3 + $0x5e8] sm:$0xff] }
 0xad5   : > { %7070 = vmatprep.subr.mxu1 %v7709_v48 }
 0xad6   : > { %7071 = vmatpush3.msra.mxu1 %v3281_v46  ;;  %v3324_v46 = vld [vmem:[#allocation3 + $0x598] sm:$0xff] }
 0xad7   : > { %7094 = vmatprep.subr.mxu1 %v7709_v48 }
 0xb87   : > { %v7036_v49 = vpop.f32.mrf.mxu1 }
 0xb88   : > { %3218 = vrot.lane.b32.xlu0 %v7036_v49, %s8968_s17  ;;  %v3333_v49 = vld [vmem:[#allocation3 + $0x5e0] sm:$0xff] }
 0xb89   : > { %v3208_v51 = vpop.f32.mrf.mxu1 }
 0xbfa   : > { %v3219_v52 = vpop.permute.xlu0 %3218 }
 0xbfb   : > { %v8457_v54 = vsel %vm696_vm2, %v3208_v51, %v3219_v52  ;;  %v3323_v51 = vld [vmem:[#allocation3 + $0x590] sm:$0xff]  ;;  %v3332_v52 = vld [vmem:[#allocation3 + $0x5d8] sm:$0xff] }
 0xbfc   : > { %v3230_v55 = vrot.slane %v8457_v54, %v7959_v4  ;;  %v3223_v50 = vcombine.high %v8457_v54, %v8457_v54  ;;  %v3322_v54 = vld [vmem:[#allocation3 + $0x588] sm:$0xff] }
 0xbfe   : > { %v3238_v56 = vcombine.high %v3230_v55, %v3230_v55  ;;  %v3246_v57 = vrot.slane %v3230_v55, %v7959_v4  ;;  %v3237_v22 = vrot.slane %v3223_v50, %v7959_v4  ;;  %v3331_v55 = vld [vmem:[#allocation3 + $0x5d0] sm:$0xff] }
 0xc00   : > { %v3260_v59 = vrot.slane %v3238_v56, %v7959_v4  ;;  %7054 = vmatmul.mubr.msk.f32.vlgmr.msra.gmra.mxu0 %vm812_vm3, %v3246_v57  ;;  %v3268_v9 = vcombine.high %v3246_v57, %v3246_v57  ;;  %v3239_v30 = vcombine.high %v3237_v22, %v3237_v22  ;;  %v3253_v31 = vrot.slane %v3237_v22, %v7959_v4  ;;  %v3321_v56 = vld [vmem:[#allocation3 + $0x580] sm:$0xff]  ;;  %v3330_v57 = vld [vmem:[#allocation3 + $0x5c8] sm:$0xff] }
 0xc01   : > { %7076 = vmatpush3.msra.mxu0 %v3296_v58  ;;  %7091 = vmatprep.mubr.msk.f32.mxu0 %vm7710_vm1, %v7709_v48 }
 0xc02   : > { %7077 = vmatprep.subr.mxu0 %v7709_v48  ;;  %7073 = vmatmul.mubr.msk.f32.vlgmr.msra.gmra.mxu1 %vm812_vm3, %v3260_v59  ;;  %v3270_v12 = vcombine.high %v3260_v59, %v3260_v59  ;;  %v3267_v33 = vrot.slane %v3239_v30, %v7959_v4  ;;  %v3269_v58 = vcombine.high %v3253_v31, %v3253_v31  ;;  %v3329_v59 = vld [vmem:[#allocation3 + $0x5c0] sm:$0xff] }
 0xc03   : > { %7078 = vmatpush3.msra.mxu0 %v3295_v45  ;;  %7095 = vmatpush3.msra.mxu1 %v3304_v60  ;;  %v6133_v60 = vld [vmem:[%s8944_s9 + $0x40] sm:$0xff]  ;;  %v6138_v30 = vld [vmem:[%s8945_s10 + $0x48] sm:$0xff] }
 0xc04   : > { %7079 = vmatprep.subr.mxu0 %v7709_v48  ;;  %7096 = vmatprep.subr.mxu1 %v7709_v48  ;;  %v3271_v45 = vcombine.high %v3267_v33, %v3267_v33 }
 0xc05   : > { %7080 = vmatpush3.msra.mxu0 %v3294_v26  ;;  %7097 = vmatpush3.msra.mxu1 %v3303_v63  ;;  %v8544_v26 = vld [vmem:[%s8937_s2 + $0x8] sm:$0xff] }
 0xc06   : > { %7081 = vmatprep.subr.mxu0 %v7709_v48  ;;  %7098 = vmatprep.subr.mxu1 %v7709_v48  ;;  %v6134_v63 = vld [vmem:[%s8944_s9 + $0x48] sm:$0xff] }
 0xc07   : > { %7082 = vmatpush3.msra.mxu0 %v3293_v37  ;;  %7099 = vmatpush3.msra.mxu1 %v3302_v38 }
 0xc08   : > { %7083 = vmatprep.subr.mxu0 %v7709_v48  ;;  %7100 = vmatprep.subr.mxu1 %v7709_v48 }
 0xc09   : > { %7084 = vmatpush3.msra.mxu0 %v3292_v0  ;;  %7101 = vmatpush3.msra.mxu1 %v3301_v1 }
 0xc0a   : > { %7085 = vmatprep.subr.mxu0 %v7709_v48  ;;  %7102 = vmatprep.subr.mxu1 %v7709_v48 }
 0xc0b   : > { %7086 = vmatpush3.msra.mxu0 %v3291_v2  ;;  %7103 = vmatpush3.msra.mxu1 %v3300_v44 }
 0xc0c   : > { %7087 = vmatprep.subr.mxu0 %v7709_v48  ;;  %7104 = vmatprep.subr.mxu1 %v7709_v48 }
 0xc0d   : > { %7088 = vmatpush3.msra.mxu0 %v3290_v5  ;;  %7105 = vmatpush3.msra.mxu1 %v3299_v6 }
 0xc0e   : > { %7089 = vmatprep.subr.mxu0 %v7709_v48  ;;  %7106 = vmatprep.subr.mxu1 %v7709_v48 }
 0xc0f   : > { %7090 = vmatpush3.msra.mxu0 %v3289_v7  ;;  %7107 = vmatpush3.msra.mxu1 %v3298_v8 }
 0xc10   : > { %7092 = vmatmul.mubr.msk.f32.vlgmr.msra.gmra.mxu0 %vm812_vm3, %v3268_v9  ;;  %7108 = vmatprep.subr.mxu1 %v7709_v48 }
 0xc11   : > { %7113 = vmatprep.subr.mxu0 %v7709_v48  ;;  %7109 = vmatpush3.msra.mxu1 %v3297_v10 }
 0xc12   : > { %7110 = vmatprep.mubr.msk.f32.mxu1 %vm7710_vm1, %v7709_v48  ;;  %7114 = vmatpush3.msra.mxu0 %v3312_v13 }
 0xc13   : > { %7111 = vmatmul.mubr.msk.f32.vlgmr.msra.gmra.mxu1 %vm812_vm3, %v3270_v12  ;;  %7115 = vmatprep.subr.mxu0 %v7709_v48 }
 0xc14   : > { %7132 = vmatprep.subr.mxu1 %v7709_v48  ;;  %7116 = vmatpush3.msra.mxu0 %v3311_v14 }
 0xc15   : > { %7133 = vmatpush3.msra.mxu1 %v3320_v15  ;;  %7117 = vmatprep.subr.mxu0 %v7709_v48 }
 0xc16   : > { %7134 = vmatprep.subr.mxu1 %v7709_v48  ;;  %7118 = vmatpush3.msra.mxu0 %v3310_v16 }
 0xc17   : > { %7135 = vmatpush3.msra.mxu1 %v3319_v40  ;;  %7119 = vmatprep.subr.mxu0 %v7709_v48 }
 0xc18   : > { %7136 = vmatprep.subr.mxu1 %v7709_v48  ;;  %7120 = vmatpush3.msra.mxu0 %v3309_v47 }
 0xc19   : > { %7137 = vmatpush3.msra.mxu1 %v3318_v62  ;;  %7121 = vmatprep.subr.mxu0 %v7709_v48 }
 0xc1a   : > { %7138 = vmatprep.subr.mxu1 %v7709_v48  ;;  %7122 = vmatpush3.msra.mxu0 %v3308_v17 }
 0xc1b   : > { %7139 = vmatpush3.msra.mxu1 %v3317_v18  ;;  %7123 = vmatprep.subr.mxu0 %v7709_v48 }
 0xc1c   : > { %7140 = vmatprep.subr.mxu1 %v7709_v48  ;;  %7124 = vmatpush3.msra.mxu0 %v3307_v19 }
 0xc1d   : > { %7141 = vmatpush3.msra.mxu1 %v3316_v21  ;;  %7125 = vmatprep.subr.mxu0 %v7709_v48 }
 0xc1e   : > { %7142 = vmatprep.subr.mxu1 %v7709_v48  ;;  %7126 = vmatpush3.msra.mxu0 %v3306_v25 }
 0xc1f   : > { %7143 = vmatpush3.msra.mxu1 %v3315_v27  ;;  %7127 = vmatprep.subr.mxu0 %v7709_v48 }
 0xc20   : > { %7144 = vmatprep.subr.mxu1 %v7709_v48  ;;  %7128 = vmatpush3.msra.mxu0 %v3305_v28 }
 0xc21   : > { %7129 = vmatprep.mubr.msk.f32.mxu0 %vm7710_vm1, %v7709_v48  ;;  %7145 = vmatpush3.msra.mxu1 %v3314_v29 }
 0xc22   : > { %7130 = vmatmul.mubr.msk.f32.vlgmr.msra.gmra.mxu0 %vm812_vm3, %v3253_v31  ;;  %7146 = vmatprep.subr.mxu1 %v7709_v48  ;;  %v6162_v31 = vld [vmem:[%s8941_s6 + $0x78] sm:$0xff] }
 0xc23   : > { %7151 = vmatprep.subr.mxu0 %v7709_v48  ;;  %7147 = vmatpush3.msra.mxu1 %v3313_v11  ;;  %v6161_v11 = vld [vmem:[%s8941_s6 + $0x70] sm:$0xff] }
 0xc24   : > { %7148 = vmatprep.mubr.msk.f32.mxu1 %vm7710_vm1, %v7709_v48  ;;  %7152 = vmatpush3.msra.mxu0 %v3328_v32  ;;  %v6160_v32 = vld [vmem:[%s8941_s6 + $0x68] sm:$0xff] }
 0xc25   : > { %7149 = vmatmul.mubr.msk.f32.vlgmr.msra.gmra.mxu1 %vm812_vm3, %v3267_v33  ;;  %7153 = vmatprep.subr.mxu0 %v7709_v48  ;;  %v6159_v33 = vld [vmem:[%s8941_s6 + $0x60] sm:$0xff] }
 0xc26   : > { %7170 = vmatprep.subr.mxu1 %v7709_v48  ;;  %7154 = vmatpush3.msra.mxu0 %v3327_v34  ;;  %v6186_v34 = vld [vmem:[%s8945_s10 + $0x78] sm:$0xff] }
 0xc27   : > { %7171 = vmatpush3.msra.mxu1 %v3336_v35  ;;  %7155 = vmatprep.subr.mxu0 %v7709_v48  ;;  %v6173_v35 = vld [vmem:[%s8943_s8 + $0x70] sm:$0xff] }
 0xc28   : > { %7172 = vmatprep.subr.mxu1 %v7709_v48  ;;  %7156 = vmatpush3.msra.mxu0 %v3326_v39  ;;  %v6185_v39 = vld [vmem:[%s8945_s10 + $0x70] sm:$0xff] }
 0xc29   : > { %7173 = vmatpush3.msra.mxu1 %v3335_v41  ;;  %7157 = vmatprep.subr.mxu0 %v7709_v48  ;;  %v6172_v41 = vld [vmem:[%s8943_s8 + $0x68] sm:$0xff] }
 0xc2a   : > { %7174 = vmatprep.subr.mxu1 %v7709_v48  ;;  %7158 = vmatpush3.msra.mxu0 %v3325_v42  ;;  %v6184_v42 = vld [vmem:[%s8945_s10 + $0x68] sm:$0xff] }
 0xc2b   : > { %7175 = vmatpush3.msra.mxu1 %v3334_v43  ;;  %7159 = vmatprep.subr.mxu0 %v7709_v48  ;;  %v6171_v43 = vld [vmem:[%s8943_s8 + $0x60] sm:$0xff] }
 0xc2c   : > { %7176 = vmatprep.subr.mxu1 %v7709_v48  ;;  %7160 = vmatpush3.msra.mxu0 %v3324_v46  ;;  %v6183_v46 = vld [vmem:[%s8945_s10 + $0x60] sm:$0xff] }
 0xc2d   : > { %7177 = vmatpush3.msra.mxu1 %v3333_v49  ;;  %7161 = vmatprep.subr.mxu0 %v7709_v48  ;;  %v5647_v49 = vld [vmem:[%s8947_s12 + $0x38] sm:$0xff] }
 0xc2e   : > { %7178 = vmatprep.subr.mxu1 %v7709_v48  ;;  %7162 = vmatpush3.msra.mxu0 %v3323_v51  ;;  %v5646_v51 = vld [vmem:[%s8947_s12 + $0x30] sm:$0xff] }
 0xc2f   : > { %7179 = vmatpush3.msra.mxu1 %v3332_v52  ;;  %7163 = vmatprep.subr.mxu0 %v7709_v48  ;;  %v5645_v52 = vld [vmem:[%s8947_s12 + $0x28] sm:$0xff] }
 0xc30   : > { %7180 = vmatprep.subr.mxu1 %v7709_v48  ;;  %7164 = vmatpush3.msra.mxu0 %v3322_v54  ;;  %v5643_v54 = vld [vmem:[%s8947_s12 + $0x18] sm:$0xff] }
 0xc31   : > { %7181 = vmatpush3.msra.mxu1 %v3331_v55  ;;  %7165 = vmatprep.subr.mxu0 %v7709_v48  ;;  %v5641_v55 = vld [vmem:[%s8947_s12 + $0x8] sm:$0xff] }
 0xc32   : > { %7182 = vmatprep.subr.mxu1 %v7709_v48  ;;  %7166 = vmatpush3.msra.mxu0 %v3321_v56  ;;  %v5858_v56 = vld [vmem:[#allocation2] sm:$0x1] }
 0xc33   : > { %7167 = vmatprep.mubr.msk.f32.mxu0 %vm7710_vm1, %v7709_v48  ;;  %7183 = vmatpush3.msra.mxu1 %v3330_v57 }
 0xc34   : > { %7168 = vmatmul.mubr.msk.f32.vlgmr.msra.gmra.mxu0 %vm812_vm3, %v3269_v58  ;;  %7184 = vmatprep.subr.mxu1 %v7709_v48 }
 0xc35   : > { %7185 = vmatpush3.msra.mxu1 %v3329_v59  ;;  %7186 = vmatprep.mubr.msk.f32.mxu1 %vm7710_vm1, %v7709_v48 }
 0xc36   : > { %7187 = vmatmul.mubr.msk.f32.vlgmr.msra.gmra.mxu1 %vm812_vm3, %v3271_v45  ;;  %7213 = vmatprep.subr.mxu1 %v8405_v61 }
 0xc37   : > { %7214 = vmatpush3.msra.mxu1 %v8405_v61  ;;  %7221 = vmatprep.mubr.msk.f32.mxu1 %vm696_vm2, %v6133_v60  ;;  %v8553_v61 = vld [vmem:[%s8937_s2] sm:$0xff] }
 0xc38   : > { %7215 = vmatprep.subr.mxu1 %v8409_v53  ;;  %7189 = vmatprep.subr.mxu0 %v8544_v26  ;;  %v6121_v60 = vld [vmem:[%s8942_s7 + $0x40] sm:$0xff] }
 0xc39   : > { %7216 = vmatpush3.msra.mxu1 %v8409_v53  ;;  %7190 = vmatpush3.msra.mxu0 %v8544_v26  ;;  %v6135_v53 = vld [vmem:[%s8944_s9 + $0x50] sm:$0xff] }
 0xc3a   : > { %7217 = vmatprep.subr.mxu1 %v8415_v20  ;;  %7191 = vmatprep.subr.mxu0 %v8553_v61 }
 0xc3b   : > { %7218 = vmatpush3.msra.mxu1 %v8415_v20  ;;  %7192 = vmatpush3.msra.mxu0 %v8553_v61  ;;  %v6136_v20 = vld [vmem:[%s8944_s9 + $0x58] sm:$0xff] }
 0xc3c   : > { %7219 = vmatprep.subr.mxu1 %v8421_v23 }
 0xc3d   : > { %7220 = vmatpush3.msra.mxu1 %v8421_v23 }
 0xc3e   : > { %7222 = vmatmul.mubr.msk.f32.vlgmr.msra.gmra.mxu1 %vm696_vm2, %v6134_v63  ;;  %7238 = vmatprep.subr.mxu1 %v7709_v48  ;;  %v3962_v63 = vpop.permute.xlu1 %3961 }
 0xc3f   : > { %7224 = vmatprep.mubr.msk.f32.mxu1 %vm696_vm2, %v6135_v53 }
 0xc42   : > { %7225 = vmatmul.mubr.msk.f32.gmra.mxu1 %vm696_vm2, %v6136_v20  ;;  %v3957_v53 = vpop.permute.xlu1 %3956 }
 0xc43   : > { %7254 = vmatprep.mubr.msk.f32.mxu1 %vm7710_vm1, %v7709_v48 }
 0xc46   : > { %v3952_v20 = vpop.permute.xlu1 %3951 }
 0xcc0   : > { %v3405_v37 = vpop.f32.mrf.mxu0 }
 0xcc2   : > { %v7055_v38 = vpop.f32.mrf.mxu0  ;;  %v3477_v0 = vpop.f32.mrf.mxu1 }
 0xcc3   : > { %v3921_v10 = vrot.slane %v3477_v0, 7 }
 0xcc4   : > { %v7074_v1 = vpop.f32.mrf.mxu1 }
 0xcc5   : > { %v3922_v12 = vsel %vm1398_vm4, %v3921_v10, %v3405_v37  ;;  %v3947_v1 = vpop.permute.xlu1 %3946 }
 0xcd0   : > { %v3549_v23 = vpop.f32.mrf.mxu0 }
 0xcd1   : > { %v3923_v13 = vrot.slane %v3549_v23, 6 }
 0xcd2   : > { %v7093_v2 = vpop.f32.mrf.mxu0 }
 0xcd3   : > { %v3621_v44 = vpop.f32.mrf.mxu1  ;;  %v3924_v15 = vsel %vm1401_vm5, %v3923_v13, %v3922_v12 }
 0xcd4   : > { %v3925_v14 = vrot.slane %v3621_v44, 5 }
 0xcd5   : > { %v7112_v5 = vpop.f32.mrf.mxu1 }
 0xcd6   : > { %v3926_v40 = vsel %vm1404_vm6, %v3925_v14, %v3924_v15 }
 0xce2   : > { %v3693_v6 = vpop.f32.mrf.mxu0 }
 0xce3   : > { %v3927_v16 = vrot.slane %v3693_v6, 4 }
 0xce4   : > { %v7131_v7 = vpop.f32.mrf.mxu0 }
 0xce5   : > { %v3765_v8 = vpop.f32.mrf.mxu1  ;;  %v3928_v62 = vsel %vm1407_vm7, %v3927_v16, %v3926_v40 }
 0xce6   : > { %v3929_v47 = vrot.slane %v3765_v8, 3 }
 0xce7   : > { %v7150_v9 = vpop.f32.mrf.mxu1 }
 0xce8   : > { %v3930_v18 = vsel %vm1410_vm8, %v3929_v47, %v3928_v62 }
 0xcf4   : > { %v3837_v50 = vpop.f32.mrf.mxu0 }
 0xcf5   : > { %v3931_v17 = vrot.slane %v3837_v50, 2 }
 0xcf6   : > { %v7169_v19 = vpop.f32.mrf.mxu0  ;;  %v3909_v21 = vpop.f32.mrf.mxu1 }
 0xcf7   : > { %v3933_v22 = vrot.slane %v3909_v21, 1  ;;  %v3932_v25 = vsel %vm1413_vm9, %v3931_v17, %v3930_v18 }
 0xcf8   : > { %v7188_v27 = vpop.f32.mrf.mxu1 }
 0xcf9   : > { %v3934_v28 = vsel %vm1416_vm10, %v3933_v22, %v3932_v25 }
 0xcfa   : > { %3936 = vrot.lane.b32.xlu0 %v3934_v28, %s8969_s27 }
 0xd18   : > { %3964 = vxpose.xlu0.b32.start [1/2] (short) (narrow) %v3934_v28, 32  ;;  %v6122_v28 = vld [vmem:[%s8942_s7 + $0x48] sm:$0xff] }
 0xd6c   : > { %v3937_v29 = vpop.permute.xlu0 %3936 }
 0xd6d   : > { %3965 = vxpose.xlu0.b32.end [2/2] (short) (narrow) %v3937_v29, 32  ;;  %v6123_v29 = vld [vmem:[%s8942_s7 + $0x50] sm:$0xff] }
 0xd9e   : > { %4257 = vperm.xlu0 %7531, %v6138_v30   ;;  %v6124_v30 = vld [vmem:[%s8942_s7 + $0x58] sm:$0xff] }
 0xda2   : > { %5222 = vperm.xlu0 %7531, %v6162_v31   ;;  %v4141_v31 = vpop.permute.xlu1 %4140 }
 0xda6   : > { %5217 = vperm.xlu0 %7531, %v6161_v11   ;;  %v4268_v11 = vpop.permute.xlu1 %4267 }
 0xdaa   : > { %5212 = vperm.xlu0 %7531, %v6160_v32   ;;  %v4136_v32 = vpop.permute.xlu1 %4135 }
 0xdae   : > { %5207 = vperm.xlu0 %7531, %v6159_v33   ;;  %v4263_v33 = vpop.permute.xlu1 %4262 }
 0xdb2   : > { %5528 = vperm.xlu0 %7531, %v6186_v34   ;;  %v4131_v34 = vpop.permute.xlu1 %4130 }
 0xdb6   : > { %5396 = vperm.xlu0 %7531, %v6173_v35   ;;  %v7223_v35 = vpop.f32.mrf.mxu1 }
 0xdba   : > { %5523 = vperm.xlu0 %7531, %v6185_v39   ;;  %v4348_v39 = vpop.f32.mrf.mxu1 }
 0xdbe   : > { %5391 = vperm.xlu0 %7531, %v6172_v41   ;;  %v4126_v41 = vpop.permute.xlu1 %4125 }
 0xdc2   : > { %5518 = vperm.xlu0 %7531, %v6184_v42  }
 0xdc6   : > { %5386 = vperm.xlu0 %7531, %v6171_v43  }
 0xdca   : > { %5513 = vperm.xlu0 %7531, %v6183_v46   ;;  %v7226_v46 = vpop.f32.mrf.mxu1 }
 0xdce   : > { %5685 = vperm.xlu0 %7531, %v5647_v49  }
 0xdd2   : > { %5680 = vperm.xlu0 %7531, %v5646_v51  }
 0xdd6   : > { %5675 = vperm.xlu0 %7531, %v5645_v52  }
 0xdda   : > { %5665 = vperm.xlu0 %7531, %v5643_v54  }
 0xdde   : > { %5655 = vperm.xlu0 %7531, %v5641_v55   ;;  %v4364_v55 = vadd.f32 %v7226_v46, %v4268_v11  ;;  %v4544_v11 = vld [vmem:[#allocation3 + $0x650] sm:$0xff] }
 0xde2   : > { %5861 = vperm.xlu0 %7531, %v5858_v56   ;;  %v4358_v56 = vpop.f32.mrf.mxu1 }
 0xde5   : > { %v3980_v57 = vpop.trf.xlu0 }
 0xde6   : > { %7193 = vmatprep.mubr.msk.f32.mxu0 %vm598_vm0, %v3980_v57 }
 0xde9   : > { %v3981_v58 = vpop.trf.xlu0 }
 0xdea   : > { %7194 = vmatmul.mubr.msk.f32.vlgmr.msra.gmra.mxu0 %vm598_vm0, %v3981_v58 }
 0xded   : > { %v3982_v59 = vpop.trf.xlu0 }
 0xdee   : > { %7196 = vmatprep.mubr.msk.f32.mxu0 %vm598_vm0, %v3982_v59  ;;  %v4253_v59 = vpop.permute.xlu1 %4252 }
 0xdf1   : > { %v3983_v45 = vpop.trf.xlu0 }
 0xdf2   : > { %7197 = vmatmul.mubr.msk.f32.gmra.mxu0 %vm598_vm0, %v3983_v45 }
 0xdf3   : > { %7207 = vmatprep.mubr.msk.f32.mxu0 %vm696_vm2, %v6121_v60  ;;  %v4349_v60 = vadd.f32 %v4348_v39, %v4253_v59  ;;  %v4553_v59 = vld [vmem:[#allocation3 + $0x698] sm:$0xff] }
 0xe19   : > { %v4258_v42 = vpop.permute.xlu0 %4257 }
 0xe1a   : > { %v4354_v52 = vadd.f32 %v7223_v35, %v4258_v42 }
 0xeaa   : > { %v7195_v37 = vpop.f32.mrf.mxu0 }
 0xeab   : > { %v4080_v0 = vadd.f32 %v7195_v37, %v3952_v20 }
 0xeac   : > { %v4074_v38 = vpop.f32.mrf.mxu0 }
 0xead   : > { %v4075_v23 = vadd.f32 %v4074_v38, %v3947_v1  ;;  %v4098_v2 = vmul.f32 0.70710677, %v4080_v0  ;;  %v4094_v18 = vmul.f32 0.5, %v4080_v0 }
 0xeaf   : > { %v4097_v6 = vmul.f32 0.70710677, %v4075_v23  ;;  %7568 = verf.f32 %v4098_v2  ;;  %v4093_v22 = vmul.f32 0.5, %v4075_v23 }
 0xeb2   : > { %v7198_v44 = vpop.f32.mrf.mxu0 }
 0xeb3   : > { %v4090_v5 = vadd.f32 %v7198_v44, %v3962_v63 }
 0xeb4   : > { %v4084_v7 = vpop.f32.mrf.mxu0 }
 0xeb5   : > { %v4100_v8 = vmul.f32 0.70710677, %v4090_v5  ;;  %v4085_v9 = vadd.f32 %v4084_v7, %v3957_v53  ;;  %v4096_v15 = vmul.f32 0.5, %v4090_v5  ;;  %v4359_v53 = vadd.f32 %v4358_v56, %v4263_v33  ;;  %v4543_v33 = vld [vmem:[#allocation3 + $0x648] sm:$0xff] }
 0xeb6   : > { %v4555_v56 = vld [vmem:[#allocation3 + $0x6a8] sm:$0xff] }
 0xeb7   : > { %7570 = verf.f32 %v4100_v8  ;;  %v4099_v10 = vmul.f32 0.70710677, %v4085_v9  ;;  %v4095_v47 = vmul.f32 0.5, %v4085_v9 }
 0xeb8   : > { %7572 = verf.f32 %v4097_v6 }
 0xeb9   : > { %7574 = verf.f32 %v4099_v10 }
 0xebc   : > { %v7569_v13 = vpop.eup %7568 }
 0xebd   : > { %v4106_v17 = vadd.f32 1.0, %v7569_v13 }
 0xebf   : > { %v4110_v25 = vmul.f32 %v4106_v17, %v4094_v18  ;;  %v4541_v17 = vld [vmem:[#allocation3 + $0x638] sm:$0xff]  ;;  %v4540_v18 = vld [vmem:[#allocation3 + $0x630] sm:$0xff] }
 0xec0   : > { %7239 = vmatpush3.msra.mxu1 %v4541_v17  ;;  %v4567_v17 = vld [vmem:[#allocation3 + $0x708] sm:$0xff] }
 0xec1   : > { %7240 = vmatprep.subr.mxu1 %v7709_v48 }
 0xec2   : > { %7241 = vmatpush3.msra.mxu1 %v4540_v18  ;;  %v4576_v18 = vld [vmem:[#allocation3 + $0x750] sm:$0xff] }
 0xec3   : > { %7242 = vmatprep.subr.mxu1 %v7709_v48 }
 0xec4   : > { %v7571_v12 = vpop.eup %7570 }
 0xec5   : > { %v7573_v14 = vpop.eup %7572  ;;  %v4108_v16 = vadd.f32 1.0, %v7571_v12 }
 0xec6   : > { %v7575_v40 = vpop.eup %7574  ;;  %v4105_v21 = vadd.f32 1.0, %v7573_v14 }
 0xec7   : > { %v4112_v62 = vmul.f32 %v4108_v16, %v4096_v15  ;;  %v4107_v50 = vadd.f32 1.0, %v7575_v40 }
 0xec8   : > { %v4109_v27 = vmul.f32 %v4105_v21, %v4093_v22  ;;  %v4548_v21 = vld [vmem:[#allocation3 + $0x670] sm:$0xff]  ;;  %v4539_v22 = vld [vmem:[#allocation3 + $0x628] sm:$0xff] }
 0xec9   : > { %7199 = vmatprep.subr.mxu0 %v4112_v62  ;;  %v4111_v19 = vmul.f32 %v4107_v50, %v4095_v47  ;;  %7243 = vmatpush3.msra.mxu1 %v4539_v22 }
 0xeca   : > { %7200 = vmatpush3.msra.mxu0 %v4112_v62  ;;  %7244 = vmatprep.subr.mxu1 %v7709_v48 }
 0xecb   : > { %7201 = vmatprep.subr.mxu0 %v4111_v19 }
 0xecc   : > { %7202 = vmatpush3.msra.mxu0 %v4111_v19  ;;  %v4549_v19 = vld [vmem:[#allocation3 + $0x678] sm:$0xff] }
 0xecd   : > { %7203 = vmatprep.subr.mxu0 %v4110_v25 }
 0xece   : > { %7204 = vmatpush3.msra.mxu0 %v4110_v25  ;;  %v4547_v25 = vld [vmem:[#allocation3 + $0x668] sm:$0xff] }
 0xecf   : > { %7205 = vmatprep.subr.mxu0 %v4109_v27 }
 0xed0   : > { %7206 = vmatpush3.msra.mxu0 %v4109_v27  ;;  %v4546_v27 = vld [vmem:[#allocation3 + $0x660] sm:$0xff] }
 0xed1   : > { %7208 = vmatmul.mubr.msk.f32.vlgmr.msra.gmra.mxu0 %vm696_vm2, %v6122_v28  ;;  %v4537_v28 = vld [vmem:[#allocation3 + $0x618] sm:$0xff] }
 0xed2   : > { %7210 = vmatprep.mubr.msk.f32.mxu0 %vm696_vm2, %v6123_v29  ;;  %v4545_v29 = vld [vmem:[#allocation3 + $0x658] sm:$0xff] }
 0xed5   : > { %7211 = vmatmul.mubr.msk.f32.gmra.mxu0 %vm696_vm2, %v6124_v30  ;;  %v4536_v30 = vld [vmem:[#allocation3 + $0x610] sm:$0xff] }
 0xed6   : > { %7235 = vmatprep.mubr.msk.f32.mxu0 %vm598_vm0, %v8401_v36 }
 0xf91   : > { %v7209_v43 = vpop.f32.mrf.mxu0 }
 0xf92   : > { %v4227_v49 = vadd.f32 %v7209_v43, %v4131_v34  ;;  %v4542_v34 = vld [vmem:[#allocation3 + $0x640] sm:$0xff] }
 0xf93   : > { %v4221_v51 = vpop.f32.mrf.mxu0 }
 0xf94   : > { %v4368_v57 = vadd.f32 %v4354_v52, %v4227_v49  ;;  %v4222_v58 = vadd.f32 %v4221_v51, %v4126_v41  ;;  %v4557_v51 = vld [vmem:[#allocation3 + $0x6b8] sm:$0xff] }
 0xf95   : > { %v7212_v54 = vpop.f32.mrf.mxu0 }
 0xf96   : > { %v4237_v36 = vadd.f32 %v7212_v54, %v4141_v31  ;;  %v4376_v37 = vmul.f32 0.70710677, %v4368_v57  ;;  %v4367_v38 = vadd.f32 %v4349_v60, %v4222_v58  ;;  %v4372_v16 = vmul.f32 0.5, %v4368_v57  ;;  %v4535_v31 = vld [vmem:[#allocation3 + $0x608] sm:$0xff]  ;;  %v4556_v54 = vld [vmem:[#allocation3 + $0x6b0] sm:$0xff]  ;;  %v4554_v58 = vld [vmem:[#allocation3 + $0x6a0] sm:$0xff] }
 0xf97   : > { %v4231_v45 = vpop.f32.mrf.mxu0  ;;  %v4564_v57 = vld [vmem:[#allocation3 + $0x6f0] sm:$0xff] }
 0xf98   : > { %v4370_v63 = vadd.f32 %v4364_v55, %v4237_v36  ;;  %v4232_v20 = vadd.f32 %v4231_v45, %v4136_v32  ;;  %v4375_v2 = vmul.f32 0.70710677, %v4367_v38  ;;  %v4371_v62 = vmul.f32 0.5, %v4367_v38  ;;  %v4534_v32 = vld [vmem:[#allocation3 + $0x600] sm:$0xff]  ;;  %v4565_v55 = vld [vmem:[#allocation3 + $0x6f8] sm:$0xff]  ;;  %v4563_v36 = vld [vmem:[#allocation3 + $0x6e8] sm:$0xff] }
 0xf99   : > { %v4562_v45 = vld [vmem:[#allocation3 + $0x6e0] sm:$0xff]  ;;  %v4552_v60 = vld [vmem:[#allocation3 + $0x690] sm:$0xff]  ;;  %v4559_v38 = vld [vmem:[#allocation3 + $0x6c8] sm:$0xff] }
 0xf9a   : > { %v4378_v0 = vmul.f32 0.70710677, %v4370_v63  ;;  %v4369_v1 = vadd.f32 %v4359_v53, %v4232_v20  ;;  %v4374_v5 = vmul.f32 0.5, %v4370_v63  ;;  %v4561_v63 = vld [vmem:[#allocation3 + $0x6d8] sm:$0xff]  ;;  %v4551_v53 = vld [vmem:[#allocation3 + $0x688] sm:$0xff]  ;;  %v4560_v20 = vld [vmem:[#allocation3 + $0x6d0] sm:$0xff] }
 0xf9c   : > { %7576 = verf.f32 %v4378_v0  ;;  %v4377_v23 = vmul.f32 0.70710677, %v4369_v1  ;;  %v4373_v10 = vmul.f32 0.5, %v4369_v1  ;;  %v4558_v1 = vld [vmem:[#allocation3 + $0x6c0] sm:$0xff] }
 0xf9d   : > { %7578 = verf.f32 %v4376_v37  ;;  %v4550_v37 = vld [vmem:[#allocation3 + $0x680] sm:$0xff] }
 0xf9e   : > { %7580 = verf.f32 %v4377_v23  ;;  %v4573_v23 = vld [vmem:[#allocation3 + $0x738] sm:$0xff] }
 0xf9f   : > { %7582 = verf.f32 %v4375_v2 }
 0xfa9   : > { %v7577_v44 = vpop.eup %7576 }
 0xfaa   : > { %v4386_v6 = vadd.f32 1.0, %v7577_v44  ;;  %v7579_v7 = vpop.eup %7578  ;;  %v4572_v44 = vld [vmem:[#allocation3 + $0x730] sm:$0xff] }
 0xfab   : > { %v7581_v8 = vpop.eup %7580  ;;  %v4384_v12 = vadd.f32 1.0, %v7579_v7  ;;  %v4580_v7 = vld [vmem:[#allocation3 + $0x770] sm:$0xff] }
 0xfac   : > { %v8656_v9 = vmul.f32 %v4386_v6, %v4374_v5  ;;  %v4385_v13 = vadd.f32 1.0, %v7581_v8  ;;  %v7583_v14 = vpop.eup %7582  ;;  %v4581_v5 = vld [vmem:[#allocation3 + $0x778] sm:$0xff]  ;;  %v4571_v6 = vld [vmem:[#allocation3 + $0x728] sm:$0xff]  ;;  %v4570_v8 = vld [vmem:[#allocation3 + $0x720] sm:$0xff] }
 0xfad   : > { %v8666_v40 = vmul.f32 %v4384_v12, %v4372_v16  ;;  %v4383_v47 = vadd.f32 1.0, %v7583_v14  ;;  %v4569_v12 = vld [vmem:[#allocation3 + $0x718] sm:$0xff]  ;;  %v4578_v14 = vld [vmem:[#allocation3 + $0x760] sm:$0xff]  ;;  %v4568_v16 = vld [vmem:[#allocation3 + $0x710] sm:$0xff] }
 0xfae   : > { %7227 = vmatprep.subr.msk.mxu0 %vm598_vm0, %v8656_v9  ;;  %v8660_v15 = vmul.f32 %v4385_v13, %v4373_v10  ;;  %v4579_v10 = vld [vmem:[#allocation3 + $0x768] sm:$0xff] }
 0xfaf   : > { %7228 = vmatpush3.xpose.msk.msra.mxu0 %vm598_vm0, %v8656_v9  ;;  %v8672_v50 = vmul.f32 %v4383_v47, %v4371_v62  ;;  %v4577_v47 = vld [vmem:[#allocation3 + $0x758] sm:$0xff] }
 0xfb0   : > { %7229 = vmatprep.subr.msk.mxu0 %vm598_vm0, %v8660_v15 }
 0xfb3   : > { %7230 = vmatpush3.xpose.msk.msra.mxu0 %vm598_vm0, %v8660_v15 }
 0xfb4   : > { %7231 = vmatprep.subr.msk.mxu0 %vm598_vm0, %v8666_v40 }
 0xfb7   : > { %7232 = vmatpush3.xpose.msk.msra.mxu0 %vm598_vm0, %v8666_v40 }
 0xfb8   : > { %7233 = vmatprep.subr.msk.mxu0 %vm598_vm0, %v8672_v50 }
 0xfbb   : > { %7234 = vmatpush3.xpose.msk.msra.mxu0 %vm598_vm0, %v8672_v50 }
 0xfbc   : > { %7257 = vmatprep.subr.mxu0 %v7709_v48 }
 0xfbe   : > { %7236 = vmatmul.mubr.msk.f32.vlgmr.msra.gmra.mxu0 %vm598_vm0, %v8433_v24  ;;  %v4538_v24 = vld [vmem:[#allocation3 + $0x620] sm:$0xff] }
 0xfbf   : > { %7273 = vmatprep.mubr.msk.f32.mxu0 %vm7710_vm1, %v7709_v48  ;;  %7258 = vmatpush3.msra.mxu0 %v4549_v19  ;;  %v4566_v19 = vld [vmem:[#allocation3 + $0x700] sm:$0xff] }
 0xfc0   : > { %7259 = vmatprep.subr.mxu0 %v7709_v48  ;;  %7245 = vmatpush3.msra.mxu1 %v4538_v24  ;;  %v4574_v24 = vld [vmem:[#allocation3 + $0x740] sm:$0xff] }
 0xfc1   : > { %7260 = vmatpush3.msra.mxu0 %v4548_v21  ;;  %7246 = vmatprep.subr.mxu1 %v7709_v48  ;;  %v4575_v21 = vld [vmem:[#allocation3 + $0x748] sm:$0xff] }
 0xfc2   : > { %7261 = vmatprep.subr.mxu0 %v7709_v48  ;;  %7247 = vmatpush3.msra.mxu1 %v4537_v28 }
 0xfc3   : > { %7262 = vmatpush3.msra.mxu0 %v4547_v25  ;;  %7248 = vmatprep.subr.mxu1 %v7709_v48 }
 0xfc4   : > { %7263 = vmatprep.subr.mxu0 %v7709_v48  ;;  %7249 = vmatpush3.msra.mxu1 %v4536_v30  ;;  %v4597_v30 = vld [vmem:[#allocation3 + $0x7f8] sm:$0xff] }
 0xfc5   : > { %7264 = vmatpush3.msra.mxu0 %v4546_v27  ;;  %7250 = vmatprep.subr.mxu1 %v7709_v48  ;;  %v4589_v27 = vld [vmem:[#allocation3 + $0x7b8] sm:$0xff] }
 0xfc6   : > { %7265 = vmatprep.subr.mxu0 %v7709_v48  ;;  %7251 = vmatpush3.msra.mxu1 %v4535_v31  ;;  %v4587_v31 = vld [vmem:[#allocation3 + $0x7a8] sm:$0xff] }
 0xfc7   : > { %7266 = vmatpush3.msra.mxu0 %v4545_v29  ;;  %7252 = vmatprep.subr.mxu1 %v7709_v48  ;;  %v4588_v29 = vld [vmem:[#allocation3 + $0x7b0] sm:$0xff] }
 0xfc8   : > { %7267 = vmatprep.subr.mxu0 %v7709_v48  ;;  %7253 = vmatpush3.msra.mxu1 %v4534_v32  ;;  %v4595_v32 = vld [vmem:[#allocation3 + $0x7e8] sm:$0xff] }
 0xfc9   : > { %7268 = vmatpush3.msra.mxu0 %v4544_v11  ;;  %7276 = vmatprep.subr.mxu1 %v7709_v48  ;;  %v4596_v11 = vld [vmem:[#allocation3 + $0x7f0] sm:$0xff] }
 0xfca   : > { %7269 = vmatprep.subr.mxu0 %v7709_v48 }
 0xfcb   : > { %7270 = vmatpush3.msra.mxu0 %v4543_v33  ;;  %v4585_v33 = vld [vmem:[#allocation3 + $0x798] sm:$0xff] }
 0xfcc   : > { %7271 = vmatprep.subr.mxu0 %v7709_v48 }
 0xfcd   : > { %7272 = vmatpush3.msra.mxu0 %v4542_v34  ;;  %v4594_v34 = vld [vmem:[#allocation3 + $0x7e0] sm:$0xff] }
 0xfce   : > { %7295 = vmatprep.subr.mxu0 %v7709_v48 }
0x107e   : > { %v7237_v35 = vpop.f32.mrf.mxu0 }
0x107f   : > { %4479 = vrot.lane.b32.xlu1 %v7237_v35, %s8968_s17  ;;  %v4584_v35 = vld [vmem:[#allocation3 + $0x790] sm:$0xff] }
0x1080   : > { %v4469_v39 = vpop.f32.mrf.mxu0 }
0x10f1   : > { %v4480_v41 = vpop.permute.xlu1 %4479 }
0x10f2   : > { %v8703_v42 = vsel %vm696_vm2, %v4469_v39, %v4480_v41  ;;  %v4593_v39 = vld [vmem:[#allocation3 + $0x7d8] sm:$0xff]  ;;  %v4583_v41 = vld [vmem:[#allocation3 + $0x788] sm:$0xff] }
0x10f3   : > { %v4491_v43 = vrot.slane %v8703_v42, %v7959_v4  ;;  %v4484_v13 = vcombine.high %v8703_v42, %v8703_v42  ;;  %v4592_v42 = vld [vmem:[#allocation3 + $0x7d0] sm:$0xff] }
0x10f5   : > { %v4499_v46 = vcombine.high %v4491_v43, %v4491_v43  ;;  %v4507_v49 = vrot.slane %v4491_v43, %v7959_v4  ;;  %v4498_v62 = vrot.slane %v4484_v13, %v7959_v4  ;;  %v4582_v43 = vld [vmem:[#allocation3 + $0x780] sm:$0xff] }
0x10f7   : > { %v4521_v52 = vrot.slane %v4499_v46, %v7959_v4  ;;  %7255 = vmatmul.mubr.msk.f32.vlgmr.msra.gmra.mxu1 %vm812_vm3, %v4507_v49  ;;  %v4529_v0 = vcombine.high %v4507_v49, %v4507_v49  ;;  %v4500_v22 = vcombine.high %v4498_v62, %v4498_v62  ;;  %v4514_v25 = vrot.slane %v4498_v62, %v7959_v4  ;;  %v4591_v46 = vld [vmem:[#allocation3 + $0x7c8] sm:$0xff]  ;;  %v6174_v62 = vld [vmem:[%s8943_s8 + $0x78] sm:$0xff] }
0x10f8   : > { %7277 = vmatpush3.msra.mxu1 %v4557_v51  ;;  %7292 = vmatprep.mubr.msk.f32.mxu1 %vm7710_vm1, %v7709_v48  ;;  %v4590_v51 = vld [vmem:[#allocation3 + $0x7c0] sm:$0xff] }
0x10f9   : > { %7278 = vmatprep.subr.mxu1 %v7709_v48  ;;  %7274 = vmatmul.mubr.msk.f32.vlgmr.msra.gmra.mxu0 %vm812_vm3, %v4521_v52  ;;  %v4531_v2 = vcombine.high %v4521_v52, %v4521_v52  ;;  %v4528_v28 = vrot.slane %v4500_v22, %v7959_v4  ;;  %v4586_v4 = vld [vmem:[#allocation3 + $0x7a0] sm:$0xff]  ;;  %v4530_v49 = vcombine.high %v4514_v25, %v4514_v25 }
0x10fa   : > { %7279 = vmatpush3.msra.mxu1 %v4556_v54  ;;  %7296 = vmatpush3.msra.mxu0 %v4565_v55  ;;  %v6179_v54 = vld [vmem:[%s8944_s9 + $0x60] sm:$0xff] }
0x10fb   : > { %7280 = vmatprep.subr.mxu1 %v7709_v48  ;;  %7297 = vmatprep.subr.mxu0 %v7709_v48  ;;  %v4532_v52 = vcombine.high %v4528_v28, %v4528_v28 }
0x10fc   : > { %7281 = vmatpush3.msra.mxu1 %v4555_v56  ;;  %7298 = vmatpush3.msra.mxu0 %v4564_v57 }
0x10fd   : > { %7282 = vmatprep.subr.mxu1 %v7709_v48  ;;  %7299 = vmatprep.subr.mxu0 %v7709_v48 }
0x10fe   : > { %7283 = vmatpush3.msra.mxu1 %v4554_v58  ;;  %7300 = vmatpush3.msra.mxu0 %v4563_v36 }
0x10ff   : > { %7284 = vmatprep.subr.mxu1 %v7709_v48  ;;  %7301 = vmatprep.subr.mxu0 %v7709_v48 }
0x1100   : > { %7285 = vmatpush3.msra.mxu1 %v4553_v59  ;;  %7302 = vmatpush3.msra.mxu0 %v4562_v45 }
0x1101   : > { %7286 = vmatprep.subr.mxu1 %v7709_v48  ;;  %7303 = vmatprep.subr.mxu0 %v7709_v48 }
0x1102   : > { %7287 = vmatpush3.msra.mxu1 %v4552_v60  ;;  %7304 = vmatpush3.msra.mxu0 %v4561_v63 }
0x1103   : > { %7288 = vmatprep.subr.mxu1 %v7709_v48  ;;  %7305 = vmatprep.subr.mxu0 %v7709_v48 }
0x1104   : > { %7289 = vmatpush3.msra.mxu1 %v4551_v53  ;;  %7306 = vmatpush3.msra.mxu0 %v4560_v20 }
0x1105   : > { %7290 = vmatprep.subr.mxu1 %v7709_v48  ;;  %7307 = vmatprep.subr.mxu0 %v7709_v48 }
0x1106   : > { %7291 = vmatpush3.msra.mxu1 %v4550_v37  ;;  %7308 = vmatpush3.msra.mxu0 %v4559_v38 }
0x1107   : > { %7293 = vmatmul.mubr.msk.f32.vlgmr.msra.gmra.mxu1 %vm812_vm3, %v4529_v0  ;;  %7309 = vmatprep.subr.mxu0 %v7709_v48 }
0x1108   : > { %7314 = vmatprep.subr.mxu1 %v7709_v48  ;;  %7310 = vmatpush3.msra.mxu0 %v4558_v1 }
0x1109   : > { %7311 = vmatprep.mubr.msk.f32.mxu0 %vm7710_vm1, %v7709_v48  ;;  %7315 = vmatpush3.msra.mxu1 %v4573_v23 }
0x110a   : > { %7312 = vmatmul.mubr.msk.f32.vlgmr.msra.gmra.mxu0 %vm812_vm3, %v4531_v2  ;;  %7316 = vmatprep.subr.mxu1 %v7709_v48 }
0x110b   : > { %7333 = vmatprep.subr.mxu0 %v7709_v48  ;;  %7317 = vmatpush3.msra.mxu1 %v4572_v44 }
0x110c   : > { %7334 = vmatpush3.msra.mxu0 %v4581_v5  ;;  %7318 = vmatprep.subr.mxu1 %v7709_v48 }
0x110d   : > { %7335 = vmatprep.subr.mxu0 %v7709_v48  ;;  %7319 = vmatpush3.msra.mxu1 %v4571_v6 }
0x110e   : > { %7336 = vmatpush3.msra.mxu0 %v4580_v7  ;;  %7320 = vmatprep.subr.mxu1 %v7709_v48 }
0x110f   : > { %7337 = vmatprep.subr.mxu0 %v7709_v48  ;;  %7321 = vmatpush3.msra.mxu1 %v4570_v8 }
0x1110   : > { %7338 = vmatpush3.msra.mxu0 %v4579_v10  ;;  %7322 = vmatprep.subr.mxu1 %v7709_v48 }
0x1111   : > { %7339 = vmatprep.subr.mxu0 %v7709_v48  ;;  %7323 = vmatpush3.msra.mxu1 %v4569_v12 }
0x1112   : > { %7340 = vmatpush3.msra.mxu0 %v4578_v14  ;;  %7324 = vmatprep.subr.mxu1 %v7709_v48 }
0x1113   : > { %7341 = vmatprep.subr.mxu0 %v7709_v48  ;;  %7325 = vmatpush3.msra.mxu1 %v4568_v16 }
0x1114   : > { %7342 = vmatpush3.msra.mxu0 %v4577_v47  ;;  %7326 = vmatprep.subr.mxu1 %v7709_v48 }
0x1115   : > { %7343 = vmatprep.subr.mxu0 %v7709_v48  ;;  %7327 = vmatpush3.msra.mxu1 %v4567_v17  ;;  %v5644_v17 = vld [vmem:[%s8947_s12 + $0x20] sm:$0xff] }
0x1116   : > { %7344 = vmatpush3.msra.mxu0 %v4576_v18  ;;  %7328 = vmatprep.subr.mxu1 %v7709_v48  ;;  %v5642_v18 = vld [vmem:[%s8947_s12 + $0x10] sm:$0xff] }
0x1117   : > { %7345 = vmatprep.subr.mxu0 %v7709_v48  ;;  %7329 = vmatpush3.msra.mxu1 %v4566_v19  ;;  %v5640_v19 = vld [vmem:[%s8947_s12] sm:$0xff] }
0x1118   : > { %7330 = vmatprep.mubr.msk.f32.mxu1 %vm7710_vm1, %v7709_v48  ;;  %7346 = vmatpush3.msra.mxu0 %v4575_v21 }
0x1119   : > { %7331 = vmatmul.mubr.msk.f32.vlgmr.msra.gmra.mxu1 %vm812_vm3, %v4514_v25  ;;  %7347 = vmatprep.subr.mxu0 %v7709_v48 }
0x111a   : > { %7352 = vmatprep.subr.mxu1 %v7709_v48  ;;  %7348 = vmatpush3.msra.mxu0 %v4574_v24 }
0x111b   : > { %7349 = vmatprep.mubr.msk.f32.mxu0 %vm7710_vm1, %v7709_v48  ;;  %7353 = vmatpush3.msra.mxu1 %v4589_v27  ;;  %v6167_v27 = vld [vmem:[%s8942_s7 + $0x60] sm:$0xff] }
0x111c   : > { %7350 = vmatmul.mubr.msk.f32.vlgmr.msra.gmra.mxu0 %vm812_vm3, %v4528_v28  ;;  %7354 = vmatprep.subr.mxu1 %v7709_v48  ;;  %v5223_v28 = vpop.permute.xlu0 %5222 }
0x111d   : > { %7371 = vmatprep.subr.mxu0 %v7709_v48  ;;  %7355 = vmatpush3.msra.mxu1 %v4588_v29 }
0x111e   : > { %7372 = vmatpush3.msra.mxu0 %v4597_v30  ;;  %7356 = vmatprep.subr.mxu1 %v7709_v48 }
0x111f   : > { %7373 = vmatprep.subr.mxu0 %v7709_v48  ;;  %7357 = vmatpush3.msra.mxu1 %v4587_v31 }
0x1120   : > { %7374 = vmatpush3.msra.mxu0 %v4596_v11  ;;  %7358 = vmatprep.subr.mxu1 %v7709_v48  ;;  %v5218_v29 = vpop.permute.xlu0 %5217 }
0x1121   : > { %7375 = vmatprep.subr.mxu0 %v7709_v48  ;;  %7359 = vmatpush3.msra.mxu1 %v4586_v4 }
0x1122   : > { %7376 = vmatpush3.msra.mxu0 %v4595_v32  ;;  %7360 = vmatprep.subr.mxu1 %v7709_v48 }
0x1123   : > { %7377 = vmatprep.subr.mxu0 %v7709_v48  ;;  %7361 = vmatpush3.msra.mxu1 %v4585_v33 }
0x1124   : > { %7378 = vmatpush3.msra.mxu0 %v4594_v34  ;;  %7362 = vmatprep.subr.mxu1 %v7709_v48  ;;  %v5213_v30 = vpop.permute.xlu0 %5212 }
0x1125   : > { %7379 = vmatprep.subr.mxu0 %v7709_v48  ;;  %7363 = vmatpush3.msra.mxu1 %v4584_v35 }
0x1126   : > { %7380 = vmatpush3.msra.mxu0 %v4593_v39  ;;  %7364 = vmatprep.subr.mxu1 %v7709_v48 }
0x1127   : > { %7381 = vmatprep.subr.mxu0 %v7709_v48  ;;  %7365 = vmatpush3.msra.mxu1 %v4583_v41 }
0x1128   : > { %7382 = vmatpush3.msra.mxu0 %v4592_v42  ;;  %7366 = vmatprep.subr.mxu1 %v7709_v48  ;;  %v5208_v32 = vpop.permute.xlu0 %5207 }
0x1129   : > { %7383 = vmatprep.subr.mxu0 %v7709_v48  ;;  %7367 = vmatpush3.msra.mxu1 %v4582_v43 }
0x112a   : > { %7368 = vmatprep.mubr.msk.f32.mxu1 %vm7710_vm1, %v7709_v48  ;;  %7384 = vmatpush3.msra.mxu0 %v4591_v46 }
0x112b   : > { %7369 = vmatmul.mubr.msk.f32.vlgmr.msra.gmra.mxu1 %vm812_vm3, %v4530_v49  ;;  %7385 = vmatprep.subr.mxu0 %v7709_v48 }
0x112c   : > { %7386 = vmatpush3.msra.mxu0 %v4590_v51  ;;  %7387 = vmatprep.mubr.msk.f32.mxu0 %vm7710_vm1, %v7709_v48 }
0x112d   : > { %7388 = vmatmul.mubr.msk.f32.vlgmr.msra.gmra.mxu0 %vm812_vm3, %v4532_v52  ;;  %7414 = vmatprep.subr.mxu0 %v8656_v9 }
0x112e   : > { %7415 = vmatpush3.msra.mxu0 %v8656_v9  ;;  %7422 = vmatprep.mubr.msk.f32.mxu0 %vm696_vm2, %v6179_v54  ;;  %v6180_v9 = vld [vmem:[%s8944_s9 + $0x68] sm:$0xff] }
0x112f   : > { %7416 = vmatprep.subr.mxu0 %v8660_v15  ;;  %7390 = vmatprep.subr.mxu1 %v8544_v26 }
0x1130   : > { %7417 = vmatpush3.msra.mxu0 %v8660_v15  ;;  %7391 = vmatpush3.msra.mxu1 %v8544_v26  ;;  %v6181_v15 = vld [vmem:[%s8944_s9 + $0x70] sm:$0xff]  ;;  %v6182_v26 = vld [vmem:[%s8944_s9 + $0x78] sm:$0xff] }
0x1131   : > { %7418 = vmatprep.subr.mxu0 %v8666_v40  ;;  %7392 = vmatprep.subr.mxu1 %v8553_v61 }
0x1132   : > { %7419 = vmatpush3.msra.mxu0 %v8666_v40  ;;  %7393 = vmatpush3.msra.mxu1 %v8553_v61 }
0x1133   : > { %7420 = vmatprep.subr.mxu0 %v8672_v50 }
0x1134   : > { %7421 = vmatpush3.msra.mxu0 %v8672_v50 }
0x1135   : > { %7423 = vmatmul.mubr.msk.f32.vlgmr.msra.gmra.mxu0 %vm696_vm2, %v6180_v9  ;;  %7448 = vmatprep.subr.mxu0 %v7709_v48 }
0x1136   : > { %7425 = vmatprep.mubr.msk.f32.mxu0 %vm696_vm2, %v6181_v15 }
0x1139   : > { %7426 = vmatmul.mubr.msk.f32.gmra.mxu0 %vm696_vm2, %v6182_v26 }
0x113a   : > { %7464 = vmatprep.mubr.msk.f32.mxu0 %vm7710_vm1, %v7709_v48 }
0x11b7   : > { %v4666_v61 = vpop.f32.mrf.mxu1 }
0x11b9   : > { %v7256_v40 = vpop.f32.mrf.mxu1  ;;  %v4738_v55 = vpop.f32.mrf.mxu0 }
0x11ba   : > { %v5182_v53 = vrot.slane %v4738_v55, 7 }
0x11bb   : > { %v7275_v56 = vpop.f32.mrf.mxu0 }
0x11bc   : > { %v5183_v37 = vsel %vm1398_vm4, %v5182_v53, %v4666_v61  ;;  %v6170_v53 = vld [vmem:[%s8942_s7 + $0x78] sm:$0xff] }
0x11c7   : > { %v4810_v50 = vpop.f32.mrf.mxu1 }
0x11c8   : > { %v5184_v20 = vrot.slane %v4810_v50, 6 }
0x11c9   : > { %v7294_v57 = vpop.f32.mrf.mxu1 }
0x11ca   : > { %v4882_v58 = vpop.f32.mrf.mxu0  ;;  %v5185_v0 = vsel %vm1401_vm5, %v5184_v20, %v5183_v37  ;;  %v5632_v20 = vld [vmem:[%s8946_s11] sm:$0xff]  ;;  %v5529_v37 = vpop.permute.xlu0 %5528 }
0x11cb   : > { %v5186_v38 = vrot.slane %v4882_v58, 5 }
0x11cc   : > { %v7313_v36 = vpop.f32.mrf.mxu0 }
0x11cd   : > { %v5187_v23 = vsel %vm1404_vm6, %v5186_v38, %v5185_v0 }
0x11ce   : > { %v5397_v38 = vpop.permute.xlu0 %5396 }
0x11d2   : > { %v5524_v0 = vpop.permute.xlu0 %5523 }
0x11d9   : > { %v4954_v59 = vpop.f32.mrf.mxu1 }
0x11da   : > { %v5188_v1 = vrot.slane %v4954_v59, 4 }
0x11db   : > { %v7332_v45 = vpop.f32.mrf.mxu1 }
0x11dc   : > { %v5026_v60 = vpop.f32.mrf.mxu0  ;;  %v5189_v44 = vsel %vm1407_vm7, %v5188_v1, %v5187_v23  ;;  %v5392_v1 = vpop.permute.xlu0 %5391 }
0x11dd   : > { %v5190_v2 = vrot.slane %v5026_v60, 3  ;;  %v6168_v60 = vld [vmem:[%s8942_s7 + $0x68] sm:$0xff] }
0x11de   : > { %v7351_v63 = vpop.f32.mrf.mxu0 }
0x11df   : > { %v5191_v7 = vsel %vm1410_vm8, %v5190_v2, %v5189_v44  ;;  %v6169_v63 = vld [vmem:[%s8942_s7 + $0x70] sm:$0xff] }
0x11e0   : > { %v5519_v44 = vpop.permute.xlu0 %5518 }
0x11eb   : > { %v5098_v5 = vpop.f32.mrf.mxu1 }
0x11ec   : > { %v5192_v6 = vrot.slane %v5098_v5, 2 }
0x11ed   : > { %v7370_v8 = vpop.f32.mrf.mxu1  ;;  %v5170_v10 = vpop.f32.mrf.mxu0 }
0x11ee   : > { %v5194_v13 = vrot.slane %v5170_v10, 1  ;;  %v5193_v12 = vsel %vm1413_vm9, %v5192_v6, %v5191_v7  ;;  %v5387_v8 = vpop.permute.xlu0 %5386 }
0x11ef   : > { %v7389_v14 = vpop.f32.mrf.mxu0 }
0x11f0   : > { %v5195_v16 = vsel %vm1416_vm10, %v5194_v13, %v5193_v12 }
0x11f1   : > { %5197 = vrot.lane.b32.xlu1 %v5195_v16, %s8969_s27  ;;  %s7642_s27 = sshll.u32 %s7714_s14, 4  ;;  %s7643_s27 = int_to_ptr.vmem [resolvable:$false] %s7642_s27 }
0x11f2   : > { %s7644_s18 = scalar_lea.vmem %s7643_s27, 32  ;;  %p7645_p11 = scmp.lt.s32.totalorder %s5957_s0, %s7643_s27 }
0x11f3   : > { %p7646_p12 = scmp.lt.s32.totalorder %s7644_s18, %s7638_s16 }
0x11f5   : > { %v7424_v23 = vpop.f32.mrf.mxu0  ;;  %p7647_p13 = por %p7646_p12, %p7645_p11 }
0x11f7   : > { %v5609_v2 = vpop.f32.mrf.mxu0  ;;  %p7648_p0 = pnand %p7647_p13, %p7641_p10 }
0x11f9   : > { %v7427_v5 = vpop.f32.mrf.mxu0 }
0x11fa   : > { %v5625_v14 = vadd.f32 %v7427_v5, %v5529_v37 }
0x11fb   : > { %v5619_v10 = vpop.f32.mrf.mxu0 }
0x121a   : > { %5225 = vxpose.xlu1.b32.start [1/2] (short) (narrow) %v5195_v16, 32 }
0x1263   : > { %v5198_v47 = vpop.permute.xlu1 %5197 }
0x1264   : > { %5226 = vxpose.xlu1.b32.end [2/2] (short) (narrow) %v5198_v47, 32 }
0x128a   : > { %5401 = vperm.xlu1 %7535, %v6174_v62   ;;  %v5620_v62 = vadd.f32 %v5619_v10, %v5524_v0 }
0x128e   : > { %5670 = vperm.xlu1 %7535, %v5644_v17  }
0x1292   : > { %5660 = vperm.xlu1 %7535, %v5642_v18  }
0x1296   : > { %5650 = vperm.xlu1 %7535, %v5640_v19  }
0x12dc   : > { %v5241_v21 = vpop.trf.xlu1 }
0x12dd   : > { %7394 = vmatprep.mubr.msk.f32.mxu1 %vm598_vm0, %v5241_v21  ;;  %v5615_v21 = vadd.f32 %v7424_v23, %v5519_v44 }
0x12e0   : > { %v5242_v22 = vpop.trf.xlu1 }
0x12e1   : > { %7395 = vmatmul.mubr.msk.f32.vlgmr.msra.gmra.mxu1 %vm598_vm0, %v5242_v22 }
0x12e4   : > { %v5243_v25 = vpop.trf.xlu1 }
0x12e5   : > { %7397 = vmatprep.mubr.msk.f32.mxu1 %vm598_vm0, %v5243_v25 }
0x12e8   : > { %v5244_v24 = vpop.trf.xlu1 }
0x12e9   : > { %7398 = vmatmul.mubr.msk.f32.gmra.mxu1 %vm598_vm0, %v5244_v24  ;;  %v5514_v24 = vpop.permute.xlu0 %5513 }
0x12ea   : > { %7408 = vmatprep.mubr.msk.f32.mxu1 %vm696_vm2, %v6167_v27  ;;  %v5610_v27 = vadd.f32 %v5609_v2, %v5514_v24 }
0x1305   : > { %v5402_v13 = vpop.permute.xlu1 %5401 }
0x13a1   : > { %v7396_v31 = vpop.f32.mrf.mxu1 }
0x13a2   : > { %v5341_v4 = vadd.f32 %v7396_v31, %v5213_v30  ;;  %v5633_v30 = vld [vmem:[%s8946_s11 + $0x8] sm:$0xff]  ;;  %v5634_v31 = vld [vmem:[%s8946_s11 + $0x10] sm:$0xff] }
0x13a3   : > { %v5335_v11 = vpop.f32.mrf.mxu1 }
0x13a4   : > { %v5336_v33 = vadd.f32 %v5335_v11, %v5208_v32  ;;  %v5359_v34 = vmul.f32 0.70710677, %v5341_v4  ;;  %v5355_v50 = vmul.f32 0.5, %v5341_v4  ;;  %v5635_v11 = vld [vmem:[%s8946_s11 + $0x18] sm:$0xff]  ;;  %v5636_v4 = vld [vmem:[%s8946_s11 + $0x20] sm:$0xff]  ;;  %v5637_v32 = vld [vmem:[%s8946_s11 + $0x28] sm:$0xff] }
0x13a6   : > { %v5358_v41 = vmul.f32 0.70710677, %v5336_v33  ;;  %7584 = verf.f32 %v5359_v34  ;;  %v5354_v36 = vmul.f32 0.5, %v5336_v33  ;;  %v5638_v33 = vld [vmem:[%s8946_s11 + $0x30] sm:$0xff]  ;;  %v5639_v34 = vld [vmem:[%s8946_s11 + $0x38] sm:$0xff] }
0x13a9   : > { %v7399_v35 = vpop.f32.mrf.mxu1 }
0x13aa   : > { %v5351_v39 = vadd.f32 %v7399_v35, %v5223_v28  ;;  %v5686_v35 = vpop.permute.xlu0 %5685 }
0x13ab   : > { %v5345_v42 = vpop.f32.mrf.mxu1 }
0x13ac   : > { %v5361_v43 = vmul.f32 0.70710677, %v5351_v39  ;;  %v5346_v46 = vadd.f32 %v5345_v42, %v5218_v29  ;;  %v5357_v9 = vmul.f32 0.5, %v5351_v39 }
0x13ae   : > { %7586 = verf.f32 %v5361_v43  ;;  %v5360_v49 = vmul.f32 0.70710677, %v5346_v46  ;;  %v5356_v61 = vmul.f32 0.5, %v5346_v46  ;;  %v5681_v39 = vpop.permute.xlu0 %5680 }
0x13af   : > { %7588 = verf.f32 %v5358_v41 }
0x13b0   : > { %7590 = verf.f32 %v5360_v49  ;;  %v5671_v49 = vpop.permute.xlu1 %5670 }
0x13b2   : > { %v5676_v43 = vpop.permute.xlu0 %5675 }
0x13b3   : > { %v7585_v51 = vpop.eup %7584 }
0x13b4   : > { %v5367_v56 = vadd.f32 1.0, %v7585_v51 }
0x13b6   : > { %v5371_v59 = vmul.f32 %v5367_v56, %v5355_v50 }
0x13bb   : > { %v7587_v52 = vpop.eup %7586 }
0x13bc   : > { %v7589_v54 = vpop.eup %7588  ;;  %v5369_v15 = vadd.f32 1.0, %v7587_v52 }
0x13bd   : > { %v7591_v26 = vpop.eup %7590  ;;  %v5366_v58 = vadd.f32 1.0, %v7589_v54 }
0x13be   : > { %v5373_v40 = vmul.f32 %v5369_v15, %v5357_v9  ;;  %v5368_v55 = vadd.f32 1.0, %v7591_v26  ;;  %v5666_v9 = vpop.permute.xlu0 %5665 }
0x13bf   : > { %v5370_v45 = vmul.f32 %v5366_v58, %v5354_v36 }
0x13c0   : > { %7400 = vmatprep.subr.mxu1 %v5373_v40  ;;  %v5372_v57 = vmul.f32 %v5368_v55, %v5356_v61  ;;  %v5661_v61 = vpop.permute.xlu1 %5660 }
0x13c1   : > { %7401 = vmatpush3.msra.mxu1 %v5373_v40 }
0x13c2   : > { %7402 = vmatprep.subr.mxu1 %v5372_v57 }
0x13c3   : > { %7403 = vmatpush3.msra.mxu1 %v5372_v57 }
0x13c4   : > { %7404 = vmatprep.subr.mxu1 %v5371_v59  ;;  %v5651_v37 = vpop.permute.xlu1 %5650 }
0x13c5   : > { %7405 = vmatpush3.msra.mxu1 %v5371_v59 }
0x13c6   : > { %7406 = vmatprep.subr.mxu1 %v5370_v45 }
0x13c7   : > { %7407 = vmatpush3.msra.mxu1 %v5370_v45 }
0x13c8   : > { %7409 = vmatmul.mubr.msk.f32.vlgmr.msra.gmra.mxu1 %vm696_vm2, %v6168_v60  ;;  %v5656_v60 = vpop.permute.xlu0 %5655 }
0x13c9   : > { %7411 = vmatprep.mubr.msk.f32.mxu1 %vm696_vm2, %v6169_v63 }
0x13cc   : > { %7412 = vmatmul.mubr.msk.f32.gmra.mxu1 %vm696_vm2, %v6170_v53 }
0x13cd   : > { %7436 = vmatprep.mubr.msk.f32.mxu1 %vm696_vm2, %v5632_v20 }
0x1488   : > { %v7410_v6 = vpop.f32.mrf.mxu1 }
0x1489   : > { %v5488_v17 = vadd.f32 %v7410_v6, %v5392_v1 }
0x148a   : > { %v5482_v7 = vpop.f32.mrf.mxu1 }
0x148b   : > { %v5483_v22 = vadd.f32 %v5482_v7, %v5387_v8  ;;  %v5629_v28 = vadd.f32 %v5615_v21, %v5488_v17 }
0x148c   : > { %v7413_v12 = vpop.f32.mrf.mxu1 }
0x148d   : > { %v5498_v16 = vadd.f32 %v7413_v12, %v5402_v13  ;;  %v5628_v29 = vadd.f32 %v5610_v27, %v5483_v22 }
0x148e   : > { %v5492_v47 = vpop.f32.mrf.mxu1 }
0x148f   : > { %v5631_v18 = vadd.f32 %v5625_v14, %v5498_v16  ;;  %v5493_v19 = vadd.f32 %v5492_v47, %v5397_v38 }
0x1491   : > { %v5630_v25 = vadd.f32 %v5620_v62, %v5493_v19  ;;  %7428 = vmatprep.subr.mxu1 %v5631_v18 }
0x1492   : > { %7429 = vmatpush3.msra.mxu1 %v5631_v18 }
0x1493   : > { %7430 = vmatprep.subr.mxu1 %v5630_v25 }
0x1494   : > { %7431 = vmatpush3.msra.mxu1 %v5630_v25 }
0x1495   : > { %7432 = vmatprep.subr.mxu1 %v5629_v28 }
0x1496   : > { %7433 = vmatpush3.msra.mxu1 %v5629_v28 }
0x1497   : > { %7434 = vmatprep.subr.mxu1 %v5628_v29 }
0x1498   : > { %7435 = vmatpush3.msra.mxu1 %v5628_v29 }
0x1499   : > { %7437 = vmatmul.mubr.msk.f32.vlgmr.msra.gmra.mxu1 %vm696_vm2, %v5633_v30 }
0x149a   : > { %7439 = vmatprep.mubr.msk.f32.mxu1 %vm696_vm2, %v5634_v31 }
0x149d   : > { %7440 = vmatmul.mubr.msk.f32.gmra.mxu1 %vm696_vm2, %v5635_v11 }
0x149e   : > { %7442 = vmatprep.mubr.msk.f32.mxu1 %vm696_vm2, %v5636_v4 }
0x14a1   : > { %7443 = vmatmul.mubr.msk.f32.gmra.mxu1 %vm696_vm2, %v5637_v32 }
0x14a2   : > { %7445 = vmatprep.mubr.msk.f32.mxu1 %vm696_vm2, %v5638_v33 }
0x14a5   : > { %7446 = vmatmul.mubr.msk.f32.gmra.mxu1 %vm696_vm2, %v5639_v34 }
0x1559   : > { %v7438_v41 = vpop.f32.mrf.mxu1 }
0x155a   : > { %v5784_v63 = vadd.f32 %v7438_v41, %v5656_v60  ;;  %v5857_v41 = vld [vmem:[%s8948_s13] sm:$0x1] }
0x155b   : > { %v5778_v42 = vpop.f32.mrf.mxu1 }
0x155c   : > { %v5779_v38 = vadd.f32 %v5778_v42, %v5651_v37  ;;  %v5826_v1 = vmul.f32 0.70710677, %v5784_v63  ;;  %v5818_v4 = vmul.f32 0.5, %v5784_v63  ;;  %v5866_v42 = vsub.s32 0, %v7956_v3 }
0x155d   : > { %v7441_v46 = vpop.f32.mrf.mxu1 }
0x155e   : > { %v5794_v56 = vadd.f32 %v7441_v46, %v5666_v9  ;;  %v5825_v23 = vmul.f32 0.70710677, %v5779_v38 }
0x155f   : > { %v5788_v51 = vpop.f32.mrf.mxu1 }
0x1560   : > { %v5789_v36 = vadd.f32 %v5788_v51, %v5661_v61  ;;  %v5828_v53 = vmul.f32 0.70710677, %v5794_v56  ;;  %v5820_v24 = vmul.f32 0.5, %v5794_v56 }
0x1561   : > { %v7444_v52 = vpop.f32.mrf.mxu1 }
0x1562   : > { %v5804_v54 = vadd.f32 %v7444_v52, %v5676_v43  ;;  %v5827_v0 = vmul.f32 0.70710677, %v5789_v36  ;;  %v5819_v11 = vmul.f32 0.5, %v5789_v36  ;;  %v5862_v43 = vpop.permute.xlu0 %5861 }
0x1563   : > { %v5798_v15 = vpop.f32.mrf.mxu1  ;;  %v5867_v46 = vrot.slane %v5862_v43, %v5866_v42 }
0x1564   : > { %v5799_v26 = vadd.f32 %v5798_v15, %v5671_v49  ;;  %v5830_v40 = vmul.f32 0.70710677, %v5804_v54  ;;  %v5822_v47 = vmul.f32 0.5, %v5804_v54 }
0x1565   : > { %v7447_v55 = vpop.f32.mrf.mxu1 }
0x1566   : > { %v5814_v50 = vadd.f32 %v7447_v55, %v5686_v35  ;;  %v5829_v57 = vmul.f32 0.70710677, %v5799_v26  ;;  %7592 = verf.f32 %v5830_v40  ;;  %v5821_v22 = vmul.f32 0.5, %v5799_v26 }
0x1567   : > { %v5808_v58 = vpop.f32.mrf.mxu1  ;;  %v5817_v35 = vmul.f32 0.5, %v5779_v38 }
0x1568   : > { %v5832_v59 = vmul.f32 0.70710677, %v5814_v50  ;;  %v5809_v45 = vadd.f32 %v5808_v58, %v5681_v39  ;;  %v5824_v6 = vmul.f32 0.5, %v5814_v50 }
0x156a   : > { %7594 = verf.f32 %v5832_v59  ;;  %v5831_v20 = vmul.f32 0.70710677, %v5809_v45  ;;  %v5823_v12 = vmul.f32 0.5, %v5809_v45 }
0x156b   : > { %7596 = verf.f32 %v5829_v57 }
0x156c   : > { %7598 = verf.f32 %v5831_v20 }
0x156d   : > { %7600 = verf.f32 %v5828_v53 }
0x156e   : > { %7602 = verf.f32 %v5827_v0 }
0x156f   : > { %7604 = verf.f32 %v5826_v1 }
0x1570   : > { %7606 = verf.f32 %v5825_v23 }
0x1573   : > { %v7593_v2 = vpop.eup %7592 }
0x1574   : > { %v5846_v10 = vadd.f32 1.0, %v7593_v2 }
0x1576   : > { %v5854_v21 = vmul.f32 %v5846_v10, %v5822_v47 }
0x1577   : > { %v7595_v44 = vpop.eup %7594 }
0x1578   : > { %v7597_v5 = vpop.eup %7596  ;;  %v5848_v7 = vadd.f32 1.0, %v7595_v44 }
0x1579   : > { %v7599_v8 = vpop.eup %7598  ;;  %v5845_v62 = vadd.f32 1.0, %v7597_v5 }
0x157a   : > { %v5856_v13 = vmul.f32 %v5848_v7, %v5824_v6  ;;  %v5847_v14 = vadd.f32 1.0, %v7599_v8  ;;  %v7601_v16 = vpop.eup %7600 }
0x157b   : > { %v7603_v18 = vpop.eup %7602  ;;  %v5844_v19 = vadd.f32 1.0, %v7601_v16  ;;  %v5853_v28 = vmul.f32 %v5845_v62, %v5821_v22 }
0x157c   : > { %v5855_v17 = vmul.f32 %v5847_v14, %v5823_v12  ;;  %7449 = vmatpush3.msra.mxu0 %v5856_v13  ;;  %v7605_v25 = vpop.eup %7604  ;;  %v5843_v27 = vadd.f32 1.0, %v7603_v18 }
0x157d   : > { %7450 = vmatprep.subr.mxu0 %v7709_v48  ;;  %v7607_v29 = vpop.eup %7606  ;;  %v5842_v30 = vadd.f32 1.0, %v7605_v25  ;;  %v5852_v31 = vmul.f32 %v5844_v19, %v5820_v24 }
0x157e   : > { %7451 = vmatpush3.msra.mxu0 %v5855_v17  ;;  %v5841_v32 = vadd.f32 1.0, %v7607_v29  ;;  %v5851_v33 = vmul.f32 %v5843_v27, %v5819_v11 }
0x157f   : > { %7452 = vmatprep.subr.mxu0 %v7709_v48  ;;  %v5850_v34 = vmul.f32 %v5842_v30, %v5818_v4 }
0x1580   : > { %7453 = vmatpush3.msra.mxu0 %v5854_v21  ;;  %v5849_v39 = vmul.f32 %v5841_v32, %v5817_v35 }
0x1581   : > { %7454 = vmatprep.subr.mxu0 %v7709_v48 }
0x1582   : > { %7455 = vmatpush3.msra.mxu0 %v5853_v28 }
0x1583   : > { %7456 = vmatprep.subr.mxu0 %v7709_v48 }
0x1584   : > { %7457 = vmatpush3.msra.mxu0 %v5852_v31 }
0x1585   : > { %7458 = vmatprep.subr.mxu0 %v7709_v48 }
0x1586   : > { %7459 = vmatpush3.msra.mxu0 %v5851_v33 }
0x1587   : > { %7460 = vmatprep.subr.mxu0 %v7709_v48 }
0x1588   : > { %7461 = vmatpush3.msra.mxu0 %v5850_v34 }
0x1589   : > { %7462 = vmatprep.subr.mxu0 %v7709_v48 }
0x158a   : > { %7463 = vmatpush3.msra.mxu0 %v5849_v39 }
0x158b   : > { %7465 = vmatmul.mubr.msk.f32.vlgmr.msra.gmra.mxu0 %vm812_vm3, %v5857_v41 }
0x164b   : > { %v5937_v49 = vpop.f32.mrf.mxu0 }
0x164c   : > { %v5938_v51 = vadd.f32 %v5937_v49, %v5867_v46 }
0x164d   : > { %v7466_v48 = vpop.f32.mrf.mxu0 }
0x164e   : > { %5942 = vst.msk [vmem:[%s499_s26] sm:$0x1] %vm5941_vm11, %v5938_v51 }
0x164f   : > { %7651 = shalt.err (!%p7648_p0)
}
0x1650   : > { %s7652_s24 = scalar_lea.hbm %s8900_s19, 16  ;;  %s7656_s26 = scalar_lea.hbm %s8950_s15, 32 }
0x1651   : > { %p7653_p1 = scmp.ne.s32.totalorder %s8900_s19, %s7652_s24  ;;  %p7657_p4 = scmp.lt.s32.totalorder %s8900_s19, %s8950_s15 }
0x1652   : > { %p7658_p7 = scmp.lt.s32.totalorder %s7656_s26, %s7652_s24 }
0x1653   : > { %p7654_p2 = pnand %p7653_p1, %p7836_p5 }
0x1654   : > { %p7659_p6 = por %p7658_p7, %p7657_p4 }
0x1655   : > { %p7655_p3 = pneg %p7654_p2 }
0x1657   : > { %p7660_p8 = pnand %p7659_p6, %p7655_p3 }
0x1659   : > { %7663 = shalt.err (!%p7660_p8)
}
0x165a   : > { %7471 = dma.vmem_to_hbm [thread:$0]  (%p7836_p5), %s5957_s0, 16, %s8900_s19, %s5944_s28  }
0x165b PF: > { %p7483_p9 = scmp.ge.s32.totalorder %s7702_s23, 2  ;;  %s5968_s16 = sand.u32 1, %s7690_s20  }
0x165c   : > { %p8970_p10 = scmp.ne.s32.totalorder %s8964_s30, 0  ;;  %s5969_s14 = scalar_lea.sflag [#allocation5], %s5968_s16 }
0x165e   : > { %p7478_p11 = pnand %p7483_p9, %p8970_p10 }
0x1660   : > { %p7479_p12 = pneg %p7478_p11 }
0x1662   : > { %7685 = dma.done.wait (%p7479_p12), %s5969_s14, 16  }
0x1663   : > { %7687 = vsyncadd (%p7479_p12), %s5969_s14, 4294967280  ;;  %s8971_s23 = sld [smem:[#allocation10_spill]]  ;;  %s8974_s20 = smov %s7694_s21 }
0x1664   : > { %s8972_s27 = sld [smem:[#allocation9_spill]] }
0x1665   : > { %s8973_s22 = sld [smem:[#allocation11_spill]] }
0x1669   : > { %p28_p13 = scmp.ge.s32.totalorder %s8971_s23, 4  }
0x166a   : > { %s8975_s21 = smov %s8972_s27 }
0x166b   :  { %30 = sbr.rel (!%p28_p13) target bundleno = 7 (0x7), region = 138 }
0x1670   :  { %5973 = vsyncpa [#allocation4], 1 }
0x1671   :  { %5975 = vsyncpa [#allocation4 + $0x1], 1 }
0x1672   :  { %5976 = vsyncpa [#allocation5], 1 }
0x1673   :  { %5978 = vsyncpa [#allocation5 + $0x1], 1 }

</bundles_post_ra>
